<compile_context>
chip_gen: v7x
topology: tpu7x:2x2x1
jax: 0.10.0
libtpu: 0.0.40
codegen_flags: <defaults>
</compile_context>

<pallas_src>
import functools
import math

import jax
import jax.numpy as jnp
from jax.experimental import pallas as pl
from jax.experimental.pallas import tpu as pltpu

LANE = 128
# Operand dtype fed to the MXU for the weight matmuls.  f32 keeps the 1e-4
# tolerance vs. the exact f32 reference; use jnp.bfloat16 on v6e/v7x at real
# sizes (f32 accumulation is kept via preferred_element_type).
MXU_DTYPE = jnp.float32


def _round_up(n, m):
    return (n + m - 1) // m * m


# ----------------------------- in-kernel helpers -----------------------------

def _layer_norm_padded(x, gamma, beta, mask, inv_d, eps=1e-5):
    """LayerNorm over a zero-padded last dim; stats use the true width.

    x:(N, Dp) with lanes [true_d:] == 0.  gamma/beta:(1, Dp) are zero in the
    padded lanes and mask:(1, Dp) is 1 on true lanes / 0 on padding, so the
    padded output lanes stay exactly zero and the two-pass variance only sees
    the true D lanes."""
    mu = jnp.sum(x, axis=-1, keepdims=True) * inv_d
    d = (x - mu) * mask                                  # zero in padded lanes
    var = jnp.sum(d * d, axis=-1, keepdims=True) * inv_d # E[(x-mu)^2] over true D
    return d * jax.lax.rsqrt(var + eps) * gamma + beta


def _gelu_exact(x):
    # PyTorch nn.GELU() default = exact erf-based GELU (kept exact for 1e-4).
    return 0.5 * x * (1.0 + jax.lax.erf(x * jnp.float32(1.0 / math.sqrt(2.0))))


def _proj(x, w_ref):
    # Weight matmul with f32 accumulation; operands cast to the MXU dtype.
    w = w_ref[...]
    return jnp.dot(x.astype(w.dtype), w, preferred_element_type=jnp.float32)


def _attn_core(out_ref, Q, K, V, batch, t_q, s_kv):
    """CrossAttention core with the reference semantics (softmax over the
    *query* axis, i.e. dim=1 of (b, t, s); no 1/sqrt(E) scaling).

    Scores are built transposed -> (S, T) so the query-axis softmax is a
    last-axis (lane) reduce and no transpose is ever materialized; each
    batch's (T, D) result is stored straight into rows of `out_ref`."""
    for b in range(batch):
        Qb = Q[b * t_q:(b + 1) * t_q, :]
        Kb = K[b * s_kv:(b + 1) * s_kv, :]
        Vb = V[b * s_kv:(b + 1) * s_kv, :]
        # scores_t[s, t] = sum_e Kb[s, e] * Qb[t, e]      (no .T materialized)
        scores_t = jax.lax.dot_general(
            Kb, Qb, (((1,), (1,)), ((), ())),
            preferred_element_type=jnp.float32)           # (S, T)
        # reference softmax over the query/token axis == last axis here.
        m = jnp.max(scores_t, axis=-1, keepdims=True)
        e = jnp.exp(scores_t - m)
        denom = jnp.sum(e, axis=-1, keepdims=True)
        attn_t = e * pl.reciprocal(denom, approx=False)   # EUP, not VALU divide
        # out[t, d] = sum_s attn_t[s, t] * Vb[s, d]   (contract dim 0 of both)
        out_ref[pl.ds(b * t_q, t_q), :] = jax.lax.dot_general(
            attn_t, Vb, (((0,), (0,)), ((), ())),
            preferred_element_type=jnp.float32)           # (Tq, D)


# --------------------------------- kernel ------------------------------------

def transformer_block_kernel(
    x_ref, ctx_ref,
    g1_ref, be1_ref, wqkv_s_ref,
    g2_ref, be2_ref, wq_c_ref, wkv_c_ref,
    g3_ref, be3_ref, w1_ref, b1_ref, w2_ref, b2_ref,
    o_ref,
    attn_scratch,
    *, batch, t_tok, s_ctx, d_true,
):
    dp = x_ref.shape[-1]
    x = x_ref[...]            # (B*T, Dp)   padded lanes are zero
    ctx = ctx_ref[...]        # (B*S, Dcp)  padded lanes are zero

    # Lane mask / scale for the padded LayerNorms (hoisted once, reused 3x).
    lane = jax.lax.broadcasted_iota(jnp.int32, (1, dp), 1)
    mask = (lane < d_true).astype(jnp.float32)
    inv_d = jnp.float32(1.0 / d_true)

    # --- self attention block:  x = attn_self(norm1(x)) + x ---
    h = _layer_norm_padded(x, g1_ref[...], be1_ref[...], mask, inv_d)
    qkv = _proj(h, wqkv_s_ref)                        # (B*T, 3*Dp) fused QKV
    _attn_core(attn_scratch,
               qkv[:, 0 * dp:1 * dp],                 # Q
               qkv[:, 1 * dp:2 * dp],                 # K
               qkv[:, 2 * dp:3 * dp],                 # V
               batch, t_tok, t_tok)
    x = attn_scratch[...] + x

    # --- cross attention block:  x = attn_cross(norm2(x), context) + x ---
    h = _layer_norm_padded(x, g2_ref[...], be2_ref[...], mask, inv_d)
    q = _proj(h, wq_c_ref)                            # (B*T, Dp)
    kv = _proj(ctx, wkv_c_ref)                        # (B*S, 2*Dp) fused KV
    _attn_core(attn_scratch,
               q,
               kv[:, 0 * dp:1 * dp],                  # K
               kv[:, 1 * dp:2 * dp],                  # V
               batch, t_tok, s_ctx)
    x = attn_scratch[...] + x

    # --- feed-forward block:  x = GELU(GELU(h@W1+b1)@W2+b2) + x ---
    h = _layer_norm_padded(x, g3_ref[...], be3_ref[...], mask, inv_d)
    h = _gelu_exact(_proj(h, w1_ref) + b1_ref[...])
    h = _gelu_exact(_proj(h, w2_ref) + b2_ref[...])
    o_ref[...] = h + x        # (B*T, Dp) lane-dense, unmasked stores


# -------------------------------- wrapper ------------------------------------

def _pad_cols(a, cols):
    return jnp.pad(a, ((0, 0), (0, cols - a.shape[-1])))


def _pad_mat(w, rows, cols):
    return jnp.pad(w, ((0, rows - w.shape[0]), (0, cols - w.shape[1])))


def transformer_block(x, context, params):
    """x:(B, T, D) tokens, context:(B, S, Dc) -> (B, T, D)."""
    B, T, D = x.shape
    _, S, Dc = context.shape
    Dp = _round_up(D, LANE)
    Dcp = _round_up(Dc, LANE)
    Hp = _round_up(4 * D, LANE)

    p = params
    vec = lambda v, cols: _pad_cols(v.reshape(1, -1).astype(jnp.float32), cols)

    x2d = _pad_cols(x.reshape(B * T, D), Dp)
    ctx2d = _pad_cols(context.reshape(B * S, Dc), Dcp)

    # Fused weights: self-attn QKV along the output dim (Dp, 3*Dp); cross-attn
    # KV (Dcp, 2*Dp).  128-lane column blocks are sliced back out in-kernel.
    wqkv_s = jnp.concatenate(
        [_pad_mat(p["wq_s"], Dp, Dp),
         _pad_mat(p["wk_s"], Dp, Dp),
         _pad_mat(p["wv_s"], Dp, Dp)], axis=1).astype(MXU_DTYPE)
    wkv_c = jnp.concatenate(
        [_pad_mat(p["wk_c"], Dcp, Dp),
         _pad_mat(p["wv_c"], Dcp, Dp)], axis=1).astype(MXU_DTYPE)

    args = (
        x2d, ctx2d,
        vec(p["g1"], Dp), vec(p["be1"], Dp), wqkv_s,
        vec(p["g2"], Dp), vec(p["be2"], Dp),
        _pad_mat(p["wq_c"], Dp, Dp).astype(MXU_DTYPE), wkv_c,
        vec(p["g3"], Dp), vec(p["be3"], Dp),
        _pad_mat(p["w1"], Dp, Hp).astype(MXU_DTYPE), vec(p["b1"], Hp),
        _pad_mat(p["w2"], Hp, Dp).astype(MXU_DTYPE), vec(p["b2"], Dp),
    )

    kernel = functools.partial(
        transformer_block_kernel, batch=B, t_tok=T, s_ctx=S, d_true=D)

    # Advisory cost estimate so XLA can schedule around the custom call.
    BT, BS = B * T, B * S
    flops = 2 * (BT * Dp * 3 * Dp          # self QKV projection (fused)
                 + B * T * T * Dp          # self scores
                 + B * T * T * Dp          # self attn @ V
                 + BT * Dp * Dp            # cross Q projection
                 + BS * Dcp * 2 * Dp       # cross KV projection (fused)
                 + B * S * T * Dp          # cross scores
                 + B * T * S * Dp          # cross attn @ V
                 + BT * Dp * Hp            # FFN linear 1
                 + BT * Hp * Dp)           # FFN linear 2
    transcendentals = (B * T * T + B * S * T    # exp
                       + BT * Hp + BT * Dp      # erf (GELU x2)
                       + 3 * BT                 # rsqrt (LayerNorm x3)
                       + B * (T + S))           # softmax reciprocals
    bytes_accessed = sum(int(a.size) * a.dtype.itemsize for a in args) \
        + BT * Dp * 4

    vmem = pl.BlockSpec(memory_space=pltpu.MemorySpace.VMEM)
    out2d = pl.pallas_call(
        kernel,
        out_shape=jax.ShapeDtypeStruct((B * T, Dp), jnp.float32),
        in_specs=[vmem] * len(args),
        out_specs=vmem,
        scratch_shapes=[pltpu.VMEM((B * T, Dp), jnp.float32)],
        input_output_aliases={0: 0},   # token slab reused as the output buffer
        compiler_params=pltpu.CompilerParams(
            vmem_limit_bytes=32 * 1024 * 1024),
        cost_estimate=pl.CostEstimate(
            flops=int(flops),
            transcendentals=int(transcendentals),
            bytes_accessed=int(bytes_accessed)),
    )(*args)

    return out2d.reshape(B, T, Dp)[:, :, :D]


# -------------------------- pure-JAX reference -------------------------------

def _reference(x, context, p):
    def ln(v, g, b):
        mu = jnp.mean(v, -1, keepdims=True)
        var = jnp.mean((v - mu) ** 2, -1, keepdims=True)
        return (v - mu) / jnp.sqrt(var + 1e-5) * g + b

    def attn(q_in, kv_in, wq, wk, wv):
        Q = q_in @ wq
        K = kv_in @ wk
        V = kv_in @ wv
        scores = jnp.einsum("bth,bsh->bts", Q, K)
        a = jax.nn.softmax(scores, axis=1)   # softmax over the query/token axis
        return jnp.einsum("bts,bsh->bth", a, V)

    gelu = lambda v: 0.5 * v * (1.0 + jax.lax.erf(v / jnp.sqrt(2.0)))

    h = ln(x, p["g1"], p["be1"])
    x = attn(h, h, p["wq_s"], p["wk_s"], p["wv_s"]) + x
    h = ln(x, p["g2"], p["be2"])
    x = attn(h, context, p["wq_c"], p["wk_c"], p["wv_c"]) + x
    h = ln(x, p["g3"], p["be3"])
    h = gelu(gelu(h @ p["w1"] + p["b1"]) @ p["w2"] + p["b2"])
    return h + x


# --------------------------------- main --------------------------------------

def _init_params(key, hidden_dim, context_dim):
    D, Dc = hidden_dim, context_dim
    ks = jax.random.split(key, 10)

    def lin_w(k, fan_in, fan_out):
        bound = 1.0 / math.sqrt(fan_in)
        # stored pre-transposed as (in, out) so forward is x @ W
        return jax.random.uniform(k, (fan_in, fan_out), jnp.float32, -bound, bound)

    def lin_b(k, fan_in, fan_out):
        bound = 1.0 / math.sqrt(fan_in)
        return jax.random.uniform(k, (fan_out,), jnp.float32, -bound, bound)

    return {
        "g1": jnp.ones((D,), jnp.float32), "be1": jnp.zeros((D,), jnp.float32),
        "wq_s": lin_w(ks[0], D, D), "wk_s": lin_w(ks[1], D, D), "wv_s": lin_w(ks[2], D, D),
        "g2": jnp.ones((D,), jnp.float32), "be2": jnp.zeros((D,), jnp.float32),
        "wq_c": lin_w(ks[3], D, D), "wk_c": lin_w(ks[4], Dc, D), "wv_c": lin_w(ks[5], Dc, D),
        "g3": jnp.ones((D,), jnp.float32), "be3": jnp.zeros((D,), jnp.float32),
        "w1": lin_w(ks[6], D, 4 * D), "b1": lin_b(ks[7], D, 4 * D),
        "w2": lin_w(ks[8], 4 * D, D), "b2": lin_b(ks[9], 4 * D, D),
    }


if __name__ == "__main__":
    B, T, D = 2, 64, 32     # batch=2, 64 tokens, hidden_dim=32
    S, Dc = 8, 16           # 8 context tokens of context_dim=16

    key = jax.random.PRNGKey(0)
    kx, kc, kp = jax.random.split(key, 3)
    x = jax.random.normal(kx, (B, T, D), jnp.float32)
    context = jax.random.normal(kc, (B, S, Dc), jnp.float32)
    params = _init_params(kp, D, Dc)

    out = transformer_block(x, context, params)
    out = jax.block_until_ready(out)

    ref = _reference(x, context, params)
    assert out.shape == x.shape
    assert jnp.allclose(out, ref, atol=1e-4, rtol=1e-4), (
        f"mismatch vs pure-JAX reference, max abs err = {jnp.max(jnp.abs(out - ref))}")

    print("KERNEL_OK")
</pallas_src>

<mosaic_0001>
module attributes {stable_mosaic.version = 11 : i64} {
  func.func @transformer_block_kernel(%arg0: memref<128x128xf32, #tpu.memory_space<vmem>>, %arg1: memref<16x128xf32, #tpu.memory_space<vmem>>, %arg2: memref<1x128xf32, #tpu.memory_space<vmem>>, %arg3: memref<1x128xf32, #tpu.memory_space<vmem>>, %arg4: memref<128x384xf32, #tpu.memory_space<vmem>>, %arg5: memref<1x128xf32, #tpu.memory_space<vmem>>, %arg6: memref<1x128xf32, #tpu.memory_space<vmem>>, %arg7: memref<128x128xf32, #tpu.memory_space<vmem>>, %arg8: memref<128x256xf32, #tpu.memory_space<vmem>>, %arg9: memref<1x128xf32, #tpu.memory_space<vmem>>, %arg10: memref<1x128xf32, #tpu.memory_space<vmem>>, %arg11: memref<128x128xf32, #tpu.memory_space<vmem>>, %arg12: memref<1x128xf32, #tpu.memory_space<vmem>>, %arg13: memref<128x128xf32, #tpu.memory_space<vmem>>, %arg14: memref<1x128xf32, #tpu.memory_space<vmem>>, %arg15: memref<128x128xf32, #tpu.memory_space<vmem>>, %arg16: memref<128x128xf32, #tpu.memory_space<vmem>>) attributes {dimension_semantics = [], scalar_prefetch = 0 : i64, scratch_operands = 1 : i64, tpu.core_type = #tpu.core_type<tc>} {
    %c0 = arith.constant 0 : index
    %c0_0 = arith.constant 0 : index
    %0 = vector.load %arg0[%c0, %c0_0] : memref<128x128xf32, #tpu.memory_space<vmem>>, vector<128x128xf32>
    %c0_1 = arith.constant 0 : index
    %c0_2 = arith.constant 0 : index
    %1 = vector.load %arg1[%c0_1, %c0_2] : memref<16x128xf32, #tpu.memory_space<vmem>>, vector<16x128xf32>
    %2 = tpu.iota {dimensions = array<i32: 1>} : vector<1x128xi32>
    %c32_i32 = arith.constant 32 : i32
    %3 = vector.broadcast %c32_i32 : i32 to vector<1x128xi32>
    %4 = arith.cmpi slt, %2, %3 : vector<1x128xi32>
    %5 = arith.extui %4 : vector<1x128xi1> to vector<1x128xi32>
    %6 = arith.sitofp %5 : vector<1x128xi32> to vector<1x128xf32>
    %c0_3 = arith.constant 0 : index
    %c0_4 = arith.constant 0 : index
    %7 = vector.load %arg2[%c0_3, %c0_4] : memref<1x128xf32, #tpu.memory_space<vmem>>, vector<1x128xf32>
    %c0_5 = arith.constant 0 : index
    %c0_6 = arith.constant 0 : index
    %8 = vector.load %arg3[%c0_5, %c0_6] : memref<1x128xf32, #tpu.memory_space<vmem>>, vector<1x128xf32>
    %cst = arith.constant dense<0.000000e+00> : vector<128xf32>
    %9 = vector.multi_reduction <add>, %0, %cst [1] : vector<128x128xf32> to vector<128xf32>
    %10 = vector.shape_cast %9 : vector<128xf32> to vector<128x1xf32>
    %cst_7 = arith.constant 3.125000e-02 : f32
    %11 = vector.broadcast %cst_7 : f32 to vector<128x1xf32>
    %12 = arith.mulf %10, %11 : vector<128x1xf32>
    %13 = vector.broadcast %12 : vector<128x1xf32> to vector<128x128xf32>
    %14 = arith.subf %0, %13 : vector<128x128xf32>
    %15 = vector.broadcast %6 : vector<1x128xf32> to vector<128x128xf32>
    %16 = arith.mulf %14, %15 : vector<128x128xf32>
    %17 = arith.mulf %16, %16 : vector<128x128xf32>
    %cst_8 = arith.constant dense<0.000000e+00> : vector<128xf32>
    %18 = vector.multi_reduction <add>, %17, %cst_8 [1] : vector<128x128xf32> to vector<128xf32>
    %19 = vector.shape_cast %18 : vector<128xf32> to vector<128x1xf32>
    %cst_9 = arith.constant 3.125000e-02 : f32
    %20 = vector.broadcast %cst_9 : f32 to vector<128x1xf32>
    %21 = arith.mulf %19, %20 : vector<128x1xf32>
    %cst_10 = arith.constant 9.99999974E-6 : f32
    %22 = vector.broadcast %cst_10 : f32 to vector<128x1xf32>
    %23 = arith.addf %21, %22 : vector<128x1xf32>
    %24 = math.rsqrt %23 : vector<128x1xf32>
    %25 = vector.broadcast %24 : vector<128x1xf32> to vector<128x128xf32>
    %26 = arith.mulf %16, %25 : vector<128x128xf32>
    %27 = vector.broadcast %7 : vector<1x128xf32> to vector<128x128xf32>
    %28 = arith.mulf %26, %27 : vector<128x128xf32>
    %29 = vector.broadcast %8 : vector<1x128xf32> to vector<128x128xf32>
    %30 = arith.addf %28, %29 : vector<128x128xf32>
    %c0_11 = arith.constant 0 : index
    %c0_12 = arith.constant 0 : index
    %31 = vector.load %arg4[%c0_11, %c0_12] : memref<128x384xf32, #tpu.memory_space<vmem>>, vector<128x384xf32>
    %cst_13 = arith.constant dense<0.000000e+00> : vector<128x384xf32>
    %32 = tpu.matmul %30, %31, %cst_13 {dimension_numbers = #tpu.dot_dimension_numbers<[1], [0], [0], [1], [0, 0, 1, 1], [], []>} : vector<128x128xf32>, vector<128x384xf32>, vector<128x384xf32> -> vector<128x384xf32>
    %33 = vector.extract_strided_slice %32 {offsets = [0, 0], sizes = [128, 128], strides = [1, 1]} : vector<128x384xf32> to vector<128x128xf32>
    %34 = vector.extract_strided_slice %32 {offsets = [0, 128], sizes = [128, 128], strides = [1, 1]} : vector<128x384xf32> to vector<128x128xf32>
    %35 = vector.extract_strided_slice %32 {offsets = [0, 256], sizes = [128, 128], strides = [1, 1]} : vector<128x384xf32> to vector<128x128xf32>
    %36 = vector.extract_strided_slice %33 {offsets = [0, 0], sizes = [64, 128], strides = [1, 1]} : vector<128x128xf32> to vector<64x128xf32>
    %37 = vector.extract_strided_slice %34 {offsets = [0, 0], sizes = [64, 128], strides = [1, 1]} : vector<128x128xf32> to vector<64x128xf32>
    %38 = vector.extract_strided_slice %35 {offsets = [0, 0], sizes = [64, 128], strides = [1, 1]} : vector<128x128xf32> to vector<64x128xf32>
    %cst_14 = arith.constant dense<0.000000e+00> : vector<64x64xf32>
    %39 = tpu.matmul %37, %36, %cst_14 {dimension_numbers = #tpu.dot_dimension_numbers<[1], [1], [0], [0], [0, 0, 1, 0], [], []>} : vector<64x128xf32>, vector<64x128xf32>, vector<64x64xf32> -> vector<64x64xf32>
    %cst_15 = arith.constant dense<0xFF800000> : vector<64xf32>
    %40 = vector.multi_reduction <maximumf>, %39, %cst_15 [1] : vector<64x64xf32> to vector<64xf32>
    %41 = vector.shape_cast %40 : vector<64xf32> to vector<64x1xf32>
    %42 = vector.broadcast %41 : vector<64x1xf32> to vector<64x64xf32>
    %43 = arith.subf %39, %42 : vector<64x64xf32>
    %44 = math.exp %43 : vector<64x64xf32>
    %cst_16 = arith.constant dense<0.000000e+00> : vector<64xf32>
    %45 = vector.multi_reduction <add>, %44, %cst_16 [1] : vector<64x64xf32> to vector<64xf32>
    %46 = vector.shape_cast %45 : vector<64xf32> to vector<64x1xf32>
    %47 = tpu.reciprocal %46 : vector<64x1xf32> -> vector<64x1xf32>
    %48 = vector.broadcast %47 : vector<64x1xf32> to vector<64x64xf32>
    %49 = arith.mulf %44, %48 : vector<64x64xf32>
    %cst_17 = arith.constant dense<0.000000e+00> : vector<64x128xf32>
    %50 = tpu.matmul %49, %38, %cst_17 {dimension_numbers = #tpu.dot_dimension_numbers<[0], [0], [1], [1], [0, 1, 1, 1], [], []>} : vector<64x64xf32>, vector<64x128xf32>, vector<64x128xf32> -> vector<64x128xf32>
    %c0_18 = arith.constant 0 : index
    %c0_19 = arith.constant 0 : index
    %51 = vector.load %arg16[%c0_18, %c0_19] : memref<128x128xf32, #tpu.memory_space<vmem>>, vector<64x128xf32>
    tpu.vector_store %arg16[%c0_18, %c0_19], %50 {strides = array<i32>} : memref<128x128xf32, #tpu.memory_space<vmem>>, vector<64x128xf32>,
    %52 = vector.extract_strided_slice %33 {offsets = [64, 0], sizes = [64, 128], strides = [1, 1]} : vector<128x128xf32> to vector<64x128xf32>
    %53 = vector.extract_strided_slice %34 {offsets = [64, 0], sizes = [64, 128], strides = [1, 1]} : vector<128x128xf32> to vector<64x128xf32>
    %54 = vector.extract_strided_slice %35 {offsets = [64, 0], sizes = [64, 128], strides = [1, 1]} : vector<128x128xf32> to vector<64x128xf32>
    %cst_20 = arith.constant dense<0.000000e+00> : vector<64x64xf32>
    %55 = tpu.matmul %53, %52, %cst_20 {dimension_numbers = #tpu.dot_dimension_numbers<[1], [1], [0], [0], [0, 0, 1, 0], [], []>} : vector<64x128xf32>, vector<64x128xf32>, vector<64x64xf32> -> vector<64x64xf32>
    %cst_21 = arith.constant dense<0xFF800000> : vector<64xf32>
    %56 = vector.multi_reduction <maximumf>, %55, %cst_21 [1] : vector<64x64xf32> to vector<64xf32>
    %57 = vector.shape_cast %56 : vector<64xf32> to vector<64x1xf32>
    %58 = vector.broadcast %57 : vector<64x1xf32> to vector<64x64xf32>
    %59 = arith.subf %55, %58 : vector<64x64xf32>
    %60 = math.exp %59 : vector<64x64xf32>
    %cst_22 = arith.constant dense<0.000000e+00> : vector<64xf32>
    %61 = vector.multi_reduction <add>, %60, %cst_22 [1] : vector<64x64xf32> to vector<64xf32>
    %62 = vector.shape_cast %61 : vector<64xf32> to vector<64x1xf32>
    %63 = tpu.reciprocal %62 : vector<64x1xf32> -> vector<64x1xf32>
    %64 = vector.broadcast %63 : vector<64x1xf32> to vector<64x64xf32>
    %65 = arith.mulf %60, %64 : vector<64x64xf32>
    %cst_23 = arith.constant dense<0.000000e+00> : vector<64x128xf32>
    %66 = tpu.matmul %65, %54, %cst_23 {dimension_numbers = #tpu.dot_dimension_numbers<[0], [0], [1], [1], [0, 1, 1, 1], [], []>} : vector<64x64xf32>, vector<64x128xf32>, vector<64x128xf32> -> vector<64x128xf32>
    %c64 = arith.constant 64 : index
    %c0_24 = arith.constant 0 : index
    %67 = vector.load %arg16[%c64, %c0_24] : memref<128x128xf32, #tpu.memory_space<vmem>>, vector<64x128xf32>
    tpu.vector_store %arg16[%c64, %c0_24], %66 {strides = array<i32>} : memref<128x128xf32, #tpu.memory_space<vmem>>, vector<64x128xf32>,
    %c0_25 = arith.constant 0 : index
    %c0_26 = arith.constant 0 : index
    %68 = vector.load %arg16[%c0_25, %c0_26] : memref<128x128xf32, #tpu.memory_space<vmem>>, vector<128x128xf32>
    %69 = arith.addf %68, %0 : vector<128x128xf32>
    %c0_27 = arith.constant 0 : index
    %c0_28 = arith.constant 0 : index
    %70 = vector.load %arg5[%c0_27, %c0_28] : memref<1x128xf32, #tpu.memory_space<vmem>>, vector<1x128xf32>
    %c0_29 = arith.constant 0 : index
    %c0_30 = arith.constant 0 : index
    %71 = vector.load %arg6[%c0_29, %c0_30] : memref<1x128xf32, #tpu.memory_space<vmem>>, vector<1x128xf32>
    %cst_31 = arith.constant dense<0.000000e+00> : vector<128xf32>
    %72 = vector.multi_reduction <add>, %69, %cst_31 [1] : vector<128x128xf32> to vector<128xf32>
    %73 = vector.shape_cast %72 : vector<128xf32> to vector<128x1xf32>
    %cst_32 = arith.constant 3.125000e-02 : f32
    %74 = vector.broadcast %cst_32 : f32 to vector<128x1xf32>
    %75 = arith.mulf %73, %74 : vector<128x1xf32>
    %76 = vector.broadcast %75 : vector<128x1xf32> to vector<128x128xf32>
    %77 = arith.subf %69, %76 : vector<128x128xf32>
    %78 = vector.broadcast %6 : vector<1x128xf32> to vector<128x128xf32>
    %79 = arith.mulf %77, %78 : vector<128x128xf32>
    %80 = arith.mulf %79, %79 : vector<128x128xf32>
    %cst_33 = arith.constant dense<0.000000e+00> : vector<128xf32>
    %81 = vector.multi_reduction <add>, %80, %cst_33 [1] : vector<128x128xf32> to vector<128xf32>
    %82 = vector.shape_cast %81 : vector<128xf32> to vector<128x1xf32>
    %cst_34 = arith.constant 3.125000e-02 : f32
    %83 = vector.broadcast %cst_34 : f32 to vector<128x1xf32>
    %84 = arith.mulf %82, %83 : vector<128x1xf32>
    %cst_35 = arith.constant 9.99999974E-6 : f32
    %85 = vector.broadcast %cst_35 : f32 to vector<128x1xf32>
    %86 = arith.addf %84, %85 : vector<128x1xf32>
    %87 = math.rsqrt %86 : vector<128x1xf32>
    %88 = vector.broadcast %87 : vector<128x1xf32> to vector<128x128xf32>
    %89 = arith.mulf %79, %88 : vector<128x128xf32>
    %90 = vector.broadcast %70 : vector<1x128xf32> to vector<128x128xf32>
    %91 = arith.mulf %89, %90 : vector<128x128xf32>
    %92 = vector.broadcast %71 : vector<1x128xf32> to vector<128x128xf32>
    %93 = arith.addf %91, %92 : vector<128x128xf32>
    %c0_36 = arith.constant 0 : index
    %c0_37 = arith.constant 0 : index
    %94 = vector.load %arg7[%c0_36, %c0_37] : memref<128x128xf32, #tpu.memory_space<vmem>>, vector<128x128xf32>
    %cst_38 = arith.constant dense<0.000000e+00> : vector<128x128xf32>
    %95 = tpu.matmul %93, %94, %cst_38 {dimension_numbers = #tpu.dot_dimension_numbers<[1], [0], [0], [1], [0, 0, 1, 1], [], []>} : vector<128x128xf32>, vector<128x128xf32>, vector<128x128xf32> -> vector<128x128xf32>
    %c0_39 = arith.constant 0 : index
    %c0_40 = arith.constant 0 : index
    %96 = vector.load %arg8[%c0_39, %c0_40] : memref<128x256xf32, #tpu.memory_space<vmem>>, vector<128x256xf32>
    %cst_41 = arith.constant dense<0.000000e+00> : vector<16x256xf32>
    %97 = tpu.matmul %1, %96, %cst_41 {dimension_numbers = #tpu.dot_dimension_numbers<[1], [0], [0], [1], [0, 0, 1, 1], [], []>} : vector<16x128xf32>, vector<128x256xf32>, vector<16x256xf32> -> vector<16x256xf32>
    %98 = vector.extract_strided_slice %97 {offsets = [0, 0], sizes = [16, 128], strides = [1, 1]} : vector<16x256xf32> to vector<16x128xf32>
    %99 = vector.extract_strided_slice %97 {offsets = [0, 128], sizes = [16, 128], strides = [1, 1]} : vector<16x256xf32> to vector<16x128xf32>
    %100 = vector.extract_strided_slice %95 {offsets = [0, 0], sizes = [64, 128], strides = [1, 1]} : vector<128x128xf32> to vector<64x128xf32>
    %101 = vector.extract_strided_slice %98 {offsets = [0, 0], sizes = [8, 128], strides = [1, 1]} : vector<16x128xf32> to vector<8x128xf32>
    %102 = vector.extract_strided_slice %99 {offsets = [0, 0], sizes = [8, 128], strides = [1, 1]} : vector<16x128xf32> to vector<8x128xf32>
    %cst_42 = arith.constant dense<0.000000e+00> : vector<8x64xf32>
    %103 = tpu.matmul %101, %100, %cst_42 {dimension_numbers = #tpu.dot_dimension_numbers<[1], [1], [0], [0], [0, 0, 1, 0], [], []>} : vector<8x128xf32>, vector<64x128xf32>, vector<8x64xf32> -> vector<8x64xf32>
    %cst_43 = arith.constant dense<0xFF800000> : vector<8xf32>
    %104 = vector.multi_reduction <maximumf>, %103, %cst_43 [1] : vector<8x64xf32> to vector<8xf32>
    %105 = vector.shape_cast %104 : vector<8xf32> to vector<8x1xf32>
    %106 = vector.broadcast %105 : vector<8x1xf32> to vector<8x64xf32>
    %107 = arith.subf %103, %106 : vector<8x64xf32>
    %108 = math.exp %107 : vector<8x64xf32>
    %cst_44 = arith.constant dense<0.000000e+00> : vector<8xf32>
    %109 = vector.multi_reduction <add>, %108, %cst_44 [1] : vector<8x64xf32> to vector<8xf32>
    %110 = vector.shape_cast %109 : vector<8xf32> to vector<8x1xf32>
    %111 = tpu.reciprocal %110 : vector<8x1xf32> -> vector<8x1xf32>
    %112 = vector.broadcast %111 : vector<8x1xf32> to vector<8x64xf32>
    %113 = arith.mulf %108, %112 : vector<8x64xf32>
    %cst_45 = arith.constant dense<0.000000e+00> : vector<64x128xf32>
    %114 = tpu.matmul %113, %102, %cst_45 {dimension_numbers = #tpu.dot_dimension_numbers<[0], [0], [1], [1], [0, 1, 1, 1], [], []>} : vector<8x64xf32>, vector<8x128xf32>, vector<64x128xf32> -> vector<64x128xf32>
    %c0_46 = arith.constant 0 : index
    %c0_47 = arith.constant 0 : index
    %115 = vector.load %arg16[%c0_46, %c0_47] : memref<128x128xf32, #tpu.memory_space<vmem>>, vector<64x128xf32>
    tpu.vector_store %arg16[%c0_46, %c0_47], %114 {strides = array<i32>} : memref<128x128xf32, #tpu.memory_space<vmem>>, vector<64x128xf32>,
    %116 = vector.extract_strided_slice %95 {offsets = [64, 0], sizes = [64, 128], strides = [1, 1]} : vector<128x128xf32> to vector<64x128xf32>
    %117 = vector.extract_strided_slice %98 {offsets = [8, 0], sizes = [8, 128], strides = [1, 1]} : vector<16x128xf32> to vector<8x128xf32>
    %118 = vector.extract_strided_slice %99 {offsets = [8, 0], sizes = [8, 128], strides = [1, 1]} : vector<16x128xf32> to vector<8x128xf32>
    %cst_48 = arith.constant dense<0.000000e+00> : vector<8x64xf32>
    %119 = tpu.matmul %117, %116, %cst_48 {dimension_numbers = #tpu.dot_dimension_numbers<[1], [1], [0], [0], [0, 0, 1, 0], [], []>} : vector<8x128xf32>, vector<64x128xf32>, vector<8x64xf32> -> vector<8x64xf32>
    %cst_49 = arith.constant dense<0xFF800000> : vector<8xf32>
    %120 = vector.multi_reduction <maximumf>, %119, %cst_49 [1] : vector<8x64xf32> to vector<8xf32>
    %121 = vector.shape_cast %120 : vector<8xf32> to vector<8x1xf32>
    %122 = vector.broadcast %121 : vector<8x1xf32> to vector<8x64xf32>
    %123 = arith.subf %119, %122 : vector<8x64xf32>
    %124 = math.exp %123 : vector<8x64xf32>
    %cst_50 = arith.constant dense<0.000000e+00> : vector<8xf32>
    %125 = vector.multi_reduction <add>, %124, %cst_50 [1] : vector<8x64xf32> to vector<8xf32>
    %126 = vector.shape_cast %125 : vector<8xf32> to vector<8x1xf32>
    %127 = tpu.reciprocal %126 : vector<8x1xf32> -> vector<8x1xf32>
    %128 = vector.broadcast %127 : vector<8x1xf32> to vector<8x64xf32>
    %129 = arith.mulf %124, %128 : vector<8x64xf32>
    %cst_51 = arith.constant dense<0.000000e+00> : vector<64x128xf32>
    %130 = tpu.matmul %129, %118, %cst_51 {dimension_numbers = #tpu.dot_dimension_numbers<[0], [0], [1], [1], [0, 1, 1, 1], [], []>} : vector<8x64xf32>, vector<8x128xf32>, vector<64x128xf32> -> vector<64x128xf32>
    %c64_52 = arith.constant 64 : index
    %c0_53 = arith.constant 0 : index
    %131 = vector.load %arg16[%c64_52, %c0_53] : memref<128x128xf32, #tpu.memory_space<vmem>>, vector<64x128xf32>
    tpu.vector_store %arg16[%c64_52, %c0_53], %130 {strides = array<i32>} : memref<128x128xf32, #tpu.memory_space<vmem>>, vector<64x128xf32>,
    %c0_54 = arith.constant 0 : index
    %c0_55 = arith.constant 0 : index
    %132 = vector.load %arg16[%c0_54, %c0_55] : memref<128x128xf32, #tpu.memory_space<vmem>>, vector<128x128xf32>
    %133 = arith.addf %132, %69 : vector<128x128xf32>
    %c0_56 = arith.constant 0 : index
    %c0_57 = arith.constant 0 : index
    %134 = vector.load %arg9[%c0_56, %c0_57] : memref<1x128xf32, #tpu.memory_space<vmem>>, vector<1x128xf32>
    %c0_58 = arith.constant 0 : index
    %c0_59 = arith.constant 0 : index
    %135 = vector.load %arg10[%c0_58, %c0_59] : memref<1x128xf32, #tpu.memory_space<vmem>>, vector<1x128xf32>
    %cst_60 = arith.constant dense<0.000000e+00> : vector<128xf32>
    %136 = vector.multi_reduction <add>, %133, %cst_60 [1] : vector<128x128xf32> to vector<128xf32>
    %137 = vector.shape_cast %136 : vector<128xf32> to vector<128x1xf32>
    %cst_61 = arith.constant 3.125000e-02 : f32
    %138 = vector.broadcast %cst_61 : f32 to vector<128x1xf32>
    %139 = arith.mulf %137, %138 : vector<128x1xf32>
    %140 = vector.broadcast %139 : vector<128x1xf32> to vector<128x128xf32>
    %141 = arith.subf %133, %140 : vector<128x128xf32>
    %142 = vector.broadcast %6 : vector<1x128xf32> to vector<128x128xf32>
    %143 = arith.mulf %141, %142 : vector<128x128xf32>
    %144 = arith.mulf %143, %143 : vector<128x128xf32>
    %cst_62 = arith.constant dense<0.000000e+00> : vector<128xf32>
    %145 = vector.multi_reduction <add>, %144, %cst_62 [1] : vector<128x128xf32> to vector<128xf32>
    %146 = vector.shape_cast %145 : vector<128xf32> to vector<128x1xf32>
    %cst_63 = arith.constant 3.125000e-02 : f32
    %147 = vector.broadcast %cst_63 : f32 to vector<128x1xf32>
    %148 = arith.mulf %146, %147 : vector<128x1xf32>
    %cst_64 = arith.constant 9.99999974E-6 : f32
    %149 = vector.broadcast %cst_64 : f32 to vector<128x1xf32>
    %150 = arith.addf %148, %149 : vector<128x1xf32>
    %151 = math.rsqrt %150 : vector<128x1xf32>
    %152 = vector.broadcast %151 : vector<128x1xf32> to vector<128x128xf32>
    %153 = arith.mulf %143, %152 : vector<128x128xf32>
    %154 = vector.broadcast %134 : vector<1x128xf32> to vector<128x128xf32>
    %155 = arith.mulf %153, %154 : vector<128x128xf32>
    %156 = vector.broadcast %135 : vector<1x128xf32> to vector<128x128xf32>
    %157 = arith.addf %155, %156 : vector<128x128xf32>
    %c0_65 = arith.constant 0 : index
    %c0_66 = arith.constant 0 : index
    %158 = vector.load %arg11[%c0_65, %c0_66] : memref<128x128xf32, #tpu.memory_space<vmem>>, vector<128x128xf32>
    %cst_67 = arith.constant dense<0.000000e+00> : vector<128x128xf32>
    %159 = tpu.matmul %157, %158, %cst_67 {dimension_numbers = #tpu.dot_dimension_numbers<[1], [0], [0], [1], [0, 0, 1, 1], [], []>} : vector<128x128xf32>, vector<128x128xf32>, vector<128x128xf32> -> vector<128x128xf32>
    %c0_68 = arith.constant 0 : index
    %c0_69 = arith.constant 0 : index
    %160 = vector.load %arg12[%c0_68, %c0_69] : memref<1x128xf32, #tpu.memory_space<vmem>>, vector<1x128xf32>
    %161 = vector.broadcast %160 : vector<1x128xf32> to vector<128x128xf32>
    %162 = arith.addf %159, %161 : vector<128x128xf32>
    %cst_70 = arith.constant 5.000000e-01 : f32
    %163 = vector.broadcast %cst_70 : f32 to vector<128x128xf32>
    %164 = arith.mulf %163, %162 : vector<128x128xf32>
    %cst_71 = arith.constant 0.707106769 : f32
    %165 = vector.broadcast %cst_71 : f32 to vector<128x128xf32>
    %166 = arith.mulf %162, %165 : vector<128x128xf32>
    %167 = math.erf %166 : vector<128x128xf32>
    %cst_72 = arith.constant 1.000000e+00 : f32
    %168 = vector.broadcast %cst_72 : f32 to vector<128x128xf32>
    %169 = arith.addf %168, %167 : vector<128x128xf32>
    %170 = arith.mulf %164, %169 : vector<128x128xf32>
    %c0_73 = arith.constant 0 : index
    %c0_74 = arith.constant 0 : index
    %171 = vector.load %arg13[%c0_73, %c0_74] : memref<128x128xf32, #tpu.memory_space<vmem>>, vector<128x128xf32>
    %cst_75 = arith.constant dense<0.000000e+00> : vector<128x128xf32>
    %172 = tpu.matmul %170, %171, %cst_75 {dimension_numbers = #tpu.dot_dimension_numbers<[1], [0], [0], [1], [0, 0, 1, 1], [], []>} : vector<128x128xf32>, vector<128x128xf32>, vector<128x128xf32> -> vector<128x128xf32>
    %c0_76 = arith.constant 0 : index
    %c0_77 = arith.constant 0 : index
    %173 = vector.load %arg14[%c0_76, %c0_77] : memref<1x128xf32, #tpu.memory_space<vmem>>, vector<1x128xf32>
    %174 = vector.broadcast %173 : vector<1x128xf32> to vector<128x128xf32>
    %175 = arith.addf %172, %174 : vector<128x128xf32>
    %cst_78 = arith.constant 5.000000e-01 : f32
    %176 = vector.broadcast %cst_78 : f32 to vector<128x128xf32>
    %177 = arith.mulf %176, %175 : vector<128x128xf32>
    %cst_79 = arith.constant 0.707106769 : f32
    %178 = vector.broadcast %cst_79 : f32 to vector<128x128xf32>
    %179 = arith.mulf %175, %178 : vector<128x128xf32>
    %180 = math.erf %179 : vector<128x128xf32>
    %cst_80 = arith.constant 1.000000e+00 : f32
    %181 = vector.broadcast %cst_80 : f32 to vector<128x128xf32>
    %182 = arith.addf %181, %180 : vector<128x128xf32>
    %183 = arith.mulf %177, %182 : vector<128x128xf32>
    %184 = arith.addf %183, %133 : vector<128x128xf32>
    %c0_81 = arith.constant 0 : index
    %c0_82 = arith.constant 0 : index
    %185 = vector.load %arg15[%c0_81, %c0_82] : memref<128x128xf32, #tpu.memory_space<vmem>>, vector<128x128xf32>
    tpu.vector_store %arg15[%c0_81, %c0_82], %184 {strides = array<i32>} : memref<128x128xf32, #tpu.memory_space<vmem>>, vector<128x128xf32>,
    return
  }
}

</mosaic_0001>

<bundles_post_ra>
// kernel: tpu_custom_call.1
= control target key start
LH: loop header
LB: loop body
LE: loop exit
PB: predicated region body
PF: predicated region fallthrough
CT: control target
= control target key end

     0   :  { %s5835_s0 = inlined_call_operand.hbm [shape: f32[128,128], index: 0, kind: input, shape index: {}, may-alias: {0,15}]   ;;  %s5836_s1 = inlined_call_operand.vmem [shape: f32[16,128], index: 1, kind: input, shape index: {}]   ;;  %s5837_s2 = inlined_call_operand.vmem [shape: f32[1,128], index: 2, kind: input, shape index: {}]   ;;  %s5838_s3 = inlined_call_operand.vmem [shape: f32[1,128], index: 3, kind: input, shape index: {}]   ;;  %s5839_s4 = inlined_call_operand.hbm [shape: f32[128,384], index: 4, kind: input, shape index: {}]   ;;  %s5840_s5 = inlined_call_operand.vmem [shape: f32[1,128], index: 5, kind: input, shape index: {}]   ;;  %s5841_s6 = inlined_call_operand.vmem [shape: f32[1,128], index: 6, kind: input, shape index: {}]   ;;  %s5842_s7 = inlined_call_operand.hbm [shape: f32[128,128], index: 7, kind: input, shape index: {}]   ;;  %s5843_s8 = inlined_call_operand.vmem [shape: f32[128,256], index: 8, kind: input, shape index: {}]   ;;  %s5844_s9 = inlined_call_operand.vmem [shape: f32[1,128], index: 9, kind: input, shape index: {}]   ;;  %s5845_s10 = inlined_call_operand.vmem [shape: f32[1,128], index: 10, kind: input, shape index: {}]   ;;  %s5846_s11 = inlined_call_operand.hbm [shape: f32[128,128], index: 11, kind: input, shape index: {}]   ;;  %s5847_s12 = inlined_call_operand.vmem [shape: f32[1,128], index: 12, kind: input, shape index: {}]   ;;  %s5848_s13 = inlined_call_operand.hbm [shape: f32[128,128], index: 13, kind: input, shape index: {}]   ;;  %s5849_s14 = inlined_call_operand.vmem [shape: f32[1,128], index: 14, kind: input, shape index: {}]   ;;  %s5850_s15 = inlined_call_operand.hbm [shape: f32[128,128], index: 15, kind: output, shape index: {}, may-alias: {0,15}]  }
   0x1   :  { %5852 = sst [smem:[#allocation17_spill]] %s5850_s15 }
   0x2   :  { %20 = vsyncpa [#allocation4], 0 }
   0x3   :  { %21 = vsyncpa [#allocation7], 0 }
   0x4   :  { %22 = vsyncpa [#allocation10], 0 }
   0x5   :  { %23 = vsyncpa [#allocation5], 0  ;;  %s4669_s18 = smov [#allocation6]   ;;  %s4529_s22 = scalar_lea.hbm %s5839_s4, 6144 }
   0x6   :  { %s47_s19 = sshll.u32 %s4669_s18, 4  ;;  %p4530_p0 = scmp.ne.s32.totalorder %s5839_s4, %s4529_s22  ;;  %s48_s19 = int_to_ptr.vmem [resolvable:$true] %s47_s19 }
   0x7   :  { %p4533_p1 = scmp.lt.u32.totalorder %s4529_s22, %s5839_s4 }
   0x9   :  { %p4535_p2 = pnand %p4533_p1, %p4530_p0 }
   0xb   :  { %4538 = shalt.err (!%p4535_p2)
}
   0xc   :  { %s4539_s27 = scalar_lea.vmem %s48_s19, 6144  ;;  %p4544_p4 = scmp.lt.s32.totalorder %s48_s19, %s48_s19 }
   0xd   :  { %p4540_p3 = scmp.ne.s32.totalorder %s48_s19, %s4539_s27  ;;  %p4545_p5 = scmp.lt.s32.totalorder %s4539_s27, %s4539_s27 }
   0xf   :  { %p4546_p6 = por %p4545_p5, %p4544_p4 }
  0x11   :  { %p4547_p7 = pnand %p4546_p6, %p4540_p3 }
  0x13   :  { %4550 = shalt.err (!%p4547_p7)
}
  0x14   :  { %s4670_s28 = smov 384   ;;  %s4671_s29 = smov 24  }
  0x15   :  { %53 = dma.hbm_to_vmem [thread:$0]  %s5839_s4, 6144, %s48_s19, [#allocation7], %s4670_s28, %s4670_s28, %s4671_s29  }
  0x16   :  { %s4672_s17 = smov [#allocation9]   ;;  %s4673_s20 = smov [#allocation3]  }
  0x17   :  { %s81_s18 = sshll.u32 %s4672_s17, 4  ;;  %s29_s21 = sshll.u32 %s4673_s20, 4  ;;  %s82_s18 = int_to_ptr.vmem [resolvable:$true] %s81_s18  ;;  %s30_s21 = int_to_ptr.vmem [resolvable:$true] %s29_s21 }
  0x18   :  { %s4551_s24 = scalar_lea.hbm %s5846_s11, 2048 }
  0x19   :  { %p4552_p8 = scmp.ne.s32.totalorder %s5846_s11, %s4551_s24  ;;  %p4555_p9 = scmp.lt.u32.totalorder %s4551_s24, %s5846_s11 }
  0x1b   :  { %p4557_p10 = pnand %p4555_p9, %p4552_p8 }
  0x1d   :  { %4560 = shalt.err (!%p4557_p10)
}
  0x1e   :  { %s4561_s4 = scalar_lea.vmem %s82_s18, 2048  ;;  %p4566_p12 = scmp.lt.s32.totalorder %s82_s18, %s82_s18 }
  0x1f   :  { %p4562_p11 = scmp.ne.s32.totalorder %s82_s18, %s4561_s4  ;;  %p4567_p13 = scmp.lt.s32.totalorder %s4561_s4, %s4561_s4 }
  0x21   :  { %p4568_p0 = por %p4567_p13, %p4566_p12 }
  0x23   :  { %p4569_p1 = pnand %p4568_p0, %p4562_p11 }
  0x25   :  { %4572 = shalt.err (!%p4569_p1)
}
  0x26   :  { %s4674_s19 = smov 128   ;;  %s4675_s28 = smov 8  }
  0x27   :  { %87 = dma.hbm_to_vmem [thread:$0]  %s5846_s11, 2048, %s82_s18, [#allocation10], %s4674_s19, %s4674_s19, %s4675_s28  }
  0x28   :  { %s4573_s17 = scalar_lea.hbm %s5835_s0, 2048 }
  0x29   :  { %p4574_p2 = scmp.ne.s32.totalorder %s5835_s0, %s4573_s17  ;;  %p4577_p3 = scmp.lt.u32.totalorder %s4573_s17, %s5835_s0 }
  0x2b   :  { %p4579_p4 = pnand %p4577_p3, %p4574_p2 }
  0x2d   :  { %4582 = shalt.err (!%p4579_p4)
}
  0x2e   :  { %s4583_s25 = scalar_lea.vmem %s30_s21, 2048  ;;  %p4588_p6 = scmp.lt.s32.totalorder %s30_s21, %s30_s21 }
  0x2f   :  { %p4584_p5 = scmp.ne.s32.totalorder %s30_s21, %s4583_s25  ;;  %p4589_p7 = scmp.lt.s32.totalorder %s4583_s25, %s4583_s25 }
  0x31   :  { %p4590_p8 = por %p4589_p7, %p4588_p6 }
  0x33   :  { %p4591_p9 = pnand %p4590_p8, %p4584_p5 }
  0x35   :  { %4594 = shalt.err (!%p4591_p9)
}
  0x36   :  { %35 = dma.hbm_to_vmem [thread:$0]  %s5835_s0, 2048, %s30_s21, [#allocation4], %s4674_s19, %s4674_s19, %s4675_s28  }
  0x37   :  { %s4676_s26 = smov [#allocation8]   ;;  %s4677_s4 = smov [#allocation11]  }
  0x38   :  { %s63_s27 = sshll.u32 %s4676_s26, 4  ;;  %s95_s29 = sshll.u32 %s4677_s4, 4  ;;  %s64_s27 = int_to_ptr.vmem [resolvable:$true] %s63_s27  ;;  %s96_s29 = int_to_ptr.vmem [resolvable:$true] %s95_s29 }
  0x39   :  { %s4595_s16 = scalar_lea.hbm %s5842_s7, 2048 }
  0x3a   :  { %p4596_p10 = scmp.ne.s32.totalorder %s5842_s7, %s4595_s16  ;;  %p4599_p11 = scmp.lt.u32.totalorder %s4595_s16, %s5842_s7 }
  0x3c   :  { %p4601_p12 = pnand %p4599_p11, %p4596_p10 }
  0x3e   :  { %4604 = shalt.err (!%p4601_p12)
}
  0x3f   :  { %s4605_s0 = scalar_lea.vmem %s64_s27, 2048  ;;  %p4610_p0 = scmp.lt.s32.totalorder %s64_s27, %s64_s27 }
  0x40   :  { %p4606_p13 = scmp.ne.s32.totalorder %s64_s27, %s4605_s0  ;;  %p4611_p1 = scmp.lt.s32.totalorder %s4605_s0, %s4605_s0 }
  0x42   :  { %p4612_p2 = por %p4611_p1, %p4610_p0 }
  0x44   :  { %p4613_p3 = pnand %p4612_p2, %p4606_p13 }
  0x46   :  { %4616 = shalt.err (!%p4613_p3)
}
  0x47   :  { %69 = dma.hbm_to_vmem [thread:$0]  %s5842_s7, 2048, %s64_s27, [#allocation7], %s4674_s19, %s4674_s19, %s4675_s28  }
  0x48   :  { %s4617_s18 = scalar_lea.hbm %s5848_s13, 2048 }
  0x49   :  { %p4618_p4 = scmp.ne.s32.totalorder %s5848_s13, %s4617_s18  ;;  %p4621_p5 = scmp.lt.u32.totalorder %s4617_s18, %s5848_s13 }
  0x4b   :  { %p4623_p6 = pnand %p4621_p5, %p4618_p4 }
  0x4d   :  { %4626 = shalt.err (!%p4623_p6)
}
  0x4e   :  { %s4627_s16 = scalar_lea.vmem %s96_s29, 2048  ;;  %p4632_p8 = scmp.lt.s32.totalorder %s96_s29, %s96_s29 }
  0x4f   :  { %p4628_p7 = scmp.ne.s32.totalorder %s96_s29, %s4627_s16  ;;  %p4633_p9 = scmp.lt.s32.totalorder %s4627_s16, %s4627_s16 }
  0x51   :  { %p4634_p10 = por %p4633_p9, %p4632_p8 }
  0x53   :  { %p4635_p11 = pnand %p4634_p10, %p4628_p7 }
  0x55   :  { %4638 = shalt.err (!%p4635_p11)
}
  0x56   :  { %101 = dma.hbm_to_vmem [thread:$0]  %s5848_s13, 2048, %s96_s29, [#allocation10], %s4674_s19, %s4674_s19, %s4675_s28  }
  0x57   :  { %4661 = dma.done.wait [#allocation4], 2048  }
  0x58   :  { %4662 = vsyncadd [#allocation4], 4294965248 }
  0x59   :  { %4663 = dma.done.wait [#allocation7], 8192  }
  0x5a   :  { %4664 = vsyncadd [#allocation7], 4294959104 }
  0x5b   :  { %4665 = dma.done.wait [#allocation10], 4096  }
  0x5c   :  { %4666 = vsyncadd [#allocation10], 4294963200  ;;  %v4834_v0 = vld [vmem:[#allocation3] sm:$0xff]  ;;  %v4836_v1 = vld [vmem:[#allocation3 + $0x10] sm:$0xff]  ;;  %v4678_v8 = vmov 0.0   ;;  %v137_v33 = vlaneseq  ;;  %vm839_vm1 = vcmask 523264  }
  0x5d   :  { %144 = vadd.xlane.f32.xlu0 %v4834_v0  ;;  %148 = vadd.xlane.f32.xlu1 %v4836_v1  ;;  %v4840_v2 = vld [vmem:[#allocation3 + $0x8] sm:$0xff]  ;;  %v4842_v3 = vld [vmem:[#allocation3 + $0x18] sm:$0xff]  ;;  %v4846_v4 = vld [vmem:[#allocation3 + $0x20] sm:$0xff]  ;;  %vm4680_vm2 = vmmov 0   ;;  %vm2112_vm3 = vcmask 64512  }
  0x5e   :  { %v4848_v5 = vld [vmem:[#allocation3 + $0x28] sm:$0xff]  ;;  %v4852_v6 = vld [vmem:[#allocation3 + $0x30] sm:$0xff]  ;;  %v4854_v7 = vld [vmem:[#allocation3 + $0x38] sm:$0xff]  ;;  %492 = vmatprep.mubr.f32.mxu0 %v4678_v8  ;;  %v138_v34 = vand.u32 127, %v137_v33 }
  0x5f   :  { %v381_v9 = vld [vmem:[#allocation6 + $0x8] sm:$0xff]  ;;  %v384_v10 = vld [vmem:[#allocation6 + $0x20] sm:$0xff]  ;;  %v383_v13 = vld [vmem:[#allocation6 + $0x18] sm:$0xff] }
  0x60   :  { %v380_v11 = vld [vmem:[#allocation6] sm:$0xff]  ;;  %v3988_v12 = vpack.c.bf16 %v384_v10, %v381_v9  ;;  %v387_v14 = vld [vmem:[#allocation6 + $0x38] sm:$0xff]  ;;  %v390_v15 = vld [vmem:[#allocation6 + $0x50] sm:$0xff]  ;;  %vm139_vm0 = vcmp.lt.s32.totalorder %v138_v34, 32 }
  0x61   :  { %146 = vadd.xlane.f32.xlu0 %v4840_v2  ;;  %150 = vadd.xlane.f32.xlu1 %v4842_v3  ;;  %v3990_v16 = vpack.c.bf16 %v383_v13, %v380_v11  ;;  %v3992_v17 = vpack.c.bf16 %v390_v15, %v387_v14  ;;  %v382_v18 = vld [vmem:[#allocation6 + $0x10] sm:$0xff]  ;;  %v385_v19 = vld [vmem:[#allocation6 + $0x28] sm:$0xff]  ;;  %v396_v24 = vld [vmem:[#allocation6 + $0x80] sm:$0xff]  ;;  %v4860_v39 = vsel %vm139_vm0, 1.0, %v4678_v8 }
  0x62   :  { %v386_v20 = vld [vmem:[#allocation6 + $0x30] sm:$0xff]  ;;  %3989 = vmatprep.subr.bf16.mxu0 %v3988_v12  ;;  %v4020_v21 = vpack.c.bf16 %v385_v19, %v382_v18  ;;  %v389_v22 = vld [vmem:[#allocation6 + $0x48] sm:$0xff]  ;;  %v388_v26 = vld [vmem:[#allocation6 + $0x40] sm:$0xff] }
  0x63   :  { %v393_v23 = vld [vmem:[#allocation6 + $0x68] sm:$0xff]  ;;  %3991 = vmatpush1.bf16.msra.mxu0 %v3990_v16  ;;  %v3994_v25 = vpack.c.bf16 %v389_v22, %v386_v20  ;;  %v391_v27 = vld [vmem:[#allocation6 + $0x58] sm:$0xff]  ;;  %v392_v30 = vld [vmem:[#allocation6 + $0x60] sm:$0xff] }
  0x64   :  { %3993 = vmatprep.subr.bf16.mxu0 %v3992_v17  ;;  %4021 = vmatprep.subr.bf16.mxu1 %v4020_v21  ;;  %v3996_v28 = vpack.c.bf16 %v396_v24, %v393_v23  ;;  %v4024_v29 = vpack.c.bf16 %v391_v27, %v388_v26  ;;  %v395_v31 = vld [vmem:[#allocation6 + $0x78] sm:$0xff]  ;;  %v402_v15 = vld [vmem:[#allocation6 + $0xb0] sm:$0xff]  ;;  %v397_v18 = vld [vmem:[#allocation6 + $0x88] sm:$0xff] }
  0x65   :  { %152 = vadd.xlane.f32.xlu0 %v4846_v4  ;;  %154 = vadd.xlane.f32.xlu1 %v4848_v5  ;;  %v3998_v32 = vpack.c.bf16 %v395_v31, %v392_v30  ;;  %v399_v14 = vld [vmem:[#allocation6 + $0x98] sm:$0xff]  ;;  %v394_v16 = vld [vmem:[#allocation6 + $0x70] sm:$0xff]  ;;  %v401_v20 = vld [vmem:[#allocation6 + $0xa8] sm:$0xff] }
  0x66   :  { %4023 = vmatpush3.bf16.msra.mxu1 %v4020_v21  ;;  %v4000_v17 = vpack.c.bf16 %v402_v15, %v399_v14  ;;  %v398_v19 = vld [vmem:[#allocation6 + $0x90] sm:$0xff]  ;;  %v4028_v21 = vpack.c.bf16 %v397_v18, %v394_v16  ;;  %v4913_v23 = vld [vmem:[#allocation3 + $0x48] sm:$0xff]  ;;  %v408_v26 = vld [vmem:[#allocation6 + $0xe0] sm:$0xff] }
  0x67   :  { %4025 = vmatprep.subr.bf16.mxu1 %v4024_v29  ;;  %3995 = vmatpush1.bf16.msra.mxu0 %v3994_v25  ;;  %v4002_v22 = vpack.c.bf16 %v401_v20, %v398_v19  ;;  %v4915_v24 = vld [vmem:[#allocation3 + $0x50] sm:$0xff]  ;;  %v405_v25 = vld [vmem:[#allocation6 + $0xc8] sm:$0xff]  ;;  %v400_v27 = vld [vmem:[#allocation6 + $0xa0] sm:$0xff] }
  0x68   :  { %3997 = vmatprep.subr.bf16.mxu0 %v3996_v28  ;;  %v4004_v28 = vpack.c.bf16 %v408_v26, %v405_v25  ;;  %v404_v30 = vld [vmem:[#allocation6 + $0xc0] sm:$0xff]  ;;  %v407_v31 = vld [vmem:[#allocation6 + $0xd8] sm:$0xff] }
  0x69   :  { %156 = vadd.xlane.f32.xlu0 %v4852_v6  ;;  %158 = vadd.xlane.f32.xlu1 %v4854_v7  ;;  %v4006_v33 = vpack.c.bf16 %v407_v31, %v404_v30  ;;  %v4919_v34 = vld [vmem:[#allocation3 + $0x58] sm:$0xff] }
  0x6a   :  { %4027 = vmatpush3.bf16.msra.mxu1 %v4024_v29  ;;  %v403_v29 = vld [vmem:[#allocation6 + $0xb8] sm:$0xff] }
  0x6b   :  { %3999 = vmatpush1.bf16.msra.mxu0 %v3998_v32  ;;  %4029 = vmatprep.subr.bf16.mxu1 %v4028_v21  ;;  %v4032_v32 = vpack.c.bf16 %v403_v29, %v400_v27  ;;  %v427_v14 = vld [vmem:[#allocation6 + $0x178] sm:$0xff] }
  0x6c   :  { %4001 = vmatprep.subr.bf16.mxu0 %v4000_v17 }
  0x6e   :  { %4031 = vmatpush3.bf16.msra.mxu1 %v4028_v21 }
  0x6f   :  { %4003 = vmatpush1.bf16.msra.mxu0 %v4002_v22  ;;  %4033 = vmatprep.subr.bf16.mxu1 %v4032_v32 }
  0x70   :  { %4005 = vmatprep.subr.bf16.mxu0 %v4004_v28 }
  0x72   :  { %4035 = vmatpush3.bf16.msra.mxu1 %v4032_v32 }
  0x73   :  { %4007 = vmatpush1.bf16.msra.mxu0 %v4006_v33 }
  0xea   :  { %v145_v35 = vpop.xlane.xlu0 %144  ;;  %v149_v36 = vpop.xlane.xlu1 %148 }
  0xeb   :  { %v176_v37 = vmul.f32 0.03125, %v145_v35  ;;  %v178_v38 = vmul.f32 0.03125, %v149_v36  ;;  %v4921_v35 = vld [vmem:[#allocation3 + $0x60] sm:$0xff]  ;;  %v411_v36 = vld [vmem:[#allocation6 + $0xf8] sm:$0xff] }
  0xed   :  { %v192_v40 = vsub.f32 %v4834_v0, %v176_v37  ;;  %v194_v41 = vsub.f32 %v4836_v1, %v178_v38  ;;  %v414_v37 = vld [vmem:[#allocation6 + $0x110] sm:$0xff] }
  0xee   :  { %v147_v42 = vpop.xlane.xlu0 %146  ;;  %v151_v43 = vpop.xlane.xlu1 %150  ;;  %v406_v38 = vld [vmem:[#allocation6 + $0xd0] sm:$0xff] }
  0xef   :  { %v177_v44 = vmul.f32 0.03125, %v147_v42  ;;  %v179_v45 = vmul.f32 0.03125, %v151_v43  ;;  %v4865_v46 = vmul.f32 %v4860_v39, %v192_v40  ;;  %v4868_v47 = vmul.f32 %v4860_v39, %v194_v41  ;;  %v409_v41 = vld [vmem:[#allocation6 + $0xe8] sm:$0xff]  ;;  %v410_v42 = vld [vmem:[#allocation6 + $0xf0] sm:$0xff] }
  0xf0   :  { %v4008_v40 = vpack.c.bf16 %v414_v37, %v411_v36  ;;  %v413_v43 = vld [vmem:[#allocation6 + $0x108] sm:$0xff] }
  0xf1   :  { %v193_v48 = vsub.f32 %v4840_v2, %v177_v44  ;;  %v195_v49 = vsub.f32 %v4842_v3, %v179_v45  ;;  %v224_v50 = vmul.f32 %v4865_v46, %v4865_v46  ;;  %v226_v53 = vmul.f32 %v4868_v47, %v4868_v47 }
  0xf2   :  { %v153_v51 = vpop.xlane.xlu0 %152  ;;  %v155_v52 = vpop.xlane.xlu1 %154  ;;  %v4036_v44 = vpack.c.bf16 %v409_v41, %v406_v38  ;;  %v4010_v45 = vpack.c.bf16 %v413_v43, %v410_v42  ;;  %4009 = vmatprep.subr.bf16.mxu0 %v4008_v40  ;;  %v4937_v43 = vld [vmem:[%s5837_s2] ss:$0 sm:$0xff] }
  0xf3   :  { %v180_v54 = vmul.f32 0.03125, %v153_v51  ;;  %240 = vadd.xlane.f32.xlu0 %v224_v50  ;;  %v181_v55 = vmul.f32 0.03125, %v155_v52  ;;  %v4877_v56 = vmul.f32 %v4860_v39, %v193_v48  ;;  %v4880_v57 = vmul.f32 %v4860_v39, %v195_v49  ;;  %v4925_v48 = vld [vmem:[#allocation3 + $0x68] sm:$0xff]  ;;  %v4927_v49 = vld [vmem:[#allocation3 + $0x70] sm:$0xff]  ;;  %v420_v51 = vld [vmem:[#allocation6 + $0x140] sm:$0xff] }
  0xf4   :  { %4037 = vmatprep.subr.bf16.mxu1 %v4036_v44  ;;  %v417_v50 = vld [vmem:[#allocation6 + $0x128] sm:$0xff]  ;;  %v412_v52 = vld [vmem:[#allocation6 + $0x100] sm:$0xff]  ;;  %4011 = vmatpush1.bf16.msra.mxu0 %v4010_v45 }
  0xf5   :  { %v196_v58 = vsub.f32 %v4846_v4, %v180_v54  ;;  %v197_v59 = vsub.f32 %v4848_v5, %v181_v55  ;;  %v225_v60 = vmul.f32 %v4877_v56, %v4877_v56  ;;  %v227_v63 = vmul.f32 %v4880_v57, %v4880_v57  ;;  %4039 = vmatpush3.bf16.msra.mxu1 %v4036_v44  ;;  %v415_v54 = vld [vmem:[#allocation6 + $0x118] sm:$0xff]  ;;  %v416_v55 = vld [vmem:[#allocation6 + $0x120] sm:$0xff] }
  0xf6   :  { %v157_v61 = vpop.xlane.xlu0 %156  ;;  %v159_v62 = vpop.xlane.xlu1 %158 }
  0xf7   :  { %v182_v0 = vmul.f32 0.03125, %v157_v61  ;;  %244 = vadd.xlane.f32.xlu0 %v226_v53  ;;  %242 = vadd.xlane.f32.xlu1 %v225_v60  ;;  %v183_v1 = vmul.f32 0.03125, %v159_v62  ;;  %v4889_v2 = vmul.f32 %v4860_v39, %v196_v58  ;;  %v4892_v3 = vmul.f32 %v4860_v39, %v197_v59  ;;  %v419_v58 = vld [vmem:[#allocation6 + $0x138] sm:$0xff] }
  0xf8   :  { %v4012_v53 = vpack.c.bf16 %v420_v51, %v417_v50  ;;  %v4040_v59 = vpack.c.bf16 %v415_v54, %v412_v52  ;;  %v4014_v60 = vpack.c.bf16 %v419_v58, %v416_v55  ;;  %v4931_v61 = vld [vmem:[#allocation3 + $0x78] sm:$0xff] }
  0xf9   :  { %v198_v4 = vsub.f32 %v4852_v6, %v182_v0  ;;  %v199_v5 = vsub.f32 %v4854_v7, %v183_v1  ;;  %v228_v9 = vmul.f32 %v4889_v2, %v4889_v2  ;;  %v229_v10 = vmul.f32 %v4892_v3, %v4892_v3  ;;  %v4908_v6 = vld [vmem:[#allocation3 + $0x40] sm:$0xff]  ;;  %v423_v62 = vld [vmem:[#allocation6 + $0x158] sm:$0xff]  ;;  %v418_v0 = vld [vmem:[#allocation6 + $0x130] sm:$0xff] }
  0xfa   :  { %4013 = vmatprep.subr.bf16.mxu0 %v4012_v53  ;;  %4041 = vmatprep.subr.bf16.mxu1 %v4040_v59  ;;  %v4943_v53 = vld [vmem:[%s5838_s3] ss:$0 sm:$0xff] }
  0xfb   :  { %246 = vadd.xlane.f32.xlu1 %v227_v63  ;;  %248 = vadd.xlane.f32.xlu0 %v228_v9  ;;  %v4901_v11 = vmul.f32 %v4860_v39, %v198_v4  ;;  %v4904_v12 = vmul.f32 %v4860_v39, %v199_v5  ;;  %v426_v63 = vld [vmem:[#allocation6 + $0x170] sm:$0xff]  ;;  %v421_v4 = vld [vmem:[#allocation6 + $0x148] sm:$0xff] }
  0xfc   :  { %4015 = vmatpush1.bf16.msra.mxu0 %v4014_v60  ;;  %4043 = vmatpush3.bf16.msra.mxu1 %v4040_v59  ;;  %v4016_v1 = vpack.c.bf16 %v426_v63, %v423_v62  ;;  %v422_v5 = vld [vmem:[#allocation6 + $0x150] sm:$0xff]  ;;  %v425_v9 = vld [vmem:[#allocation6 + $0x168] sm:$0xff] }
  0xfd   :  { %v230_v13 = vmul.f32 %v4901_v11, %v4901_v11  ;;  %v231_v7 = vmul.f32 %v4904_v12, %v4904_v12 }
  0xfe   :  { %4017 = vmatprep.subr.bf16.mxu0 %v4016_v1 }
  0xff   :  { %250 = vadd.xlane.f32.xlu1 %v229_v10  ;;  %252 = vadd.xlane.f32.xlu0 %v230_v13  ;;  %v4044_v10 = vpack.c.bf16 %v421_v4, %v418_v0  ;;  %v4018_v13 = vpack.c.bf16 %v425_v9, %v422_v5 }
 0x101   :  { %4045 = vmatprep.subr.bf16.mxu1 %v4044_v10  ;;  %4019 = vmatpush1.bf16.msra.mxu0 %v4018_v13 }
 0x102   :  { %4047 = vmatpush3.bf16.msra.mxu1 %v4044_v10 }
 0x103   :  { %254 = vadd.xlane.f32.xlu1 %v231_v7  ;;  %160 = vadd.xlane.f32.xlu0 %v4908_v6  ;;  %v424_v7 = vld [vmem:[#allocation6 + $0x160] sm:$0xff] }
 0x104   :  { %v4048_v15 = vpack.c.bf16 %v427_v14, %v424_v7 }
 0x106   :  { %4049 = vmatprep.subr.bf16.mxu1 %v4048_v15 }
 0x107   :  { %162 = vadd.xlane.f32.xlu1 %v4913_v23  ;;  %164 = vadd.xlane.f32.xlu0 %v4915_v24 }
 0x108   :  { %4051 = vmatpush3.bf16.msra.mxu1 %v4048_v15 }
 0x10b   :  { %166 = vadd.xlane.f32.xlu1 %v4919_v34  ;;  %168 = vadd.xlane.f32.xlu0 %v4921_v35 }
 0x10f   :  { %170 = vadd.xlane.f32.xlu1 %v4925_v48  ;;  %172 = vadd.xlane.f32.xlu0 %v4927_v49 }
 0x113   :  { %174 = vadd.xlane.f32.xlu1 %v4931_v61 }
 0x180   :  { %v241_v16 = vpop.xlane.xlu0 %240 }
 0x181   :  { %v272_v17 = vmul.f32 0.03125, %v241_v16 }
 0x183   :  { %v288_v18 = vadd.f32 1e-05, %v272_v17 }
 0x184   :  { %v243_v19 = vpop.xlane.xlu1 %242  ;;  %v245_v20 = vpop.xlane.xlu0 %244 }
 0x185   :  { %4281 = vrsqrt.f32 %v288_v18  ;;  %v273_v21 = vmul.f32 0.03125, %v243_v19  ;;  %v274_v22 = vmul.f32 0.03125, %v245_v20 }
 0x187   :  { %v289_v25 = vadd.f32 1e-05, %v273_v21  ;;  %v290_v26 = vadd.f32 1e-05, %v274_v22 }
 0x188   :  { %v247_v27 = vpop.xlane.xlu1 %246  ;;  %v249_v28 = vpop.xlane.xlu0 %248 }
 0x189   :  { %4283 = vrsqrt.f32 %v289_v25  ;;  %v275_v29 = vmul.f32 0.03125, %v247_v27  ;;  %v276_v30 = vmul.f32 0.03125, %v249_v28 }
 0x18a   :  { %4285 = vrsqrt.f32 %v290_v26 }
 0x18b   :  { %v291_v31 = vadd.f32 1e-05, %v275_v29  ;;  %v292_v32 = vadd.f32 1e-05, %v276_v30 }
 0x18c   :  { %v251_v33 = vpop.xlane.xlu1 %250  ;;  %v253_v36 = vpop.xlane.xlu0 %252 }
 0x18d   :  { %4287 = vrsqrt.f32 %v291_v31  ;;  %v277_v37 = vmul.f32 0.03125, %v251_v33  ;;  %v278_v38 = vmul.f32 0.03125, %v253_v36 }
 0x18e   :  { %4289 = vrsqrt.f32 %v292_v32 }
 0x18f   :  { %v4282_v40 = vpop.eup %4281  ;;  %v293_v41 = vadd.f32 1e-05, %v277_v37  ;;  %v294_v42 = vadd.f32 1e-05, %v278_v38 }
 0x190   :  { %v255_v44 = vpop.xlane.xlu1 %254  ;;  %v161_v45 = vpop.xlane.xlu0 %160  ;;  %v320_v50 = vmul.f32 %v4282_v40, %v4865_v46 }
 0x191   :  { %4291 = vrsqrt.f32 %v293_v41  ;;  %v279_v51 = vmul.f32 0.03125, %v255_v44  ;;  %v184_v52 = vmul.f32 0.03125, %v161_v45 }
 0x192   :  { %4293 = vrsqrt.f32 %v294_v42  ;;  %v342_v54 = vmul.f32 %v4937_v43, %v320_v50 }
 0x193   :  { %v4284_v55 = vpop.eup %4283  ;;  %v295_v58 = vadd.f32 1e-05, %v279_v51  ;;  %v200_v59 = vsub.f32 %v4908_v6, %v184_v52 }
 0x194   :  { %v4286_v60 = vpop.eup %4285  ;;  %v163_v62 = vpop.xlane.xlu1 %162  ;;  %v364_v46 = vadd.f32 %v4943_v53, %v342_v54  ;;  %v321_v0 = vmul.f32 %v4284_v55, %v4877_v56 }
 0x195   :  { %v165_v63 = vpop.xlane.xlu0 %164  ;;  %4295 = vrsqrt.f32 %v295_v58  ;;  %v185_v1 = vmul.f32 0.03125, %v163_v62  ;;  %v4950_v5 = vmul.f32 %v4860_v39, %v200_v59  ;;  %v322_v10 = vmul.f32 %v4286_v60, %v4868_v47 }
 0x196   :  { %v186_v4 = vmul.f32 0.03125, %v165_v63  ;;  %493 = vmatmul.mubr.f32.vlgmr.msra.gmra.mrb[0].mxu0 %v364_v46  ;;  %3618 = vmatprep.mubr.f32.mxu1 %v364_v46  ;;  %v343_v9 = vmul.f32 %v4937_v43, %v321_v0 }
 0x197   :  { %v4288_v6 = vpop.eup %4287  ;;  %v201_v13 = vsub.f32 %v4913_v23, %v185_v1  ;;  %498 = vmatprep.mubr.f32.mxu0 %v4678_v8  ;;  %v232_v56 = vmul.f32 %v4950_v5, %v4950_v5  ;;  %v344_v18 = vmul.f32 %v4937_v43, %v322_v10 }
 0x198   :  { %v202_v7 = vsub.f32 %v4915_v24, %v186_v4  ;;  %v4290_v14 = vpop.eup %4289  ;;  %v167_v15 = vpop.xlane.xlu1 %166  ;;  %v365_v17 = vadd.f32 %v4943_v53, %v343_v9  ;;  %v323_v19 = vmul.f32 %v4288_v6, %v4880_v57 }
 0x199   :  { %v169_v16 = vpop.xlane.xlu0 %168  ;;  %v187_v47 = vmul.f32 0.03125, %v167_v15  ;;  %256 = vadd.xlane.f32.xlu0 %v232_v56  ;;  %v4963_v23 = vmul.f32 %v4860_v39, %v201_v13  ;;  %v366_v21 = vadd.f32 %v4943_v53, %v344_v18  ;;  %v324_v25 = vmul.f32 %v4290_v14, %v4889_v2 }
 0x19a   :  { %v188_v20 = vmul.f32 0.03125, %v169_v16  ;;  %v4966_v24 = vmul.f32 %v4860_v39, %v202_v7  ;;  %499 = vmatmul.mubr.f32.gmra.mrb[2].mxu0 %v365_v17  ;;  %3619 = vmatmul.mubr.f32.vlgmr.msra.gmra.mrb[0].mxu1 %v365_v17  ;;  %v345_v22 = vmul.f32 %v4937_v43, %v323_v19 }
 0x19b   :  { %v4292_v26 = vpop.eup %4291  ;;  %v203_v57 = vsub.f32 %v4919_v34, %v187_v47  ;;  %v233_v28 = vmul.f32 %v4963_v23, %v4963_v23  ;;  %504 = vmatprep.mubr.f32.mxu0 %v4678_v8  ;;  %3621 = vmatprep.mubr.f32.mxu1 %v366_v21  ;;  %v346_v2 = vmul.f32 %v4937_v43, %v324_v25 }
 0x19c   :  { %v204_v27 = vsub.f32 %v4921_v35, %v188_v20  ;;  %v234_v29 = vmul.f32 %v4966_v24, %v4966_v24  ;;  %v4294_v30 = vpop.eup %4293  ;;  %v171_v31 = vpop.xlane.xlu1 %170  ;;  %v367_v33 = vadd.f32 %v4943_v53, %v345_v22  ;;  %v325_v34 = vmul.f32 %v4292_v26, %v4892_v3 }
 0x19d   :  { %v173_v32 = vpop.xlane.xlu0 %172  ;;  %v189_v36 = vmul.f32 0.03125, %v171_v31  ;;  %258 = vadd.xlane.f32.xlu1 %v233_v28  ;;  %v4982_v37 = vmul.f32 %v4860_v39, %v203_v57  ;;  %v368_v40 = vadd.f32 %v4943_v53, %v346_v2  ;;  %v326_v42 = vmul.f32 %v4294_v30, %v4901_v11 }
 0x19e   :  { %v190_v35 = vmul.f32 0.03125, %v173_v32  ;;  %260 = vadd.xlane.f32.xlu0 %v234_v29  ;;  %v4985_v38 = vmul.f32 %v4860_v39, %v204_v27  ;;  %505 = vmatmul.mubr.f32.gmra.mrb[4].mxu0 %v366_v21  ;;  %v347_v41 = vmul.f32 %v4937_v43, %v325_v34 }
 0x19f   :  { %3622 = vmatmul.mubr.f32.gmra.mrb[2].mxu1 %v367_v33  ;;  %v4296_v44 = vpop.eup %4295  ;;  %v205_v3 = vsub.f32 %v4925_v48, %v189_v36  ;;  %v235_v50 = vmul.f32 %v4982_v37, %v4982_v37  ;;  %510 = vmatprep.mubr.f32.mxu0 %v4678_v8  ;;  %v348_v55 = vmul.f32 %v4937_v43, %v326_v42 }
 0x1a0   :  { %v206_v45 = vsub.f32 %v4927_v49, %v190_v35  ;;  %v236_v51 = vmul.f32 %v4985_v38, %v4985_v38  ;;  %3624 = vmatprep.mubr.f32.mxu1 %v368_v40  ;;  %v175_v52 = vpop.xlane.xlu1 %174  ;;  %v369_v54 = vadd.f32 %v4943_v53, %v347_v41  ;;  %v327_v11 = vmul.f32 %v4296_v44, %v4904_v12 }
 0x1a1   :  { %v191_v58 = vmul.f32 0.03125, %v175_v52  ;;  %262 = vadd.xlane.f32.xlu1 %v235_v50  ;;  %v5001_v48 = vmul.f32 %v4860_v39, %v205_v3  ;;  %v370_v59 = vadd.f32 %v4943_v53, %v348_v55 }
 0x1a2   :  { %264 = vadd.xlane.f32.xlu0 %v236_v51  ;;  %v5004_v49 = vmul.f32 %v4860_v39, %v206_v45  ;;  %511 = vmatmul.mubr.f32.gmra.mrb[6].mxu0 %v367_v33  ;;  %v349_v60 = vmul.f32 %v4937_v43, %v327_v11 }
 0x1a3   :  { %3625 = vmatmul.mubr.f32.gmra.mrb[4].mxu1 %v369_v54  ;;  %v207_v62 = vsub.f32 %v4931_v61, %v191_v58  ;;  %v237_v12 = vmul.f32 %v5001_v48, %v5001_v48  ;;  %516 = vmatprep.mubr.f32.mxu0 %v4678_v8 }
 0x1a4   :  { %v238_v63 = vmul.f32 %v5004_v49, %v5004_v49  ;;  %3627 = vmatprep.mubr.f32.mxu1 %v370_v59  ;;  %v371_v46 = vadd.f32 %v4943_v53, %v349_v60 }
 0x1a5   :  { %266 = vadd.xlane.f32.xlu1 %v237_v12  ;;  %v5016_v0 = vmul.f32 %v4860_v39, %v207_v62 }
 0x1a6   :  { %268 = vadd.xlane.f32.xlu0 %v238_v63  ;;  %517 = vmatmul.mubr.f32.gmra.mrb[8].mxu0 %v368_v40 }
 0x1a7   :  { %3628 = vmatmul.mubr.f32.gmra.mrb[6].mxu1 %v371_v46  ;;  %v239_v61 = vmul.f32 %v5016_v0, %v5016_v0  ;;  %522 = vmatprep.mubr.f32.mxu0 %v4678_v8 }
 0x1a9   :  { %270 = vadd.xlane.f32.xlu1 %v239_v61 }
 0x1aa   :  { %523 = vmatmul.mubr.f32.gmra.mrb[10].mxu0 %v369_v54 }
 0x1ab   :  { %528 = vmatprep.mubr.f32.mxu0 %v4678_v8 }
 0x1ae   :  { %529 = vmatmul.mubr.f32.gmra.mrb[12].mxu0 %v370_v59 }
 0x1af   :  { %534 = vmatprep.mubr.f32.mxu0 %v4678_v8 }
 0x1b2   :  { %535 = vmatmul.mubr.f32.gmra.mrb[14].mxu0 %v371_v46 }
 0x1b3   :  { %540 = vmatprep.mubr.f32.mxu0 %v4678_v8 }
 0x226   :  { %v257_v1 = vpop.xlane.xlu0 %256 }
 0x227   :  { %v280_v4 = vmul.f32 0.03125, %v257_v1 }
 0x229   :  { %v296_v9 = vadd.f32 1e-05, %v280_v4 }
 0x22a   :  { %v259_v10 = vpop.xlane.xlu1 %258 }
 0x22b   :  { %v261_v6 = vpop.xlane.xlu0 %260  ;;  %4297 = vrsqrt.f32 %v296_v9  ;;  %v281_v13 = vmul.f32 0.03125, %v259_v10 }
 0x22c   :  { %v282_v7 = vmul.f32 0.03125, %v261_v6 }
 0x22d   :  { %v297_v56 = vadd.f32 1e-05, %v281_v13 }
 0x22e   :  { %v298_v14 = vadd.f32 1e-05, %v282_v7  ;;  %v263_v15 = vpop.xlane.xlu1 %262 }
 0x22f   :  { %v265_v16 = vpop.xlane.xlu0 %264  ;;  %4299 = vrsqrt.f32 %v297_v56  ;;  %v283_v17 = vmul.f32 0.03125, %v263_v15 }
 0x230   :  { %v284_v18 = vmul.f32 0.03125, %v265_v16  ;;  %4301 = vrsqrt.f32 %v298_v14 }
 0x231   :  { %v299_v19 = vadd.f32 1e-05, %v283_v17 }
 0x232   :  { %v300_v47 = vadd.f32 1e-05, %v284_v18  ;;  %v267_v20 = vpop.xlane.xlu1 %266 }
 0x233   :  { %v269_v21 = vpop.xlane.xlu0 %268  ;;  %4303 = vrsqrt.f32 %v299_v19  ;;  %v285_v22 = vmul.f32 0.03125, %v267_v20 }
 0x234   :  { %v286_v25 = vmul.f32 0.03125, %v269_v21  ;;  %4305 = vrsqrt.f32 %v300_v47 }
 0x235   :  { %v4298_v26 = vpop.eup %4297  ;;  %v301_v57 = vadd.f32 1e-05, %v285_v22 }
 0x236   :  { %v302_v27 = vadd.f32 1e-05, %v286_v25  ;;  %v271_v28 = vpop.xlane.xlu1 %270  ;;  %v328_v29 = vmul.f32 %v4298_v26, %v4950_v5 }
 0x237   :  { %4307 = vrsqrt.f32 %v301_v57  ;;  %v287_v30 = vmul.f32 0.03125, %v271_v28 }
 0x238   :  { %4309 = vrsqrt.f32 %v302_v27  ;;  %v350_v31 = vmul.f32 %v4937_v43, %v328_v29 }
 0x239   :  { %v4300_v32 = vpop.eup %4299  ;;  %v303_v33 = vadd.f32 1e-05, %v287_v30 }
 0x23a   :  { %v4302_v2 = vpop.eup %4301  ;;  %v372_v34 = vadd.f32 %v4943_v53, %v350_v31  ;;  %v329_v36 = vmul.f32 %v4300_v32, %v4963_v23 }
 0x23b   :  { %4311 = vrsqrt.f32 %v303_v33  ;;  %v330_v35 = vmul.f32 %v4302_v2, %v4966_v24 }
 0x23c   :  { %541 = vmatmul.mubr.f32.gmra.mrb[16].mxu0 %v372_v34  ;;  %3630 = vmatprep.mubr.f32.mxu1 %v372_v34  ;;  %v351_v40 = vmul.f32 %v4937_v43, %v329_v36 }
 0x23d   :  { %v4304_v5 = vpop.eup %4303  ;;  %546 = vmatprep.mubr.f32.mxu0 %v4678_v8  ;;  %v352_v41 = vmul.f32 %v4937_v43, %v330_v35 }
 0x23e   :  { %v4306_v42 = vpop.eup %4305  ;;  %v373_v44 = vadd.f32 %v4943_v53, %v351_v40  ;;  %v331_v3 = vmul.f32 %v4304_v5, %v4982_v37 }
 0x23f   :  { %v374_v45 = vadd.f32 %v4943_v53, %v352_v41  ;;  %v332_v23 = vmul.f32 %v4306_v42, %v4985_v38 }
 0x240   :  { %547 = vmatmul.mubr.f32.gmra.mrb[18].mxu0 %v373_v44  ;;  %3631 = vmatmul.mubr.f32.gmra.mrb[8].mxu1 %v373_v44  ;;  %v353_v24 = vmul.f32 %v4937_v43, %v331_v3 }
 0x241   :  { %v4308_v50 = vpop.eup %4307  ;;  %3633 = vmatprep.mubr.f32.mxu1 %v374_v45  ;;  %552 = vmatprep.mubr.f32.mxu0 %v4678_v8  ;;  %v354_v51 = vmul.f32 %v4937_v43, %v332_v23 }
 0x242   :  { %v4310_v52 = vpop.eup %4309  ;;  %v375_v54 = vadd.f32 %v4943_v53, %v353_v24  ;;  %v333_v55 = vmul.f32 %v4308_v50, %v5001_v48 }
 0x243   :  { %v376_v37 = vadd.f32 %v4943_v53, %v354_v51  ;;  %v334_v11 = vmul.f32 %v4310_v52, %v5004_v49 }
 0x244   :  { %553 = vmatmul.mubr.f32.gmra.mrb[20].mxu0 %v374_v45  ;;  %3634 = vmatmul.mubr.f32.gmra.mrb[10].mxu1 %v375_v54  ;;  %v355_v38 = vmul.f32 %v4937_v43, %v333_v55 }
 0x245   :  { %v4312_v58 = vpop.eup %4311  ;;  %3636 = vmatprep.mubr.f32.mxu1 %v376_v37  ;;  %558 = vmatprep.mubr.f32.mxu0 %v4678_v8  ;;  %v356_v59 = vmul.f32 %v4937_v43, %v334_v11 }
 0x246   :  { %v377_v60 = vadd.f32 %v4943_v53, %v355_v38  ;;  %v335_v62 = vmul.f32 %v4312_v58, %v5016_v0 }
 0x247   :  { %v378_v48 = vadd.f32 %v4943_v53, %v356_v59 }
 0x248   :  { %559 = vmatmul.mubr.f32.gmra.mrb[22].mxu0 %v375_v54  ;;  %3637 = vmatmul.mubr.f32.gmra.mrb[12].mxu1 %v377_v60  ;;  %v357_v49 = vmul.f32 %v4937_v43, %v335_v62 }
 0x249   :  { %3639 = vmatprep.mubr.f32.mxu1 %v378_v48  ;;  %564 = vmatprep.mubr.f32.mxu0 %v4678_v8 }
 0x24a   :  { %v379_v12 = vadd.f32 %v4943_v53, %v357_v49 }
 0x24c   :  { %565 = vmatmul.mubr.f32.gmra.mrb[24].mxu0 %v376_v37  ;;  %3640 = vmatmul.mubr.f32.gmra.mrb[14].mxu1 %v379_v12 }
 0x24d   :  { %570 = vmatprep.mubr.f32.mxu0 %v4678_v8 }
 0x250   :  { %571 = vmatmul.mubr.f32.gmra.mrb[26].mxu0 %v377_v60 }
 0x251   :  { %576 = vmatprep.mubr.f32.mxu0 %v4678_v8 }
 0x254   :  { %577 = vmatmul.mubr.f32.gmra.mrb[28].mxu0 %v378_v48 }
 0x255   :  { %582 = vmatprep.mubr.f32.mxu0 %v4678_v8 }
 0x258   :  { %583 = vmatmul.mubr.f32.gmra.mrb[30].mxu0 %v379_v12 }
 0x269   :  { %v494_v63 = vpop.f32.mrb[0].mxu0 }
 0x26a   :  { %v496_v46 = vpop.f32.mrb[1].mxu0 }
 0x26b   :  { %3658 = vmatprep.mubr.f32.mxu1 %v496_v46 }
 0x26d   :  { %v500_v43 = vpop.f32.mrb[2].mxu0  ;;  %v3620_v0 = vpop.f32.mrb[0].mxu1 }
 0x26e   :  { %v4052_v61 = vpack.c.bf16 %v500_v43, %v494_v63  ;;  %v502_v1 = vpop.f32.mrb[3].mxu0  ;;  %v655_v4 = vpop.f32.mrb[1].mxu1 }
 0x26f   :  { %v4068_v53 = vpack.c.bf16 %v3620_v0, %v655_v4 }
 0x270   :  { %4053 = vmatprep.subr.bf16.mxu1 %v4052_v61 }
 0x271   :  { %v506_v9 = vpop.f32.mrb[4].mxu0  ;;  %4055 = vmatpush3.bf16.xpose.msra.mxu1 %v4052_v61 }
 0x272   :  { %v3623_v10 = vpop.f32.mrb[2].mxu1  ;;  %v508_v6 = vpop.f32.mrb[5].mxu0 }
 0x273   :  { %v665_v13 = vpop.f32.mrb[3].mxu1 }
 0x274   :  { %v4072_v7 = vpack.c.bf16 %v3623_v10, %v665_v13 }
 0x275   :  { %v512_v56 = vpop.f32.mrb[6].mxu0 }
 0x276   :  { %v3626_v14 = vpop.f32.mrb[4].mxu1  ;;  %v4056_v15 = vpack.c.bf16 %v512_v56, %v506_v9  ;;  %v514_v16 = vpop.f32.mrb[7].mxu0 }
 0x277   :  { %v675_v17 = vpop.f32.mrb[5].mxu1 }
 0x278   :  { %v4076_v18 = vpack.c.bf16 %v3626_v14, %v675_v17  ;;  %4057 = vmatprep.subr.bf16.mxu1 %v4056_v15 }
 0x279   :  { %v518_v19 = vpop.f32.mrb[8].mxu0  ;;  %4059 = vmatpush3.bf16.xpose.msra.mxu1 %v4056_v15 }
 0x27a   :  { %v3629_v47 = vpop.f32.mrb[6].mxu1  ;;  %v520_v20 = vpop.f32.mrb[9].mxu0 }
 0x27b   :  { %v685_v21 = vpop.f32.mrb[7].mxu1 }
 0x27c   :  { %v4080_v22 = vpack.c.bf16 %v3629_v47, %v685_v21 }
 0x27d   :  { %v524_v25 = vpop.f32.mrb[10].mxu0 }
 0x27e   :  { %v4060_v26 = vpack.c.bf16 %v524_v25, %v518_v19  ;;  %v526_v57 = vpop.f32.mrb[11].mxu0 }
 0x280   :  { %4061 = vmatprep.subr.bf16.mxu1 %v4060_v26 }
 0x281   :  { %v530_v27 = vpop.f32.mrb[12].mxu0  ;;  %4063 = vmatpush3.bf16.xpose.msra.mxu1 %v4060_v26 }
 0x282   :  { %v532_v28 = vpop.f32.mrb[13].mxu0 }
 0x285   :  { %v536_v29 = vpop.f32.mrb[14].mxu0 }
 0x286   :  { %v4064_v30 = vpack.c.bf16 %v536_v29, %v530_v27  ;;  %v538_v31 = vpop.f32.mrb[15].mxu0 }
 0x288   :  { %4065 = vmatprep.subr.bf16.mxu1 %v4064_v30 }
 0x289   :  { %4067 = vmatpush3.bf16.xpose.msra.mxu1 %v4064_v30 }
 0x28a   :  { %4069 = vmatprep.subr.bf16.mxu1 %v4068_v53 }
 0x290   :  { %3659 = vmatmul.mubr.f32.vlgmr.msra.gmra.mrb[16].mxu1 %v502_v1 }
 0x291   :  { %3661 = vmatprep.mubr.f32.mxu1 %v508_v6  ;;  %4071 = vmatpush3.bf16.msra.mxu1 %v4068_v53 }
 0x292   :  { %4073 = vmatprep.subr.bf16.mxu1 %v4072_v7 }
 0x294   :  { %3662 = vmatmul.mubr.f32.gmra.mrb[18].mxu1 %v514_v16 }
 0x295   :  { %3664 = vmatprep.mubr.f32.mxu1 %v520_v20  ;;  %4075 = vmatpush3.bf16.msra.mxu1 %v4072_v7 }
 0x296   :  { %4077 = vmatprep.subr.bf16.mxu1 %v4076_v18 }
 0x298   :  { %3665 = vmatmul.mubr.f32.gmra.mrb[20].mxu1 %v526_v57 }
 0x299   :  { %3667 = vmatprep.mubr.f32.mxu1 %v532_v28  ;;  %4079 = vmatpush3.bf16.msra.mxu1 %v4076_v18 }
 0x29a   :  { %4081 = vmatprep.subr.bf16.mxu1 %v4080_v22 }
 0x29c   :  { %3668 = vmatmul.mubr.f32.gmra.mrb[22].mxu1 %v538_v31 }
 0x29d   :  { %4083 = vmatpush3.bf16.msra.mxu1 %v4080_v22 }
 0x30f   :  { %v542_v32 = vpop.f32.mrb[16].mxu0 }
 0x310   :  { %v544_v33 = vpop.f32.mrb[17].mxu0 }
 0x311   :  { %3714 = vmatprep.mubr.f32.mxu0 %v544_v33 }
 0x313   :  { %v548_v2 = vpop.f32.mrb[18].mxu0  ;;  %v3632_v34 = vpop.f32.mrb[8].mxu1 }
 0x314   :  { %v4084_v36 = vpack.c.bf16 %v548_v2, %v542_v32  ;;  %v550_v35 = vpop.f32.mrb[19].mxu0  ;;  %v695_v40 = vpop.f32.mrb[9].mxu1 }
 0x315   :  { %v5055_v5 = vpack.c.bf16 %v3632_v34, %v695_v40 }
 0x316   :  { %4085 = vmatprep.subr.bf16.mxu0 %v4084_v36 }
 0x317   :  { %v554_v41 = vpop.f32.mrb[20].mxu0  ;;  %v3635_v42 = vpop.f32.mrb[10].mxu1  ;;  %4087 = vmatpush3.bf16.xpose.msra.mxu0 %v4084_v36  ;;  %4101 = vmatprep.subr.bf16.mxu1 %v5055_v5 }
 0x318   :  { %v556_v44 = vpop.f32.mrb[21].mxu0  ;;  %v705_v3 = vpop.f32.mrb[11].mxu1 }
 0x319   :  { %v5058_v45 = vpack.c.bf16 %v3635_v42, %v705_v3 }
 0x31b   :  { %v560_v23 = vpop.f32.mrb[22].mxu0  ;;  %v3638_v24 = vpop.f32.mrb[12].mxu1 }
 0x31c   :  { %v4088_v50 = vpack.c.bf16 %v560_v23, %v554_v41  ;;  %v562_v51 = vpop.f32.mrb[23].mxu0  ;;  %v715_v52 = vpop.f32.mrb[13].mxu1 }
 0x31d   :  { %v5060_v54 = vpack.c.bf16 %v3638_v24, %v715_v52 }
 0x31e   :  { %4089 = vmatprep.subr.bf16.mxu0 %v4088_v50 }
 0x31f   :  { %v566_v55 = vpop.f32.mrb[24].mxu0  ;;  %v3641_v37 = vpop.f32.mrb[14].mxu1  ;;  %4091 = vmatpush3.bf16.xpose.msra.mxu0 %v4088_v50 }
 0x320   :  { %v568_v11 = vpop.f32.mrb[25].mxu0  ;;  %v725_v38 = vpop.f32.mrb[15].mxu1 }
 0x321   :  { %v5062_v58 = vpack.c.bf16 %v3641_v37, %v725_v38 }
 0x323   :  { %v572_v59 = vpop.f32.mrb[26].mxu0 }
 0x324   :  { %v4092_v60 = vpack.c.bf16 %v572_v59, %v566_v55  ;;  %v574_v62 = vpop.f32.mrb[27].mxu0 }
 0x326   :  { %4093 = vmatprep.subr.bf16.mxu0 %v4092_v60 }
 0x327   :  { %v578_v48 = vpop.f32.mrb[28].mxu0  ;;  %4095 = vmatpush3.bf16.xpose.msra.mxu0 %v4092_v60 }
 0x328   :  { %v580_v49 = vpop.f32.mrb[29].mxu0 }
 0x32b   :  { %v584_v12 = vpop.f32.mrb[30].mxu0 }
 0x32c   :  { %v4096_v63 = vpack.c.bf16 %v584_v12, %v578_v48  ;;  %v586_v46 = vpop.f32.mrb[31].mxu0 }
 0x32e   :  { %4097 = vmatprep.subr.bf16.mxu0 %v4096_v63 }
 0x32f   :  { %4099 = vmatpush3.bf16.xpose.msra.mxu0 %v4096_v63 }
 0x336   :  { %3715 = vmatmul.mubr.f32.vlgmr.msra.gmra.mrb[32].mxu0 %v550_v35 }
 0x337   :  { %3717 = vmatprep.mubr.f32.mxu0 %v556_v44 }
 0x33a   :  { %3718 = vmatmul.mubr.f32.gmra.mrb[34].mxu0 %v562_v51 }
 0x33b   :  { %3720 = vmatprep.mubr.f32.mxu0 %v568_v11 }
 0x33e   :  { %3721 = vmatmul.mubr.f32.gmra.mrb[36].mxu0 %v574_v62 }
 0x33f   :  { %3723 = vmatprep.mubr.f32.mxu0 %v580_v49 }
 0x342   :  { %3724 = vmatmul.mubr.f32.gmra.mrb[38].mxu0 %v586_v46 }
 0x363   :  { %v3660_v43 = vpop.f32.mrb[16].mxu1 }
 0x364   :  { %v800_v0 = vpop.f32.mrb[17].mxu1  ;;  %v843_v61 = vsel %vm839_vm1, %v3660_v43, -inf }
 0x365   :  { %844 = vmax.xlane.f32.xlu1 %v843_v61  ;;  %v840_v1 = vsel %vm839_vm1, %v800_v0, -inf }
 0x366   :  { %841 = vmax.xlane.f32.xlu0 %v840_v1 }
 0x367   :  { %v3663_v4 = vpop.f32.mrb[18].mxu1 }
 0x368   :  { %v810_v53 = vpop.f32.mrb[19].mxu1  ;;  %v849_v9 = vsel %vm839_vm1, %v3663_v4, -inf }
 0x369   :  { %850 = vmax.xlane.f32.xlu1 %v849_v9  ;;  %v846_v10 = vsel %vm839_vm1, %v810_v53, -inf }
 0x36a   :  { %847 = vmax.xlane.f32.xlu0 %v846_v10 }
 0x36b   :  { %v3666_v6 = vpop.f32.mrb[20].mxu1 }
 0x36c   :  { %v820_v13 = vpop.f32.mrb[21].mxu1  ;;  %v855_v7 = vsel %vm839_vm1, %v3666_v6, -inf }
 0x36d   :  { %856 = vmax.xlane.f32.xlu1 %v855_v7  ;;  %v852_v56 = vsel %vm839_vm1, %v820_v13, -inf }
 0x36e   :  { %853 = vmax.xlane.f32.xlu0 %v852_v56 }
 0x36f   :  { %v3669_v14 = vpop.f32.mrb[22].mxu1 }
 0x370   :  { %v830_v15 = vpop.f32.mrb[23].mxu1  ;;  %v861_v16 = vsel %vm839_vm1, %v3669_v14, -inf }
 0x371   :  { %862 = vmax.xlane.f32.xlu1 %v861_v16  ;;  %v858_v17 = vsel %vm839_vm1, %v830_v15, -inf }
 0x372   :  { %859 = vmax.xlane.f32.xlu0 %v858_v17 }
 0x3f2   :  { %v845_v18 = vpop.xlane.xlu1 %844 }
 0x3f3   :  { %v865_v19 = vsub.f32 %v3660_v43, %v845_v18  ;;  %v842_v47 = vpop.xlane.xlu0 %841 }
 0x3f4   :  { %v864_v20 = vsub.f32 %v800_v0, %v842_v47 }
 0x3f5   :  { %v874_v21 = vmul.f32 1.442695, %v865_v19 }
 0x3f6   :  { %v872_v22 = vmul.f32 1.442695, %v864_v20  ;;  %v851_v25 = vpop.xlane.xlu1 %850 }
 0x3f7   :  { %4313 = vpow2.f32 %v874_v21  ;;  %v867_v26 = vsub.f32 %v3663_v4, %v851_v25  ;;  %v848_v57 = vpop.xlane.xlu0 %847 }
 0x3f8   :  { %4315 = vpow2.f32 %v872_v22  ;;  %v866_v27 = vsub.f32 %v810_v53, %v848_v57 }
 0x3f9   :  { %v878_v28 = vmul.f32 1.442695, %v867_v26 }
 0x3fa   :  { %v876_v29 = vmul.f32 1.442695, %v866_v27  ;;  %v857_v30 = vpop.xlane.xlu1 %856 }
 0x3fb   :  { %4317 = vpow2.f32 %v878_v28  ;;  %v869_v31 = vsub.f32 %v3666_v6, %v857_v30  ;;  %v854_v32 = vpop.xlane.xlu0 %853 }
 0x3fc   :  { %4319 = vpow2.f32 %v876_v29  ;;  %v868_v33 = vsub.f32 %v820_v13, %v854_v32 }
 0x3fd   :  { %v882_v2 = vmul.f32 1.442695, %v869_v31 }
 0x3fe   :  { %v880_v34 = vmul.f32 1.442695, %v868_v33  ;;  %v863_v36 = vpop.xlane.xlu1 %862 }
 0x3ff   :  { %4321 = vpow2.f32 %v882_v2  ;;  %v871_v35 = vsub.f32 %v3669_v14, %v863_v36  ;;  %v860_v40 = vpop.xlane.xlu0 %859 }
 0x400   :  { %4323 = vpow2.f32 %v880_v34  ;;  %v870_v41 = vsub.f32 %v830_v15, %v860_v40 }
 0x401   :  { %v5072_v42 = vpop.eup %4313  ;;  %v886_v44 = vmul.f32 1.442695, %v871_v35 }
 0x402   :  { %v4316_v3 = vpop.eup %4315  ;;  %v884_v23 = vmul.f32 1.442695, %v870_v41  ;;  %v891_v24 = vsel %vm839_vm1, %v5072_v42, 0.0 }
 0x403   :  { %4325 = vpow2.f32 %v886_v44  ;;  %892 = vadd.xlane.f32.xlu1 %v891_v24  ;;  %v888_v50 = vsel %vm839_vm1, %v4316_v3, 0.0 }
 0x404   :  { %4327 = vpow2.f32 %v884_v23  ;;  %889 = vadd.xlane.f32.xlu0 %v888_v50 }
 0x405   :  { %v5077_v51 = vpop.eup %4317 }
 0x406   :  { %v5079_v52 = vpop.eup %4319  ;;  %v897_v55 = vsel %vm839_vm1, %v5077_v51, 0.0 }
 0x407   :  { %898 = vadd.xlane.f32.xlu1 %v897_v55  ;;  %v894_v37 = vsel %vm839_vm1, %v5079_v52, 0.0 }
 0x408   :  { %895 = vadd.xlane.f32.xlu0 %v894_v37 }
 0x409   :  { %v5085_v11 = vpop.eup %4321  ;;  %v5087_v38 = vpop.f32.mrb[32].mxu0 }
 0x40a   :  { %v5089_v59 = vpop.eup %4323  ;;  %v1163_v60 = vpop.f32.mrb[33].mxu0  ;;  %v903_v62 = vsel %vm839_vm1, %v5085_v11, 0.0  ;;  %v1205_v10 = vsel %vm839_vm1, %v5087_v38, -inf }
 0x40b   :  { %904 = vadd.xlane.f32.xlu1 %v903_v62  ;;  %v900_v48 = vsel %vm839_vm1, %v5089_v59, 0.0  ;;  %v1202_v4 = vsel %vm839_vm1, %v1163_v60, -inf }
 0x40c   :  { %901 = vadd.xlane.f32.xlu0 %v900_v48 }
 0x40d   :  { %v5095_v49 = vpop.eup %4325  ;;  %v5097_v12 = vpop.f32.mrb[34].mxu0 }
 0x40e   :  { %v5099_v63 = vpop.eup %4327  ;;  %v1173_v46 = vpop.f32.mrb[35].mxu0  ;;  %v909_v43 = vsel %vm839_vm1, %v5095_v49, 0.0  ;;  %v1211_v13 = vsel %vm839_vm1, %v5097_v12, -inf }
 0x40f   :  { %910 = vadd.xlane.f32.xlu1 %v909_v43  ;;  %v906_v0 = vsel %vm839_vm1, %v5099_v63, 0.0  ;;  %v1208_v6 = vsel %vm839_vm1, %v1173_v46, -inf }
 0x410   :  { %907 = vadd.xlane.f32.xlu0 %v906_v0 }
 0x411   :  { %v5105_v61 = vpop.f32.mrb[36].mxu0 }
 0x412   :  { %v5107_v1 = vpop.f32.mrb[37].mxu0  ;;  %v1217_v56 = vsel %vm839_vm1, %v5105_v61, -inf }
 0x413   :  { %1203 = vmax.xlane.f32.xlu1 %v1202_v4  ;;  %v1214_v7 = vsel %vm839_vm1, %v5107_v1, -inf }
 0x415   :  { %v5110_v53 = vpop.f32.mrb[38].mxu0 }
 0x416   :  { %v5112_v9 = vpop.f32.mrb[39].mxu0  ;;  %v1223_v15 = vsel %vm839_vm1, %v5110_v53, -inf }
 0x417   :  { %1206 = vmax.xlane.f32.xlu1 %v1205_v10  ;;  %v1220_v14 = vsel %vm839_vm1, %v5112_v9, -inf }
 0x41b   :  { %1209 = vmax.xlane.f32.xlu1 %v1208_v6 }
 0x41f   :  { %1212 = vmax.xlane.f32.xlu1 %v1211_v13 }
 0x423   :  { %1215 = vmax.xlane.f32.xlu1 %v1214_v7 }
 0x427   :  { %1218 = vmax.xlane.f32.xlu1 %v1217_v56 }
 0x42b   :  { %1221 = vmax.xlane.f32.xlu1 %v1220_v14 }
 0x42f   :  { %1224 = vmax.xlane.f32.xlu1 %v1223_v15 }
 0x490   :  { %v893_v16 = vpop.xlane.xlu1 %892 }
 0x491   :  { %v890_v17 = vpop.xlane.xlu0 %889 }
 0x492   :  { %4329 = vrcp.f32 %v890_v17 }
 0x493   :  { %4331 = vrcp.f32 %v893_v16 }
 0x494   :  { %v899_v18 = vpop.xlane.xlu1 %898 }
 0x495   :  { %v896_v19 = vpop.xlane.xlu0 %895 }
 0x496   :  { %4333 = vrcp.f32 %v896_v19 }
 0x497   :  { %4335 = vrcp.f32 %v899_v18 }
 0x498   :  { %v905_v47 = vpop.xlane.xlu1 %904 }
 0x499   :  { %v902_v22 = vpop.xlane.xlu0 %901 }
 0x49a   :  { %4337 = vrcp.f32 %v902_v22 }
 0x49b   :  { %4339 = vrcp.f32 %v905_v47 }
 0x49c   :  { %v4330_v20 = vpop.eup %4329  ;;  %v911_v21 = vpop.xlane.xlu1 %910 }
 0x49d   :  { %v920_v25 = vmul.f32 %v4330_v20, %v4316_v3  ;;  %v4332_v26 = vpop.eup %4331  ;;  %v908_v32 = vpop.xlane.xlu0 %907 }
 0x49e   :  { %v921_v28 = vmul.f32 %v4332_v26, %v5072_v42 }
 0x49f   :  { %928 = vxpose.xlu0.b32.start [1/8] (short) (narrow) %v920_v25, 64 }
 0x4a0   :  { %v1204_v57 = vpop.xlane.xlu1 %1203  ;;  %v4334_v29 = vpop.eup %4333 }
 0x4a1   :  { %v1226_v27 = vsub.f32 %v1163_v60, %v1204_v57  ;;  %v922_v2 = vmul.f32 %v4334_v29, %v5079_v52  ;;  %v4336_v34 = vpop.eup %4335 }
 0x4a2   :  { %v923_v41 = vmul.f32 %v4336_v34, %v5077_v51 }
 0x4a3   :  { %v1234_v30 = vmul.f32 1.442695, %v1226_v27  ;;  %929 = vxpose.xlu0.b32.cont [2/8] (short) (narrow) %v921_v28, 64 }
 0x4a4   :  { %v1207_v31 = vpop.xlane.xlu1 %1206  ;;  %v4338_v42 = vpop.eup %4337 }
 0x4a5   :  { %4341 = vpow2.f32 %v1234_v30  ;;  %v1227_v33 = vsub.f32 %v5087_v38, %v1207_v31  ;;  %v924_v24 = vmul.f32 %v4338_v42, %v5089_v59  ;;  %v4340_v50 = vpop.eup %4339 }
 0x4a6   :  { %4343 = vrcp.f32 %v908_v32  ;;  %v925_v60 = vmul.f32 %v4340_v50, %v5085_v11 }
 0x4a7   :  { %v1236_v36 = vmul.f32 1.442695, %v1227_v33  ;;  %930 = vxpose.xlu0.b32.cont [3/8] (short) (narrow) %v922_v2, 64 }
 0x4a8   :  { %v1210_v35 = vpop.xlane.xlu1 %1209 }
 0x4a9   :  { %4345 = vpow2.f32 %v1236_v36  ;;  %v1228_v40 = vsub.f32 %v1173_v46, %v1210_v35 }
 0x4aa   :  { %4347 = vrcp.f32 %v911_v21 }
 0x4ab   :  { %v1238_v44 = vmul.f32 1.442695, %v1228_v40  ;;  %931 = vxpose.xlu0.b32.cont [4/8] (short) (narrow) %v923_v41, 64 }
 0x4ac   :  { %v1213_v3 = vpop.xlane.xlu1 %1212 }
 0x4ad   :  { %4349 = vpow2.f32 %v1238_v44  ;;  %v1229_v23 = vsub.f32 %v5097_v12, %v1213_v3 }
 0x4af   :  { %v5133_v52 = vpop.eup %4341  ;;  %v1240_v55 = vmul.f32 1.442695, %v1229_v23  ;;  %932 = vxpose.xlu0.b32.cont [5/8] (short) (narrow) %v924_v24, 64 }
 0x4b0   :  { %v1216_v37 = vpop.xlane.xlu1 %1215  ;;  %v1250_v38 = vsel %vm839_vm1, %v5133_v52, 0.0  ;;  %v4344_v62 = vpop.eup %4343 }
 0x4b1   :  { %4351 = vpow2.f32 %v1240_v55  ;;  %v1230_v51 = vsub.f32 %v5107_v1, %v1216_v37  ;;  %1251 = vadd.xlane.f32.xlu1 %v1250_v38  ;;  %v926_v0 = vmul.f32 %v4344_v62, %v5099_v63 }
 0x4b3   :  { %v5139_v48 = vpop.eup %4345  ;;  %v1242_v12 = vmul.f32 1.442695, %v1230_v51  ;;  %933 = vxpose.xlu0.b32.cont [6/8] (short) (narrow) %v925_v60, 64 }
 0x4b4   :  { %v1219_v59 = vpop.xlane.xlu1 %1218  ;;  %v1253_v46 = vsel %vm839_vm1, %v5139_v48, 0.0  ;;  %v4348_v4 = vpop.eup %4347 }
 0x4b5   :  { %4353 = vpow2.f32 %v1242_v12  ;;  %v1231_v43 = vsub.f32 %v5105_v61, %v1219_v59  ;;  %1254 = vadd.xlane.f32.xlu1 %v1253_v46  ;;  %v927_v7 = vmul.f32 %v4348_v4, %v5095_v49 }
 0x4b7   :  { %v5145_v1 = vpop.eup %4349  ;;  %v1244_v10 = vmul.f32 1.442695, %v1231_v43  ;;  %934 = vxpose.xlu0.b32.cont [7/8] (short) (narrow) %v926_v0, 64 }
 0x4b8   :  { %v1222_v11 = vpop.xlane.xlu1 %1221  ;;  %v1256_v6 = vsel %vm839_vm1, %v5145_v1, 0.0 }
 0x4b9   :  { %4355 = vpow2.f32 %v1244_v10  ;;  %v1232_v13 = vsub.f32 %v5112_v9, %v1222_v11  ;;  %1257 = vadd.xlane.f32.xlu1 %v1256_v6  ;;  %v4514_v11 = vld [vmem:[#allocation3 + $0x8] sm:$0xff] }
 0x4bb   :  { %v5151_v56 = vpop.eup %4351  ;;  %v1246_v61 = vmul.f32 1.442695, %v1232_v13  ;;  %935 = vxpose.xlu0.b32.end [8/8] (short) (narrow) %v927_v7, 64 }
 0x4bc   :  { %v1225_v63 = vpop.xlane.xlu1 %1224  ;;  %v1259_v14 = vsel %vm839_vm1, %v5151_v56, 0.0 }
 0x4bd   :  { %4357 = vpow2.f32 %v1246_v61  ;;  %v1233_v15 = vsub.f32 %v5110_v53, %v1225_v63  ;;  %1260 = vadd.xlane.f32.xlu1 %v1259_v14  ;;  %v4516_v63 = vld [vmem:[#allocation3 + $0x18] sm:$0xff] }
 0x4bf   :  { %v5156_v16 = vpop.eup %4353  ;;  %v1248_v17 = vmul.f32 1.442695, %v1233_v15 }
 0x4c0   :  { %v1262_v9 = vsel %vm839_vm1, %v5156_v16, 0.0 }
 0x4c1   :  { %4359 = vpow2.f32 %v1248_v17  ;;  %1263 = vadd.xlane.f32.xlu1 %v1262_v9  ;;  %v4517_v17 = vld [vmem:[#allocation3 + $0x20] sm:$0xff] }
 0x4c3   :  { %v5160_v49 = vpop.eup %4355 }
 0x4c4   :  { %v1265_v18 = vsel %vm839_vm1, %v5160_v49, 0.0 }
 0x4c5   :  { %1266 = vadd.xlane.f32.xlu1 %v1265_v18 }
 0x4c7   :  { %v5164_v19 = vpop.eup %4357 }
 0x4c8   :  { %v1268_v53 = vsel %vm839_vm1, %v5164_v19, 0.0 }
 0x4c9   :  { %1269 = vadd.xlane.f32.xlu1 %v1268_v53 }
 0x4cb   :  { %v5168_v47 = vpop.eup %4359 }
 0x4cc   :  { %v1271_v20 = vsel %vm839_vm1, %v5168_v47, 0.0 }
 0x4cd   :  { %1272 = vadd.xlane.f32.xlu1 %v1271_v20 }
 0x51f   :  { %v944_v21 = vpop.trf.xlu0 }
 0x520   :  { %3686 = vmatprep.mubr.msk.f32.mxu1 %vm839_vm1, %v944_v21  ;;  %v4520_v21 = vld [vmem:[#allocation3 + $0x38] sm:$0xff] }
 0x523   :  { %v945_v22 = vpop.trf.xlu0 }
 0x524   :  { %3687 = vmatmul.mubr.msk.f32.vlgmr.msra.gmra.mrb[24].mxu1 %vm839_vm1, %v945_v22 }
 0x525   :  { %4103 = vmatpush3.bf16.msra.mxu1 %v5055_v5 }
 0x526   :  { %4105 = vmatprep.subr.bf16.mxu1 %v5058_v45 }
 0x527   :  { %v946_v25 = vpop.trf.xlu0 }
 0x528   :  { %3689 = vmatprep.mubr.msk.f32.mxu1 %vm839_vm1, %v946_v25  ;;  %v1729_v25 = vld [vmem:[#allocation8] sm:$0xff] }
 0x529   :  { %4107 = vmatpush3.bf16.msra.mxu1 %v5058_v45 }
 0x52a   :  { %4109 = vmatprep.subr.bf16.mxu1 %v5060_v54 }
 0x52b   :  { %v947_v26 = vpop.trf.xlu0 }
 0x52c   :  { %3690 = vmatmul.mubr.msk.f32.gmra.mrb[26].mxu1 %vm839_vm1, %v947_v26  ;;  %v1730_v26 = vld [vmem:[#allocation8 + $0x8] sm:$0xff] }
 0x52d   :  { %4111 = vmatpush3.bf16.msra.mxu1 %v5060_v54 }
 0x52e   :  { %4113 = vmatprep.subr.bf16.mxu1 %v5062_v58 }
 0x52f   :  { %v948_v57 = vpop.trf.xlu0 }
 0x530   :  { %3692 = vmatprep.mubr.msk.f32.mxu1 %vm839_vm1, %v948_v57  ;;  %v1731_v57 = vld [vmem:[#allocation8 + $0x10] sm:$0xff] }
 0x531   :  { %4115 = vmatpush3.bf16.msra.mxu1 %v5062_v58 }
 0x533   :  { %v949_v5 = vpop.trf.xlu0 }
 0x534   :  { %3693 = vmatmul.mubr.msk.f32.gmra.mrb[28].mxu1 %vm839_vm1, %v949_v5  ;;  %v4116_v5 = vpack.c.bf16 %v1730_v26, %v1729_v25 }
 0x536   :  { %4117 = vmatprep.subr.bf16.mxu0 %v4116_v5 }
 0x537   :  { %v950_v27 = vpop.trf.xlu0  ;;  %4119 = vmatpush3.bf16.msra.mxu0 %v4116_v5  ;;  %v1739_v5 = vld [vmem:[#allocation8 + $0x50] sm:$0xff] }
 0x538   :  { %3695 = vmatprep.mubr.msk.f32.mxu1 %vm839_vm1, %v950_v27  ;;  %v1732_v27 = vld [vmem:[#allocation8 + $0x18] sm:$0xff] }
 0x53b   :  { %v951_v45 = vpop.trf.xlu0 }
 0x53c   :  { %3696 = vmatmul.mubr.msk.f32.gmra.mrb[30].mxu1 %vm839_vm1, %v951_v45  ;;  %v4120_v45 = vpack.c.bf16 %v1732_v27, %v1731_v57  ;;  %v1740_v27 = vld [vmem:[#allocation8 + $0x58] sm:$0xff] }
 0x53e   :  { %v1252_v28 = vpop.xlane.xlu1 %1251  ;;  %4121 = vmatprep.subr.bf16.mxu0 %v4120_v45 }
 0x53f   :  { %4361 = vrcp.f32 %v1252_v28  ;;  %4123 = vmatpush3.bf16.msra.mxu0 %v4120_v45 }
 0x542   :  { %v1255_v29 = vpop.xlane.xlu1 %1254 }
 0x543   :  { %4363 = vrcp.f32 %v1255_v29 }
 0x546   :  { %v1258_v54 = vpop.xlane.xlu1 %1257 }
 0x547   :  { %4365 = vrcp.f32 %v1258_v54 }
 0x549   :  { %v4362_v30 = vpop.eup %4361 }
 0x54a   :  { %v1261_v31 = vpop.xlane.xlu1 %1260  ;;  %v1282_v32 = vmul.f32 %v4362_v30, %v5133_v52 }
 0x54b   :  { %4367 = vrcp.f32 %v1261_v31 }
 0x54c   :  { %1290 = vxpose.xlu1.b32.start [1/8] (short) (narrow) %v1282_v32, 64 }
 0x54d   :  { %v4364_v58 = vpop.eup %4363 }
 0x54e   :  { %v1264_v33 = vpop.xlane.xlu1 %1263  ;;  %v1283_v2 = vmul.f32 %v4364_v58, %v5139_v48 }
 0x54f   :  { %4369 = vrcp.f32 %v1264_v33 }
 0x550   :  { %1291 = vxpose.xlu1.b32.cont [2/8] (short) (narrow) %v1283_v2, 64 }
 0x551   :  { %v4366_v34 = vpop.eup %4365 }
 0x552   :  { %v1267_v36 = vpop.xlane.xlu1 %1266  ;;  %v1284_v35 = vmul.f32 %v4366_v34, %v5145_v1  ;;  %v4513_v1 = vld [vmem:[#allocation3] sm:$0xff] }
 0x553   :  { %4371 = vrcp.f32 %v1267_v36 }
 0x554   :  { %1292 = vxpose.xlu1.b32.cont [3/8] (short) (narrow) %v1284_v35, 64 }
 0x555   :  { %v4368_v40 = vpop.eup %4367 }
 0x556   :  { %v1270_v41 = vpop.xlane.xlu1 %1269  ;;  %v1285_v42 = vmul.f32 %v4368_v40, %v5151_v56  ;;  %v4515_v56 = vld [vmem:[#allocation3 + $0x10] sm:$0xff] }
 0x557   :  { %4373 = vrcp.f32 %v1270_v41 }
 0x558   :  { %1293 = vxpose.xlu1.b32.cont [4/8] (short) (narrow) %v1285_v42, 64 }
 0x559   :  { %v4370_v44 = vpop.eup %4369 }
 0x55a   :  { %v1273_v3 = vpop.xlane.xlu1 %1272  ;;  %v1286_v23 = vmul.f32 %v4370_v44, %v5156_v16 }
 0x55b   :  { %4375 = vrcp.f32 %v1273_v3 }
 0x55c   :  { %1294 = vxpose.xlu1.b32.cont [5/8] (short) (narrow) %v1286_v23, 64 }
 0x55d   :  { %v4372_v24 = vpop.eup %4371 }
 0x55e   :  { %v1287_v50 = vmul.f32 %v4372_v24, %v5160_v49  ;;  %v4518_v49 = vld [vmem:[#allocation3 + $0x28] sm:$0xff] }
 0x560   :  { %1295 = vxpose.xlu1.b32.cont [6/8] (short) (narrow) %v1287_v50, 64 }
 0x561   :  { %v4374_v52 = vpop.eup %4373 }
 0x562   :  { %v1288_v55 = vmul.f32 %v4374_v52, %v5164_v19 }
 0x564   :  { %1296 = vxpose.xlu1.b32.cont [7/8] (short) (narrow) %v1288_v55, 64 }
 0x565   :  { %v4376_v37 = vpop.eup %4375 }
 0x566   :  { %v1289_v38 = vmul.f32 %v4376_v37, %v5168_v47  ;;  %v4519_v47 = vld [vmem:[#allocation3 + $0x30] sm:$0xff] }
 0x568   :  { %1297 = vxpose.xlu1.b32.end [8/8] (short) (narrow) %v1289_v38, 64 }
 0x5cc   :  { %v1306_v51 = vpop.trf.xlu1 }
 0x5cd   :  { %3742 = vmatprep.mubr.msk.f32.mxu1 %vm839_vm1, %v1306_v51 }
 0x5d0   :  { %v1307_v60 = vpop.trf.xlu1 }
 0x5d1   :  { %3743 = vmatmul.mubr.msk.f32.vlgmr.msra.gmra.mrb[32].mxu1 %vm839_vm1, %v1307_v60 }
 0x5d4   :  { %v1308_v62 = vpop.trf.xlu1 }
 0x5d5   :  { %3745 = vmatprep.mubr.msk.f32.mxu1 %vm839_vm1, %v1308_v62 }
 0x5d8   :  { %v1309_v48 = vpop.trf.xlu1 }
 0x5d9   :  { %3746 = vmatmul.mubr.msk.f32.gmra.mrb[34].mxu1 %vm839_vm1, %v1309_v48 }
 0x5dc   :  { %v1310_v12 = vpop.trf.xlu1 }
 0x5dd   :  { %3748 = vmatprep.mubr.msk.f32.mxu1 %vm839_vm1, %v1310_v12  ;;  %v1733_v12 = vld [vmem:[#allocation8 + $0x20] sm:$0xff] }
 0x5e0   :  { %v1311_v59 = vpop.trf.xlu1 }
 0x5e1   :  { %3749 = vmatmul.mubr.msk.f32.gmra.mrb[36].mxu1 %vm839_vm1, %v1311_v59  ;;  %v1734_v59 = vld [vmem:[#allocation8 + $0x28] sm:$0xff] }
 0x5e4   :  { %v1312_v46 = vpop.trf.xlu1 }
 0x5e5   :  { %3751 = vmatprep.mubr.msk.f32.mxu1 %vm839_vm1, %v1312_v46 }
 0x5e8   :  { %v1313_v43 = vpop.trf.xlu1 }
 0x5e9   :  { %3752 = vmatmul.mubr.msk.f32.gmra.mrb[38].mxu1 %vm839_vm1, %v1313_v43  ;;  %v4124_v43 = vpack.c.bf16 %v1734_v59, %v1733_v12  ;;  %v1890_v12 = vld [vmem:[%s5843_s8] sm:$0xff]  ;;  %v1892_v59 = vld [vmem:[%s5843_s8 + $0x10] sm:$0xff] }
 0x5ea   :  { %1986 = vmatprep.mubr.f32.mxu1 %v4678_v8 }
 0x5eb   :  { %4125 = vmatprep.subr.bf16.mxu0 %v4124_v43 }
 0x5ec   :  { %4127 = vmatpush3.bf16.msra.mxu0 %v4124_v43 }
 0x5f7   :  { %v3688_v0 = vpop.f32.mrb[24].mxu1 }
 0x5f8   :  { %v1050_v4 = vpop.f32.mrb[25].mxu1  ;;  %v5207_v6 = vadd.f32 %v4514_v11, %v3688_v0 }
 0x5f9   :  { %v5204_v10 = vadd.f32 %v4513_v1, %v1050_v4 }
 0x5fb   :  { %1493 = vadd.xlane.f32.xlu0 %v5204_v10 }
 0x5ff   :  { %1495 = vadd.xlane.f32.xlu0 %v5207_v6  ;;  %v3691_v13 = vpop.f32.mrb[26].mxu1 }
 0x600   :  { %v1060_v7 = vpop.f32.mrb[27].mxu1  ;;  %v5213_v14 = vadd.f32 %v4516_v63, %v3691_v13  ;;  %v1735_v13 = vld [vmem:[#allocation8 + $0x30] sm:$0xff] }
 0x601   :  { %v5210_v61 = vadd.f32 %v4515_v56, %v1060_v7  ;;  %v1736_v7 = vld [vmem:[#allocation8 + $0x38] sm:$0xff] }
 0x603   :  { %1497 = vadd.xlane.f32.xlu0 %v5210_v61 }
 0x607   :  { %1499 = vadd.xlane.f32.xlu0 %v5213_v14  ;;  %v3694_v15 = vpop.f32.mrb[28].mxu1 }
 0x608   :  { %v1070_v16 = vpop.f32.mrb[29].mxu1  ;;  %v5219_v18 = vadd.f32 %v4518_v49, %v3694_v15  ;;  %v4128_v15 = vpack.c.bf16 %v1736_v7, %v1735_v13 }
 0x609   :  { %v5216_v9 = vadd.f32 %v4517_v17, %v1070_v16 }
 0x60a   :  { %4129 = vmatprep.subr.bf16.mxu0 %v4128_v15 }
 0x60b   :  { %1501 = vadd.xlane.f32.xlu0 %v5216_v9  ;;  %4131 = vmatpush3.bf16.msra.mxu0 %v4128_v15  ;;  %v4527_v15 = vld [vmem:[#allocation3 + $0x78] sm:$0xff] }
 0x60f   :  { %1503 = vadd.xlane.f32.xlu0 %v5219_v18  ;;  %v3697_v19 = vpop.f32.mrb[30].mxu1 }
 0x610   :  { %v1080_v53 = vpop.f32.mrb[31].mxu1  ;;  %v5225_v22 = vadd.f32 %v4520_v21, %v3697_v19  ;;  %v1738_v21 = vld [vmem:[#allocation8 + $0x48] sm:$0xff] }
 0x611   :  { %v5222_v20 = vadd.f32 %v4519_v47, %v1080_v53  ;;  %v1737_v47 = vld [vmem:[#allocation8 + $0x40] sm:$0xff] }
 0x612   :  { %v4132_v25 = vpack.c.bf16 %v1738_v21, %v1737_v47  ;;  %v1899_v21 = vld [vmem:[%s5843_s8 + $0x48] sm:$0xff] }
 0x613   :  { %1505 = vadd.xlane.f32.xlu0 %v5222_v20 }
 0x614   :  { %4133 = vmatprep.subr.bf16.mxu0 %v4132_v25 }
 0x615   :  { %4135 = vmatpush3.bf16.msra.mxu0 %v4132_v25  ;;  %v1901_v25 = vld [vmem:[%s5843_s8 + $0x58] sm:$0xff] }
 0x617   :  { %1507 = vadd.xlane.f32.xlu0 %v5225_v22 }
 0x688   :  { %v1494_v28 = vpop.xlane.xlu0 %1493 }
 0x689   :  { %v1525_v29 = vmul.f32 0.03125, %v1494_v28  ;;  %v4136_v28 = vpack.c.bf16 %v1740_v27, %v1739_v5  ;;  %v1898_v5 = vld [vmem:[%s5843_s8 + $0x40] sm:$0xff]  ;;  %v1900_v27 = vld [vmem:[%s5843_s8 + $0x50] sm:$0xff] }
 0x68b   :  { %v1541_v54 = vsub.f32 %v5204_v10, %v1525_v29  ;;  %v4521_v29 = vld [vmem:[#allocation3 + $0x40] sm:$0xff]  ;;  %4137 = vmatprep.subr.bf16.mxu0 %v4136_v28 }
 0x68c   :  { %v1496_v30 = vpop.xlane.xlu0 %1495  ;;  %4139 = vmatpush3.bf16.msra.mxu0 %v4136_v28  ;;  %v1903_v28 = vld [vmem:[%s5843_s8 + $0x68] sm:$0xff] }
 0x68d   :  { %v1526_v31 = vmul.f32 0.03125, %v1496_v30  ;;  %v5230_v32 = vmul.f32 %v4860_v39, %v1541_v54  ;;  %v4522_v30 = vld [vmem:[#allocation3 + $0x58] sm:$0xff] }
 0x68f   :  { %v1542_v58 = vsub.f32 %v5207_v6, %v1526_v31  ;;  %v1573_v33 = vmul.f32 %v5230_v32, %v5230_v32 }
 0x690   :  { %v1498_v2 = vpop.xlane.xlu0 %1497 }
 0x691   :  { %v1527_v34 = vmul.f32 0.03125, %v1498_v2  ;;  %1589 = vadd.xlane.f32.xlu1 %v1573_v33  ;;  %v5236_v36 = vmul.f32 %v4860_v39, %v1542_v58  ;;  %v1741_v33 = vld [vmem:[#allocation8 + $0x60] sm:$0xff]  ;;  %v1742_v2 = vld [vmem:[#allocation8 + $0x68] sm:$0xff] }
 0x693   :  { %v1543_v35 = vsub.f32 %v5210_v61, %v1527_v34  ;;  %v1574_v40 = vmul.f32 %v5236_v36, %v5236_v36  ;;  %v4140_v34 = vpack.c.bf16 %v1742_v2, %v1741_v33  ;;  %v1904_v33 = vld [vmem:[%s5843_s8 + $0x70] sm:$0xff] }
 0x694   :  { %v1500_v41 = vpop.xlane.xlu0 %1499 }
 0x695   :  { %v1528_v42 = vmul.f32 0.03125, %v1500_v41  ;;  %1591 = vadd.xlane.f32.xlu0 %v1574_v40  ;;  %v5242_v44 = vmul.f32 %v4860_v39, %v1543_v35  ;;  %v4523_v35 = vld [vmem:[#allocation3 + $0x48] sm:$0xff]  ;;  %4141 = vmatprep.subr.bf16.mxu0 %v4140_v34  ;;  %v1743_v41 = vld [vmem:[#allocation8 + $0x70] sm:$0xff] }
 0x696   :  { %4143 = vmatpush3.bf16.msra.mxu0 %v4140_v34  ;;  %v1907_v34 = vld [vmem:[%s5843_s8 + $0x88] sm:$0xff] }
 0x697   :  { %v1544_v3 = vsub.f32 %v5213_v14, %v1528_v42  ;;  %v1575_v23 = vmul.f32 %v5242_v44, %v5242_v44  ;;  %v1744_v42 = vld [vmem:[#allocation8 + $0x78] sm:$0xff] }
 0x698   :  { %v1502_v24 = vpop.xlane.xlu0 %1501 }
 0x699   :  { %v1529_v50 = vmul.f32 0.03125, %v1502_v24  ;;  %1593 = vadd.xlane.f32.xlu0 %v1575_v23  ;;  %v5248_v52 = vmul.f32 %v4860_v39, %v1544_v3  ;;  %v4144_v23 = vpack.c.bf16 %v1744_v42, %v1743_v41  ;;  %v4524_v24 = vld [vmem:[#allocation3 + $0x50] sm:$0xff]  ;;  %v1906_v42 = vld [vmem:[%s5843_s8 + $0x80] sm:$0xff] }
 0x69b   :  { %v1545_v55 = vsub.f32 %v5216_v9, %v1529_v50  ;;  %v1576_v37 = vmul.f32 %v5248_v52, %v5248_v52  ;;  %4145 = vmatprep.subr.bf16.mxu0 %v4144_v23 }
 0x69c   :  { %v1504_v38 = vpop.xlane.xlu0 %1503  ;;  %4147 = vmatpush3.bf16.msra.mxu0 %v4144_v23 }
 0x69d   :  { %v1530_v51 = vmul.f32 0.03125, %v1504_v38  ;;  %1595 = vadd.xlane.f32.xlu0 %v1576_v37  ;;  %v5254_v60 = vmul.f32 %v4860_v39, %v1545_v55  ;;  %v4525_v55 = vld [vmem:[#allocation3 + $0x68] sm:$0xff] }
 0x69f   :  { %v1546_v62 = vsub.f32 %v5219_v18, %v1530_v51  ;;  %v1577_v48 = vmul.f32 %v5254_v60, %v5254_v60  ;;  %v1891_v51 = vld [vmem:[%s5843_s8 + $0x8] sm:$0xff] }
 0x6a0   :  { %v1506_v46 = vpop.xlane.xlu0 %1505 }
 0x6a1   :  { %v1531_v0 = vmul.f32 0.03125, %v1506_v46  ;;  %1597 = vadd.xlane.f32.xlu0 %v1577_v48  ;;  %v5260_v4 = vmul.f32 %v4860_v39, %v1546_v62  ;;  %v1893_v62 = vld [vmem:[%s5843_s8 + $0x18] sm:$0xff]  ;;  %v4526_v46 = vld [vmem:[#allocation3 + $0x60] sm:$0xff] }
 0x6a2   :  { %v4148_v48 = vpack.c.bf16 %v1893_v62, %v1891_v51  ;;  %v1910_v51 = vld [vmem:[%s5843_s8 + $0xa0] sm:$0xff]  ;;  %v1912_v62 = vld [vmem:[%s5843_s8 + $0xb0] sm:$0xff] }
 0x6a3   :  { %v1547_v1 = vsub.f32 %v5222_v20, %v1531_v0  ;;  %v1578_v11 = vmul.f32 %v5260_v4, %v5260_v4  ;;  %v4150_v0 = vpack.c.bf16 %v1892_v59, %v1890_v12  ;;  %v1915_v12 = vld [vmem:[%s5843_s8 + $0xc8] sm:$0xff]  ;;  %v1917_v59 = vld [vmem:[%s5843_s8 + $0xd8] sm:$0xff] }
 0x6a4   :  { %v1508_v56 = vpop.xlane.xlu0 %1507  ;;  %v3744_v63 = vpop.f32.mrb[32].mxu1  ;;  %4149 = vmatprep.subr.bf16.mxu1 %v4148_v48  ;;  %v4170_v48 = vpack.c.bf16 %v1912_v62, %v1910_v51 }
 0x6a5   :  { %v1532_v16 = vmul.f32 0.03125, %v1508_v56  ;;  %1599 = vadd.xlane.f32.xlu0 %v1578_v11  ;;  %v5266_v17 = vmul.f32 %v4860_v39, %v1547_v1  ;;  %v1412_v49 = vpop.f32.mrb[33].mxu1  ;;  %v5281_v40 = vadd.f32 %v4523_v35, %v3744_v63  ;;  %4151 = vmatpush1.bf16.msra.mxu1 %v4150_v0  ;;  %v1895_v1 = vld [vmem:[%s5843_s8 + $0x28] sm:$0xff]  ;;  %v1897_v11 = vld [vmem:[%s5843_s8 + $0x38] sm:$0xff]  ;;  %v1894_v56 = vld [vmem:[%s5843_s8 + $0x20] sm:$0xff] }
 0x6a6   :  { %v5276_v54 = vadd.f32 %v4521_v29, %v1412_v49  ;;  %v4152_v7 = vpack.c.bf16 %v1897_v11, %v1895_v1  ;;  %v1896_v63 = vld [vmem:[%s5843_s8 + $0x30] sm:$0xff]  ;;  %v1905_v29 = vld [vmem:[%s5843_s8 + $0x78] sm:$0xff]  ;;  %v1914_v0 = vld [vmem:[%s5843_s8 + $0xc0] sm:$0xff] }
 0x6a7   :  { %v1548_v19 = vsub.f32 %v5225_v22, %v1532_v16  ;;  %v1579_v53 = vmul.f32 %v5266_v17, %v5266_v17  ;;  %v1909_v35 = vld [vmem:[%s5843_s8 + $0x98] sm:$0xff]  ;;  %v1916_v1 = vld [vmem:[%s5843_s8 + $0xd0] sm:$0xff] }
 0x6a8   :  { %4153 = vmatprep.subr.bf16.mxu1 %v4152_v7  ;;  %v4164_v41 = vpack.c.bf16 %v1909_v35, %v1907_v34  ;;  %v4174_v11 = vpack.c.bf16 %v1916_v1, %v1914_v0  ;;  %v1921_v7 = vld [vmem:[%s5843_s8 + $0xf8] sm:$0xff]  ;;  %v5403_v34 = vld [vmem:[%s5840_s5] ss:$0 sm:$0xff] }
 0x6a9   :  { %1601 = vadd.xlane.f32.xlu0 %v1579_v53  ;;  %v5272_v26 = vmul.f32 %v4860_v39, %v1548_v19  ;;  %v4154_v19 = vpack.c.bf16 %v1896_v63, %v1894_v56  ;;  %v4528_v53 = vld [vmem:[#allocation3 + $0x70] sm:$0xff]  ;;  %v1918_v56 = vld [vmem:[%s5843_s8 + $0xe0] sm:$0xff] }
 0x6ab   :  { %v1580_v57 = vmul.f32 %v5272_v26, %v5272_v26  ;;  %4155 = vmatpush1.bf16.msra.mxu1 %v4154_v19  ;;  %v135_v19 = vld [vmem:[%s5836_s1] sm:$0xff] }
 0x6ac   :  { %v3747_v45 = vpop.f32.mrb[34].mxu1 }
 0x6ad   :  { %v5278_v31 = vadd.f32 %v4522_v30, %v3747_v45  ;;  %1603 = vadd.xlane.f32.xlu0 %v1580_v57  ;;  %v1422_v58 = vpop.f32.mrb[35].mxu1  ;;  %v4156_v57 = vpack.c.bf16 %v1901_v25, %v1899_v21  ;;  %v4158_v45 = vpack.c.bf16 %v1900_v27, %v1898_v5  ;;  %v4160_v30 = vpack.c.bf16 %v1905_v29, %v1903_v28 }
 0x6ae   :  { %v5284_v50 = vadd.f32 %v4524_v24, %v1422_v58  ;;  %v1902_v58 = vld [vmem:[%s5843_s8 + $0x60] sm:$0xff]  ;;  %v1911_v24 = vld [vmem:[%s5843_s8 + $0xa8] sm:$0xff] }
 0x6af   :  { %1515 = vadd.xlane.f32.xlu1 %v5278_v31  ;;  %4157 = vmatprep.subr.bf16.mxu1 %v4156_v57  ;;  %v4162_v2 = vpack.c.bf16 %v1904_v33, %v1902_v58 }
 0x6b0   :  { %4159 = vmatpush1.bf16.msra.mxu1 %v4158_v45 }
 0x6b1   :  { %1509 = vadd.xlane.f32.xlu0 %v5276_v54  ;;  %4161 = vmatprep.subr.bf16.mxu1 %v4160_v30 }
 0x6b4   :  { %v3750_v3 = vpop.f32.mrb[36].mxu1  ;;  %4163 = vmatpush1.bf16.msra.mxu1 %v4162_v2 }
 0x6b5   :  { %v5286_v37 = vadd.f32 %v4525_v55, %v3750_v3  ;;  %1511 = vadd.xlane.f32.xlu0 %v5281_v40  ;;  %v1432_v38 = vpop.f32.mrb[37].mxu1  ;;  %v1908_v3 = vld [vmem:[%s5843_s8 + $0x90] sm:$0xff]  ;;  %4165 = vmatprep.subr.bf16.mxu1 %v4164_v41  ;;  %v1913_v55 = vld [vmem:[%s5843_s8 + $0xb8] sm:$0xff] }
 0x6b6   :  { %v5303_v43 = vadd.f32 %v4526_v46, %v1432_v38  ;;  %v4166_v23 = vpack.c.bf16 %v1908_v3, %v1906_v42  ;;  %v4168_v38 = vpack.c.bf16 %v1913_v55, %v1911_v24  ;;  %v4172_v46 = vpack.c.bf16 %v1917_v59, %v1915_v12  ;;  %v5409_v3 = vld [vmem:[%s5841_s6] ss:$0 sm:$0xff] }
 0x6b7   :  { %1519 = vadd.xlane.f32.xlu1 %v5286_v37 }
 0x6b8   :  { %4167 = vmatpush1.bf16.msra.mxu1 %v4166_v23 }
 0x6b9   :  { %1513 = vadd.xlane.f32.xlu0 %v5284_v50  ;;  %4169 = vmatprep.subr.bf16.mxu1 %v4168_v38 }
 0x6bc   :  { %v3753_v13 = vpop.f32.mrb[38].mxu1  ;;  %4171 = vmatpush1.bf16.msra.mxu1 %v4170_v48 }
 0x6bd   :  { %v5317_v16 = vadd.f32 %v4527_v15, %v3753_v13  ;;  %1517 = vadd.xlane.f32.xlu0 %v5303_v43  ;;  %v1442_v49 = vpop.f32.mrb[39].mxu1  ;;  %4173 = vmatprep.subr.bf16.mxu1 %v4172_v46  ;;  %v1919_v13 = vld [vmem:[%s5843_s8 + $0xe8] sm:$0xff]  ;;  %v1920_v15 = vld [vmem:[%s5843_s8 + $0xf0] sm:$0xff] }
 0x6be   :  { %v5320_v47 = vadd.f32 %v4528_v53, %v1442_v49  ;;  %v4176_v63 = vpack.c.bf16 %v1921_v7, %v1919_v13  ;;  %v4178_v49 = vpack.c.bf16 %v1920_v15, %v1918_v56 }
 0x6bf   :  { %1523 = vadd.xlane.f32.xlu1 %v5317_v16 }
 0x6c0   :  { %4175 = vmatpush1.bf16.msra.mxu1 %v4174_v11 }
 0x6c1   :  { %1521 = vadd.xlane.f32.xlu0 %v5320_v47  ;;  %4177 = vmatprep.subr.bf16.mxu1 %v4176_v63 }
 0x6c4   :  { %4179 = vmatpush1.bf16.msra.mxu1 %v4178_v49 }
 0x6c7   :  { %1987 = vmatmul.mubr.f32.vlgmr.msra.gmra.mrb[40].mxu1 %v135_v19 }
 0x6c8   :  { %1992 = vmatprep.mubr.f32.mxu1 %v4678_v8 }
 0x71e   :  { %v1590_v53 = vpop.xlane.xlu1 %1589 }
 0x71f   :  { %v1621_v21 = vmul.f32 0.03125, %v1590_v53 }
 0x721   :  { %v1637_v25 = vadd.f32 1e-05, %v1621_v21 }
 0x722   :  { %v1592_v57 = vpop.xlane.xlu0 %1591 }
 0x723   :  { %4377 = vrsqrt.f32 %v1637_v25  ;;  %v1622_v5 = vmul.f32 0.03125, %v1592_v57 }
 0x725   :  { %v1638_v27 = vadd.f32 1e-05, %v1622_v5 }
 0x726   :  { %v1594_v45 = vpop.xlane.xlu0 %1593 }
 0x727   :  { %4379 = vrsqrt.f32 %v1638_v27  ;;  %v1623_v28 = vmul.f32 0.03125, %v1594_v45 }
 0x729   :  { %v1639_v29 = vadd.f32 1e-05, %v1623_v28 }
 0x72a   :  { %v1596_v30 = vpop.xlane.xlu0 %1595 }
 0x72b   :  { %4381 = vrsqrt.f32 %v1639_v29  ;;  %v1624_v58 = vmul.f32 0.03125, %v1596_v30 }
 0x72d   :  { %v4378_v33 = vpop.eup %4377  ;;  %v1640_v2 = vadd.f32 1e-05, %v1624_v58 }
 0x72e   :  { %v1598_v35 = vpop.xlane.xlu0 %1597  ;;  %v1669_v41 = vmul.f32 %v4378_v33, %v5230_v32 }
 0x72f   :  { %4383 = vrsqrt.f32 %v1640_v2  ;;  %v1625_v42 = vmul.f32 0.03125, %v1598_v35 }
 0x730   :  { %v1691_v23 = vmul.f32 %v5403_v34, %v1669_v41 }
 0x731   :  { %v4380_v24 = vpop.eup %4379  ;;  %v1641_v55 = vadd.f32 1e-05, %v1625_v42 }
 0x732   :  { %v1670_v38 = vmul.f32 %v4380_v24, %v5236_v36  ;;  %v1600_v51 = vpop.xlane.xlu0 %1599  ;;  %v1713_v62 = vadd.f32 %v5409_v3, %v1691_v23 }
 0x733   :  { %4385 = vrsqrt.f32 %v1641_v55  ;;  %v1626_v48 = vmul.f32 0.03125, %v1600_v51 }
 0x734   :  { %3786 = vmatprep.mubr.f32.mxu0 %v1713_v62  ;;  %v1692_v32 = vmul.f32 %v5403_v34, %v1670_v38 }
 0x735   :  { %v4382_v12 = vpop.eup %4381  ;;  %v1642_v59 = vadd.f32 1e-05, %v1626_v48 }
 0x736   :  { %v1602_v46 = vpop.xlane.xlu0 %1601  ;;  %v1714_v0 = vadd.f32 %v5409_v3, %v1692_v32  ;;  %v1671_v1 = vmul.f32 %v4382_v12, %v5242_v44 }
 0x737   :  { %4387 = vrsqrt.f32 %v1642_v59  ;;  %v1627_v11 = vmul.f32 0.03125, %v1602_v46 }
 0x738   :  { %3787 = vmatmul.mubr.f32.vlgmr.msra.gmra.mrb[40].mxu0 %v1714_v0  ;;  %v1693_v36 = vmul.f32 %v5403_v34, %v1671_v1 }
 0x739   :  { %v4384_v13 = vpop.eup %4383  ;;  %v1643_v7 = vadd.f32 1e-05, %v1627_v11 }
 0x73a   :  { %v1604_v56 = vpop.xlane.xlu0 %1603  ;;  %v1715_v63 = vadd.f32 %v5409_v3, %v1693_v36  ;;  %v1672_v15 = vmul.f32 %v4384_v13, %v5248_v52 }
 0x73b   :  { %4389 = vrsqrt.f32 %v1643_v7  ;;  %v1628_v49 = vmul.f32 0.03125, %v1604_v56 }
 0x73c   :  { %3789 = vmatprep.mubr.f32.mxu0 %v1715_v63  ;;  %v1694_v19 = vmul.f32 %v5403_v34, %v1672_v15  ;;  %v1516_v44 = vpop.xlane.xlu1 %1515 }
 0x73d   :  { %v4386_v53 = vpop.eup %4385  ;;  %v1644_v21 = vadd.f32 1e-05, %v1628_v49  ;;  %v1536_v45 = vmul.f32 0.03125, %v1516_v44 }
 0x73e   :  { %v1510_v25 = vpop.xlane.xlu0 %1509  ;;  %v1716_v57 = vadd.f32 %v5409_v3, %v1694_v19  ;;  %v1673_v5 = vmul.f32 %v4386_v53, %v5254_v60 }
 0x73f   :  { %4391 = vrsqrt.f32 %v1644_v21  ;;  %v1533_v27 = vmul.f32 0.03125, %v1510_v25  ;;  %v1552_v60 = vsub.f32 %v5278_v31, %v1536_v45 }
 0x740   :  { %3790 = vmatmul.mubr.f32.gmra.mrb[42].mxu0 %v1716_v57  ;;  %v1695_v28 = vmul.f32 %v5403_v34, %v1673_v5 }
 0x741   :  { %v4388_v52 = vpop.eup %4387  ;;  %v1549_v29 = vsub.f32 %v5276_v54, %v1533_v27  ;;  %v5441_v12 = vmul.f32 %v4860_v39, %v1552_v60 }
 0x742   :  { %v1512_v30 = vpop.xlane.xlu0 %1511  ;;  %v1717_v58 = vadd.f32 %v5409_v3, %v1695_v28  ;;  %v1674_v33 = vmul.f32 %v4388_v52, %v5260_v4 }
 0x743   :  { %v5428_v2 = vmul.f32 %v4860_v39, %v1549_v29  ;;  %v1534_v35 = vmul.f32 0.03125, %v1512_v30  ;;  %v1584_v15 = vmul.f32 %v5441_v12, %v5441_v12 }
 0x744   :  { %3792 = vmatprep.mubr.f32.mxu0 %v1717_v58  ;;  %v1520_v41 = vpop.xlane.xlu1 %1519  ;;  %v1696_v42 = vmul.f32 %v5403_v34, %v1674_v33 }
 0x745   :  { %v4390_v23 = vpop.eup %4389  ;;  %v1550_v24 = vsub.f32 %v5281_v40, %v1534_v35  ;;  %v1538_v55 = vmul.f32 0.03125, %v1520_v41  ;;  %v1581_v38 = vmul.f32 %v5428_v2, %v5428_v2  ;;  %v4679_v35 = vmov 0.0|0.0  }
 0x746   :  { %v1514_v51 = vpop.xlane.xlu0 %1513  ;;  %v1718_v4 = vadd.f32 %v5409_v3, %v1696_v42  ;;  %v1675_v62 = vmul.f32 %v4390_v23, %v5266_v17  ;;  %4180 = vmatprep.subr.bf16.mxu0 %v4679_v35 }
 0x747   :  { %v5438_v48 = vmul.f32 %v4860_v39, %v1550_v24  ;;  %v1535_v32 = vmul.f32 0.03125, %v1514_v51  ;;  %1605 = vadd.xlane.f32.xlu0 %v1581_v38  ;;  %v1554_v0 = vsub.f32 %v5286_v37, %v1538_v55 }
 0x748   :  { %3793 = vmatmul.mubr.f32.gmra.mrb[44].mxu0 %v1718_v4  ;;  %v1697_v59 = vmul.f32 %v5403_v34, %v1675_v62 }
 0x749   :  { %v4392_v46 = vpop.eup %4391  ;;  %v1551_v1 = vsub.f32 %v5284_v50, %v1535_v32  ;;  %v1582_v11 = vmul.f32 %v5438_v48, %v5438_v48  ;;  %v5457_v19 = vmul.f32 %v4860_v39, %v1554_v0 }
 0x74a   :  { %v1518_v17 = vpop.xlane.xlu0 %1517  ;;  %v1719_v36 = vadd.f32 %v5409_v3, %v1697_v59  ;;  %v1676_v13 = vmul.f32 %v4392_v46, %v5272_v26 }
 0x74b   :  { %v5451_v7 = vmul.f32 %v4860_v39, %v1551_v1  ;;  %v1537_v56 = vmul.f32 0.03125, %v1518_v17  ;;  %1607 = vadd.xlane.f32.xlu1 %v1582_v11  ;;  %v1586_v29 = vmul.f32 %v5457_v19, %v5457_v19 }
 0x74c   :  { %3795 = vmatprep.mubr.f32.mxu0 %v1719_v36  ;;  %v1524_v63 = vpop.xlane.xlu1 %1523  ;;  %v1698_v49 = vmul.f32 %v5403_v34, %v1676_v13 }
 0x74d   :  { %v1553_v53 = vsub.f32 %v5303_v43, %v1537_v56  ;;  %v1540_v21 = vmul.f32 0.03125, %v1524_v63  ;;  %v1583_v26 = vmul.f32 %v5451_v7, %v5451_v7 }
 0x74e   :  { %v1522_v44 = vpop.xlane.xlu0 %1521  ;;  %v1720_v25 = vadd.f32 %v5409_v3, %v1698_v49 }
 0x74f   :  { %v5464_v57 = vmul.f32 %v4860_v39, %v1553_v53  ;;  %v1556_v5 = vsub.f32 %v5317_v16, %v1540_v21  ;;  %v1539_v27 = vmul.f32 0.03125, %v1522_v44  ;;  %1609 = vadd.xlane.f32.xlu0 %v1583_v26  ;;  %1611 = vadd.xlane.f32.xlu1 %v1584_v15 }
 0x750   :  { %3796 = vmatmul.mubr.f32.gmra.mrb[46].mxu0 %v1720_v25 }
 0x751   :  { %v5468_v45 = vmul.f32 %v4860_v39, %v1556_v5  ;;  %v1555_v28 = vsub.f32 %v5320_v47, %v1539_v27  ;;  %v1585_v52 = vmul.f32 %v5464_v57, %v5464_v57 }
 0x753   :  { %v5476_v30 = vmul.f32 %v4860_v39, %v1555_v28  ;;  %1613 = vadd.xlane.f32.xlu0 %v1585_v52  ;;  %1615 = vadd.xlane.f32.xlu1 %v1586_v29  ;;  %v1588_v33 = vmul.f32 %v5468_v45, %v5468_v45 }
 0x755   :  { %v1587_v58 = vmul.f32 %v5476_v30, %v5476_v30 }
 0x757   :  { %1617 = vadd.xlane.f32.xlu0 %v1587_v58  ;;  %1619 = vadd.xlane.f32.xlu1 %v1588_v33 }
 0x79a   :  { %v5483_v60 = vpop.f32.mrb[40].mxu1 }
 0x79b   :  { %v1990_v41 = vpop.f32.mrb[41].mxu1 }
 0x79c   :  { %3829 = vmatprep.subr.mxu1 %v1990_v41 }
 0x79d   :  { %3830 = vmatpush3.msra.mxu1 %v1990_v41 }
 0x79e   :  { %4192 = vmatprep.subr.bf16.mxu1 %v4679_v35 }
 0x7d4   :  { %v1606_v42 = vpop.xlane.xlu0 %1605 }
 0x7d5   :  { %v1629_v23 = vmul.f32 0.03125, %v1606_v42 }
 0x7d7   :  { %v1645_v24 = vadd.f32 1e-05, %v1629_v23 }
 0x7d8   :  { %v1608_v55 = vpop.xlane.xlu1 %1607 }
 0x7d9   :  { %4393 = vrsqrt.f32 %v1645_v24  ;;  %v1630_v38 = vmul.f32 0.03125, %v1608_v55 }
 0x7db   :  { %v1646_v51 = vadd.f32 1e-05, %v1630_v38 }
 0x7dc   :  { %v1610_v4 = vpop.xlane.xlu0 %1609  ;;  %v1612_v62 = vpop.xlane.xlu1 %1611 }
 0x7dd   :  { %4395 = vrsqrt.f32 %v1646_v51  ;;  %v1631_v32 = vmul.f32 0.03125, %v1610_v4  ;;  %v1632_v59 = vmul.f32 0.03125, %v1612_v62 }
 0x7df   :  { %v1647_v46 = vadd.f32 1e-05, %v1631_v32  ;;  %v1648_v0 = vadd.f32 1e-05, %v1632_v59 }
 0x7e0   :  { %v1614_v1 = vpop.xlane.xlu0 %1613  ;;  %v1616_v11 = vpop.xlane.xlu1 %1615 }
 0x7e1   :  { %4397 = vrsqrt.f32 %v1647_v46  ;;  %v1633_v17 = vmul.f32 0.03125, %v1614_v1  ;;  %v1634_v36 = vmul.f32 0.03125, %v1616_v11 }
 0x7e2   :  { %4399 = vrsqrt.f32 %v1648_v0 }
 0x7e3   :  { %v4394_v13 = vpop.eup %4393  ;;  %v1649_v56 = vadd.f32 1e-05, %v1633_v17  ;;  %v1650_v63 = vadd.f32 1e-05, %v1634_v36 }
 0x7e4   :  { %v1618_v15 = vpop.xlane.xlu0 %1617  ;;  %v1620_v49 = vpop.xlane.xlu1 %1619  ;;  %v1677_v53 = vmul.f32 %v4394_v13, %v5428_v2 }
 0x7e5   :  { %4401 = vrsqrt.f32 %v1649_v56  ;;  %v1635_v21 = vmul.f32 0.03125, %v1618_v15  ;;  %v1636_v26 = vmul.f32 0.03125, %v1620_v49 }
 0x7e6   :  { %4403 = vrsqrt.f32 %v1650_v63  ;;  %v1699_v44 = vmul.f32 %v5403_v34, %v1677_v53 }
 0x7e7   :  { %v4396_v25 = vpop.eup %4395  ;;  %v1651_v5 = vadd.f32 1e-05, %v1635_v21  ;;  %v1652_v27 = vadd.f32 1e-05, %v1636_v26 }
 0x7e8   :  { %v1721_v28 = vadd.f32 %v5409_v3, %v1699_v44  ;;  %v1678_v52 = vmul.f32 %v4396_v25, %v5438_v48 }
 0x7e9   :  { %4405 = vrsqrt.f32 %v1651_v5 }
 0x7ea   :  { %4407 = vrsqrt.f32 %v1652_v27  ;;  %3798 = vmatprep.mubr.f32.mxu0 %v1721_v28  ;;  %v1700_v29 = vmul.f32 %v5403_v34, %v1678_v52 }
 0x7eb   :  { %v4398_v58 = vpop.eup %4397 }
 0x7ec   :  { %v4400_v2 = vpop.eup %4399  ;;  %v1722_v33 = vadd.f32 %v5409_v3, %v1700_v29  ;;  %v1679_v41 = vmul.f32 %v4398_v58, %v5451_v7 }
 0x7ed   :  { %v1680_v42 = vmul.f32 %v4400_v2, %v5441_v12 }
 0x7ee   :  { %3799 = vmatmul.mubr.f32.gmra.mrb[48].mxu0 %v1722_v33  ;;  %v1701_v23 = vmul.f32 %v5403_v34, %v1679_v41 }
 0x7ef   :  { %v4402_v24 = vpop.eup %4401  ;;  %v1702_v55 = vmul.f32 %v5403_v34, %v1680_v42 }
 0x7f0   :  { %v4404_v48 = vpop.eup %4403  ;;  %v1723_v38 = vadd.f32 %v5409_v3, %v1701_v23  ;;  %v1681_v51 = vmul.f32 %v4402_v24, %v5464_v57 }
 0x7f1   :  { %v1724_v4 = vadd.f32 %v5409_v3, %v1702_v55  ;;  %v1682_v62 = vmul.f32 %v4404_v48, %v5457_v19 }
 0x7f2   :  { %3801 = vmatprep.mubr.f32.mxu0 %v1723_v38  ;;  %v1703_v7 = vmul.f32 %v5403_v34, %v1681_v51 }
 0x7f3   :  { %v4406_v32 = vpop.eup %4405  ;;  %3802 = vmatmul.mubr.f32.gmra.mrb[50].mxu0 %v1724_v4  ;;  %v1704_v12 = vmul.f32 %v5403_v34, %v1682_v62 }
 0x7f4   :  { %v4408_v59 = vpop.eup %4407  ;;  %v1725_v46 = vadd.f32 %v5409_v3, %v1703_v7  ;;  %v1683_v0 = vmul.f32 %v4406_v32, %v5476_v30 }
 0x7f5   :  { %v1726_v1 = vadd.f32 %v5409_v3, %v1704_v12  ;;  %v1684_v57 = vmul.f32 %v4408_v59, %v5468_v45 }
 0x7f6   :  { %3804 = vmatprep.mubr.f32.mxu0 %v1725_v46  ;;  %v1705_v11 = vmul.f32 %v5403_v34, %v1683_v0 }
 0x7f7   :  { %3805 = vmatmul.mubr.f32.gmra.mrb[52].mxu0 %v1726_v1  ;;  %v1706_v19 = vmul.f32 %v5403_v34, %v1684_v57 }
 0x7f8   :  { %v1727_v17 = vadd.f32 %v5409_v3, %v1705_v11 }
 0x7f9   :  { %v1728_v36 = vadd.f32 %v5409_v3, %v1706_v19 }
 0x7fa   :  { %3807 = vmatprep.mubr.f32.mxu0 %v1727_v17 }
 0x7fb   :  { %3808 = vmatmul.mubr.f32.gmra.mrb[54].mxu0 %v1728_v36 }
 0x7fc   :  { %3826 = vmatprep.mubr.msk.f32.mxu0 %vm4680_vm2, %v4678_v8 }
 0x80b   :  { %v3788_v30 = vpop.f32.mrb[40].mxu0 }
 0x80c   :  { %v1811_v13 = vpop.f32.mrb[41].mxu0 }
 0x80d   :  { %v4181_v56 = vpack.c.bf16 %v3788_v30, %v1811_v13 }
 0x80f   :  { %4182 = vmatpush3.bf16.xpose.msra.mxu0 %v4181_v56 }
 0x810   :  { %4183 = vmatprep.subr.bf16.mxu0 %v4679_v35 }
 0x813   :  { %v3791_v45 = vpop.f32.mrb[42].mxu0 }
 0x814   :  { %v1821_v63 = vpop.f32.mrb[43].mxu0 }
 0x815   :  { %v4184_v15 = vpack.c.bf16 %v3791_v45, %v1821_v63 }
 0x817   :  { %4185 = vmatpush3.bf16.xpose.msra.mxu0 %v4184_v15 }
 0x818   :  { %4186 = vmatprep.subr.bf16.mxu0 %v4679_v35 }
 0x81b   :  { %v3794_v34 = vpop.f32.mrb[44].mxu0 }
 0x81c   :  { %v1831_v3 = vpop.f32.mrb[45].mxu0 }
 0x81d   :  { %v4187_v49 = vpack.c.bf16 %v3794_v34, %v1831_v3 }
 0x81f   :  { %4188 = vmatpush3.bf16.xpose.msra.mxu0 %v4187_v49 }
 0x820   :  { %4189 = vmatprep.subr.bf16.mxu0 %v4679_v35 }
 0x823   :  { %v3797_v53 = vpop.f32.mrb[46].mxu0 }
 0x824   :  { %v1841_v21 = vpop.f32.mrb[47].mxu0 }
 0x825   :  { %v4190_v26 = vpack.c.bf16 %v3797_v53, %v1841_v21 }
 0x827   :  { %4191 = vmatpush3.bf16.xpose.msra.mxu0 %v4190_v26 }
 0x82e   :  { %3827 = vmatmul.mubr.f32.vlgmr.msra.gmra.mrb[56].mxu0 %v5483_v60  ;;  %v136_v60 = vld [vmem:[%s5836_s1 + $0x8] sm:$0xff] }
 0x82f   :  { %1993 = vmatmul.mubr.f32.gmra.mrb[42].mxu1 %v136_v60 }
 0x8c1   :  { %v3800_v44 = vpop.f32.mrb[48].mxu0 }
 0x8c2   :  { %v1851_v25 = vpop.f32.mrb[49].mxu0 }
 0x8c3   :  { %v4193_v5 = vpack.c.bf16 %v3800_v44, %v1851_v25 }
 0x8c6   :  { %v3803_v27 = vpop.f32.mrb[50].mxu0 }
 0x8c7   :  { %v1861_v28 = vpop.f32.mrb[51].mxu0 }
 0x8c8   :  { %v4196_v52 = vpack.c.bf16 %v3803_v27, %v1861_v28 }
 0x8ca   :  { %v3806_v29 = vpop.f32.mrb[52].mxu0 }
 0x8cb   :  { %v1871_v58 = vpop.f32.mrb[53].mxu0 }
 0x8cc   :  { %v4199_v2 = vpack.c.bf16 %v3806_v29, %v1871_v58 }
 0x8ce   :  { %v3809_v33 = vpop.f32.mrb[54].mxu0 }
 0x8cf   :  { %v1881_v41 = vpop.f32.mrb[55].mxu0 }
 0x8d0   :  { %v4202_v42 = vpack.c.bf16 %v3809_v33, %v1881_v41 }
 0x901   :  { %v2065_v23 = vpop.f32.mrb[56].mxu0 }
 0x902   :  { %v3828_v24 = vpop.f32.mrb[57].mxu0  ;;  %v2069_v55 = vsel %vm839_vm1, %v2065_v23, -inf  ;;  %v1994_v59 = vpop.f32.mrb[42].mxu1 }
 0x903   :  { %2070 = vmax.xlane.f32.xlu0 %v2069_v55  ;;  %v1996_v46 = vpop.f32.mrb[43].mxu1 }
 0x904   :  { %3862 = vmatprep.subr.mxu0 %v1996_v46 }
 0x905   :  { %3863 = vmatpush3.msra.mxu0 %v1996_v46 }
 0x990   :  { %v2071_v48 = vpop.xlane.xlu0 %2070 }
 0x991   :  { %v2072_v38 = vsub.f32 %v2065_v23, %v2071_v48 }
 0x993   :  { %v2073_v51 = vmul.f32 1.442695, %v2072_v38 }
 0x995   :  { %4409 = vpow2.f32 %v2073_v51 }
 0x99f   :  { %v4410_v4 = vpop.eup %4409 }
 0x9a0   :  { %v2075_v62 = vsel %vm839_vm1, %v4410_v4, 0.0 }
 0x9a1   :  { %2076 = vadd.xlane.f32.xlu1 %v2075_v62 }
 0xa2e   :  { %v2077_v7 = vpop.xlane.xlu1 %2076 }
 0xa2f   :  { %4411 = vrcp.f32 %v2077_v7 }
 0xa39   :  { %v4412_v32 = vpop.eup %4411 }
 0xa3a   :  { %v2079_v12 = vmul.f32 %v4412_v32, %v4410_v4 }
 0xa3c   :  { %2080 = vxpose.xlu0.b32.start.end [1/1] (short) (narrow) %v2079_v12, 64 }
 0xabc   :  { %v2096_v0 = vpop.trf.xlu0 }
 0xabd   :  { %3831 = vmatprep.mubr.msk.f32.mxu1 %vm2112_vm3, %v2096_v0 }
 0xac0   :  { %v2097_v1 = vpop.trf.xlu0 }
 0xac1   :  { %3832 = vmatmul.mubr.msk.f32.vlgmr.msra.gmra.mrb[44].mxu1 %vm2112_vm3, %v2097_v1 }
 0xac2   :  { %4194 = vmatpush3.bf16.xpose.msra.mxu1 %v4193_v5 }
 0xac3   :  { %4195 = vmatprep.subr.bf16.mxu1 %v4679_v35 }
 0xac4   :  { %v2098_v57 = vpop.trf.xlu0 }
 0xac5   :  { %3834 = vmatprep.mubr.msk.f32.mxu1 %vm2112_vm3, %v2098_v57 }
 0xac8   :  { %v2099_v11 = vpop.trf.xlu0 }
 0xac9   :  { %3835 = vmatmul.mubr.msk.f32.gmra.mrb[46].mxu1 %vm2112_vm3, %v2099_v11 }
 0xaca   :  { %4197 = vmatpush3.bf16.xpose.msra.mxu1 %v4196_v52 }
 0xacb   :  { %4198 = vmatprep.subr.bf16.mxu1 %v4679_v35 }
 0xacc   :  { %v2100_v19 = vpop.trf.xlu0 }
 0xacd   :  { %3837 = vmatprep.mubr.msk.f32.mxu1 %vm2112_vm3, %v2100_v19 }
 0xad0   :  { %v2101_v17 = vpop.trf.xlu0 }
 0xad1   :  { %3838 = vmatmul.mubr.msk.f32.gmra.mrb[48].mxu1 %vm2112_vm3, %v2101_v17 }
 0xad2   :  { %4200 = vmatpush3.bf16.xpose.msra.mxu1 %v4199_v2 }
 0xad3   :  { %4201 = vmatprep.subr.bf16.mxu1 %v4679_v35 }
 0xad4   :  { %v2102_v36 = vpop.trf.xlu0 }
 0xad5   :  { %3840 = vmatprep.mubr.msk.f32.mxu1 %vm2112_vm3, %v2102_v36 }
 0xad8   :  { %v2103_v30 = vpop.trf.xlu0 }
 0xad9   :  { %3841 = vmatmul.mubr.msk.f32.gmra.mrb[50].mxu1 %vm2112_vm3, %v2103_v30 }
 0xada   :  { %4203 = vmatpush3.bf16.xpose.msra.mxu1 %v4202_v42  ;;  %3859 = vmatprep.mubr.msk.f32.mxu1 %vm4680_vm2, %v4678_v8 }
 0xae1   :  { %3860 = vmatmul.mubr.f32.vlgmr.msra.gmra.mrb[52].mxu1 %v1994_v59 }
 0xb94   :  { %v3833_v13 = vpop.f32.mrb[44].mxu1 }
 0xb95   :  { %v2203_v56 = vpop.f32.mrb[45].mxu1  ;;  %v5557_v29 = vadd.f32 %v3833_v13, %v5207_v6 }
 0xb96   :  { %v5535_v45 = vadd.f32 %v2203_v56, %v5204_v10 }
 0xb98   :  { %2534 = vadd.xlane.f32.xlu0 %v5535_v45 }
 0xb9c   :  { %v3836_v63 = vpop.f32.mrb[46].mxu1 }
 0xb9d   :  { %v2213_v35 = vpop.f32.mrb[47].mxu1  ;;  %v5543_v34 = vadd.f32 %v3836_v63, %v5213_v14 }
 0xb9e   :  { %v5539_v15 = vadd.f32 %v2213_v35, %v5210_v61 }
 0xba0   :  { %2538 = vadd.xlane.f32.xlu0 %v5539_v15 }
 0xba4   :  { %2540 = vadd.xlane.f32.xlu0 %v5543_v34  ;;  %v3839_v8 = vpop.f32.mrb[48].mxu1 }
 0xba5   :  { %v2223_v3 = vpop.f32.mrb[49].mxu1  ;;  %v5561_v58 = vadd.f32 %v3839_v8, %v5219_v18 }
 0xba6   :  { %v5547_v49 = vadd.f32 %v2223_v3, %v5216_v9 }
 0xba8   :  { %2542 = vadd.xlane.f32.xlu0 %v5547_v49 }
 0xbac   :  { %v3842_v10 = vpop.f32.mrb[50].mxu1 }
 0xbad   :  { %v2233_v53 = vpop.f32.mrb[51].mxu1  ;;  %v5565_v2 = vadd.f32 %v3842_v10, %v5225_v22 }
 0xbae   :  { %v5551_v21 = vadd.f32 %v2233_v53, %v5222_v20 }
 0xbb0   :  { %2546 = vadd.xlane.f32.xlu0 %v5551_v21 }
 0xbb4   :  { %v2316_v61 = vpop.f32.mrb[52].mxu1 }
 0xbb5   :  { %v3861_v26 = vpop.f32.mrb[53].mxu1  ;;  %v2320_v14 = vsel %vm839_vm1, %v2316_v61, -inf }
 0xbb6   :  { %2321 = vmax.xlane.f32.xlu1 %v2320_v14 }
 0xc25   :  { %v2535_v51 = vpop.xlane.xlu0 %2534 }
 0xc26   :  { %v2566_v57 = vmul.f32 0.03125, %v2535_v51  ;;  %v2772_v51 = vld [vmem:[#allocation9 + $0x10] sm:$0xff] }
 0xc28   :  { %v2582_v17 = vsub.f32 %v5535_v45, %v2566_v57  ;;  %v2777_v57 = vld [vmem:[#allocation9 + $0x38] sm:$0xff] }
 0xc2a   :  { %v5610_v8 = vmul.f32 %v4860_v39, %v2582_v17 }
 0xc2d   :  { %v2539_v12 = vpop.xlane.xlu0 %2538 }
 0xc2e   :  { %v2568_v36 = vmul.f32 0.03125, %v2539_v12 }
 0xc30   :  { %v2584_v3 = vsub.f32 %v5539_v15, %v2568_v36  ;;  %v2780_v36 = vld [vmem:[#allocation9 + $0x50] sm:$0xff] }
 0xc31   :  { %v2541_v59 = vpop.xlane.xlu0 %2540 }
 0xc32   :  { %v2569_v11 = vmul.f32 0.03125, %v2541_v59  ;;  %v2775_v59 = vld [vmem:[#allocation9 + $0x28] sm:$0xff] }
 0xc35   :  { %v2543_v30 = vpop.xlane.xlu0 %2542 }
 0xc36   :  { %v2570_v10 = vmul.f32 0.03125, %v2543_v30  ;;  %v2781_v30 = vld [vmem:[#allocation9 + $0x58] sm:$0xff] }
 0xc3d   :  { %v2547_v26 = vpop.xlane.xlu0 %2546 }
 0xc43   :  { %v2322_v44 = vpop.xlane.xlu1 %2321 }
 0xc44   :  { %v2323_v25 = vsub.f32 %v2316_v61, %v2322_v44 }
 0xc46   :  { %v2324_v5 = vmul.f32 1.442695, %v2323_v25 }
 0xc48   :  { %4413 = vpow2.f32 %v2324_v5  ;;  %v5625_v5 = vmul.f32 %v4860_v39, %v2584_v3  ;;  %v2784_v3 = vld [vmem:[#allocation9 + $0x70] sm:$0xff] }
 0xc52   :  { %v4414_v9 = vpop.eup %4413 }
 0xc53   :  { %v2326_v27 = vsel %vm839_vm1, %v4414_v9, 0.0 }
 0xc54   :  { %2327 = vadd.xlane.f32.xlu1 %v2326_v27  ;;  %v2614_v27 = vmul.f32 %v5610_v8, %v5610_v8 }
 0xce1   :  { %v2328_v28 = vpop.xlane.xlu1 %2327 }
 0xce2   :  { %4415 = vrcp.f32 %v2328_v28 }
 0xcec   :  { %v4416_v52 = vpop.eup %4415 }
 0xced   :  { %v2330_v20 = vmul.f32 %v4416_v52, %v4414_v9  ;;  %v2572_v9 = vmul.f32 0.03125, %v2547_v26 }
 0xcef   :  { %2331 = vxpose.xlu1.b32.start.end [1/1] (short) (narrow) %v2330_v20, 64 }
 0xd32   :  { %2536 = vadd.xlane.f32.xlu1 %v5557_v29 }
 0xd36   :  { %2544 = vadd.xlane.f32.xlu1 %v5561_v58 }
 0xd3a   :  { %2548 = vadd.xlane.f32.xlu1 %v5565_v2 }
 0xd6f   :  { %v2347_v33 = vpop.trf.xlu1 }
 0xd70   :  { %3864 = vmatprep.mubr.msk.f32.mxu0 %vm2112_vm3, %v2347_v33 }
 0xd73   :  { %v2348_v41 = vpop.trf.xlu1 }
 0xd74   :  { %3865 = vmatmul.mubr.msk.f32.vlgmr.msra.gmra.mrb[58].mxu0 %vm2112_vm3, %v2348_v41  ;;  %v2588_v41 = vsub.f32 %v5551_v21, %v2572_v9 }
 0xd77   :  { %v2349_v6 = vpop.trf.xlu1 }
 0xd78   :  { %3867 = vmatprep.mubr.msk.f32.mxu0 %vm2112_vm3, %v2349_v6  ;;  %v2616_v6 = vmul.f32 %v5625_v5, %v5625_v5 }
 0xd7b   :  { %v2350_v42 = vpop.trf.xlu1 }
 0xd7c   :  { %3868 = vmatmul.mubr.msk.f32.gmra.mrb[60].mxu0 %vm2112_vm3, %v2350_v42  ;;  %v2770_v42 = vld [vmem:[#allocation9] sm:$0xff] }
 0xd7f   :  { %v2351_v18 = vpop.trf.xlu1 }
 0xd80   :  { %3870 = vmatprep.mubr.msk.f32.mxu0 %vm2112_vm3, %v2351_v18  ;;  %v2771_v18 = vld [vmem:[#allocation9 + $0x8] sm:$0xff] }
 0xd83   :  { %v2352_v23 = vpop.trf.xlu1 }
 0xd84   :  { %3871 = vmatmul.mubr.msk.f32.gmra.mrb[62].mxu0 %vm2112_vm3, %v2352_v23  ;;  %v4204_v23 = vpack.c.bf16 %v2771_v18, %v2770_v42 }
 0xd86   :  { %4205 = vmatprep.subr.bf16.mxu0 %v4204_v23 }
 0xd87   :  { %v2353_v22 = vpop.trf.xlu1  ;;  %4207 = vmatpush3.bf16.msra.mxu0 %v4204_v23 }
 0xd88   :  { %3873 = vmatprep.mubr.msk.f32.mxu0 %vm2112_vm3, %v2353_v22 }
 0xd8b   :  { %v2354_v24 = vpop.trf.xlu1 }
 0xd8c   :  { %3874 = vmatmul.mubr.msk.f32.gmra.mrb[64].mxu0 %vm2112_vm3, %v2354_v24 }
 0xe47   :  { %v3866_v55 = vpop.f32.mrb[58].mxu0 }
 0xe48   :  { %v5577_v60 = vadd.f32 %v3866_v55, %v5281_v40  ;;  %v2453_v48 = vpop.f32.mrb[59].mxu0  ;;  %v5648_v55 = vmul.f32 %v4860_v39, %v2588_v41 }
 0xe49   :  { %v5580_v38 = vadd.f32 %v2453_v48, %v5276_v54  ;;  %v2537_v54 = vpop.xlane.xlu1 %2536 }
 0xe4a   :  { %2552 = vadd.xlane.f32.xlu1 %v5577_v60  ;;  %v2567_v46 = vmul.f32 0.03125, %v2537_v54  ;;  %v2620_v54 = vmul.f32 %v5648_v55, %v5648_v55 }
 0xe4b   :  { %2550 = vadd.xlane.f32.xlu0 %v5580_v38 }
 0xe4c   :  { %v2583_v19 = vsub.f32 %v5557_v29, %v2567_v46 }
 0xe4e   :  { %v5604_v56 = vmul.f32 %v4860_v39, %v2583_v19  ;;  %v2779_v19 = vld [vmem:[#allocation9 + $0x48] sm:$0xff] }
 0xe4f   :  { %v3869_v4 = vpop.f32.mrb[60].mxu0 }
 0xe50   :  { %v5585_v62 = vadd.f32 %v3869_v4, %v5278_v31  ;;  %v2463_v7 = vpop.f32.mrb[61].mxu0  ;;  %v2615_v25 = vmul.f32 %v5604_v56, %v5604_v56  ;;  %v2773_v4 = vld [vmem:[#allocation9 + $0x18] sm:$0xff] }
 0xe51   :  { %v5588_v32 = vadd.f32 %v2463_v7, %v5284_v50  ;;  %v2545_v50 = vpop.xlane.xlu1 %2544  ;;  %v4208_v7 = vpack.c.bf16 %v2773_v4, %v2772_v51 }
 0xe52   :  { %2556 = vadd.xlane.f32.xlu1 %v5585_v62 }
 0xe53   :  { %2554 = vadd.xlane.f32.xlu0 %v5588_v32  ;;  %4209 = vmatprep.subr.bf16.mxu0 %v4208_v7 }
 0xe54   :  { %4211 = vmatpush3.bf16.msra.mxu0 %v4208_v7 }
 0xe55   :  { %v2549_v53 = vpop.xlane.xlu1 %2548 }
 0xe56   :  { %v2573_v44 = vmul.f32 0.03125, %v2549_v53 }
 0xe57   :  { %v3872_v40 = vpop.f32.mrb[62].mxu0 }
 0xe58   :  { %v5593_v0 = vadd.f32 %v3872_v40, %v5286_v37  ;;  %v2473_v1 = vpop.f32.mrb[63].mxu0  ;;  %v2585_v37 = vsub.f32 %v5543_v34, %v2569_v11  ;;  %v2589_v52 = vsub.f32 %v5565_v2, %v2573_v44  ;;  %v2774_v40 = vld [vmem:[#allocation9 + $0x20] sm:$0xff] }
 0xe59   :  { %v5596_v31 = vadd.f32 %v2473_v1, %v5303_v43  ;;  %v2571_v43 = vmul.f32 0.03125, %v2545_v50  ;;  %v4212_v46 = vpack.c.bf16 %v2775_v59, %v2774_v40  ;;  %v2776_v1 = vld [vmem:[#allocation9 + $0x30] sm:$0xff]  ;;  %v2778_v11 = vld [vmem:[#allocation9 + $0x40] sm:$0xff] }
 0xe5a   :  { %2560 = vadd.xlane.f32.xlu1 %v5593_v0  ;;  %v5619_v14 = vmul.f32 %v4860_v39, %v2585_v37  ;;  %v5643_v22 = vmul.f32 %v4860_v39, %v2589_v52  ;;  %v4216_v50 = vpack.c.bf16 %v2777_v57, %v2776_v1  ;;  %v4220_v17 = vpack.c.bf16 %v2779_v19, %v2778_v11  ;;  %v2782_v37 = vld [vmem:[#allocation9 + $0x60] sm:$0xff] }
 0xe5b   :  { %2558 = vadd.xlane.f32.xlu0 %v5596_v31  ;;  %4213 = vmatprep.subr.bf16.mxu0 %v4212_v46 }
 0xe5c   :  { %v2617_v20 = vmul.f32 %v5619_v14, %v5619_v14  ;;  %v2621_v12 = vmul.f32 %v5643_v22, %v5643_v22  ;;  %4215 = vmatpush3.bf16.msra.mxu0 %v4212_v46 }
 0xe5d   :  { %4217 = vmatprep.subr.bf16.mxu0 %v4216_v50 }
 0xe5f   :  { %v3875_v13 = vpop.f32.mrb[64].mxu0 }
 0xe60   :  { %v5607_v63 = vadd.f32 %v3875_v13, %v5317_v16  ;;  %v2483_v35 = vpop.f32.mrb[65].mxu0  ;;  %v2587_v16 = vsub.f32 %v5561_v58, %v2571_v43  ;;  %4219 = vmatpush3.bf16.msra.mxu0 %v4216_v50  ;;  %v4224_v13 = vpack.c.bf16 %v2781_v30, %v2780_v36  ;;  %v2783_v43 = vld [vmem:[#allocation9 + $0x68] sm:$0xff] }
 0xe61   :  { %v5614_v61 = vadd.f32 %v2483_v35, %v5320_v47  ;;  %v2586_v47 = vsub.f32 %v5547_v49, %v2570_v10  ;;  %4221 = vmatprep.subr.bf16.mxu0 %v4220_v17  ;;  %v4228_v35 = vpack.c.bf16 %v2783_v43, %v2782_v37  ;;  %v2785_v10 = vld [vmem:[#allocation9 + $0x78] sm:$0xff] }
 0xe62   :  { %2564 = vadd.xlane.f32.xlu1 %v5607_v63  ;;  %v5631_v28 = vmul.f32 %v4860_v39, %v2587_v16  ;;  %v4232_v53 = vpack.c.bf16 %v2785_v10, %v2784_v3 }
 0xe63   :  { %2562 = vadd.xlane.f32.xlu0 %v5614_v61  ;;  %v5637_v33 = vmul.f32 %v4860_v39, %v2586_v47 }
 0xe64   :  { %v2619_v24 = vmul.f32 %v5631_v28, %v5631_v28  ;;  %4223 = vmatpush3.bf16.msra.mxu0 %v4220_v17 }
 0xe65   :  { %v2618_v48 = vmul.f32 %v5637_v33, %v5637_v33  ;;  %4225 = vmatprep.subr.bf16.mxu0 %v4224_v13 }
 0xe66   :  { %2632 = vadd.xlane.f32.xlu1 %v2615_v25 }
 0xe67   :  { %2630 = vadd.xlane.f32.xlu0 %v2614_v27 }
 0xe68   :  { %4227 = vmatpush3.bf16.msra.mxu0 %v4224_v13 }
 0xe69   :  { %4229 = vmatprep.subr.bf16.mxu0 %v4228_v35 }
 0xe6a   :  { %2636 = vadd.xlane.f32.xlu1 %v2617_v20 }
 0xe6b   :  { %2634 = vadd.xlane.f32.xlu0 %v2616_v6 }
 0xe6c   :  { %4231 = vmatpush3.bf16.msra.mxu0 %v4228_v35 }
 0xe6d   :  { %4233 = vmatprep.subr.bf16.mxu0 %v4232_v53 }
 0xe6e   :  { %2640 = vadd.xlane.f32.xlu1 %v2619_v24 }
 0xe6f   :  { %2638 = vadd.xlane.f32.xlu0 %v2618_v48 }
 0xe70   :  { %4235 = vmatpush3.bf16.msra.mxu0 %v4232_v53 }
 0xe72   :  { %2644 = vadd.xlane.f32.xlu1 %v2621_v12 }
 0xe73   :  { %2642 = vadd.xlane.f32.xlu0 %v2620_v54 }
 0xed7   :  { %v2553_v26 = vpop.xlane.xlu1 %2552 }
 0xed8   :  { %v2575_v16 = vmul.f32 0.03125, %v2553_v26  ;;  %v2551_v44 = vpop.xlane.xlu0 %2550 }
 0xed9   :  { %v2574_v25 = vmul.f32 0.03125, %v2551_v44 }
 0xeda   :  { %v2591_v47 = vsub.f32 %v5577_v60, %v2575_v16 }
 0xedb   :  { %v2590_v9 = vsub.f32 %v5580_v38, %v2574_v25 }
 0xedc   :  { %v5659_v27 = vmul.f32 %v4860_v39, %v2591_v47 }
 0xedd   :  { %v5662_v52 = vmul.f32 %v4860_v39, %v2590_v9 }
 0xede   :  { %v2623_v20 = vmul.f32 %v5659_v27, %v5659_v27 }
 0xedf   :  { %v2557_v41 = vpop.xlane.xlu1 %2556  ;;  %v2622_v6 = vmul.f32 %v5662_v52, %v5662_v52 }
 0xee0   :  { %v2577_v42 = vmul.f32 0.03125, %v2557_v41  ;;  %v2555_v18 = vpop.xlane.xlu0 %2554  ;;  %2648 = vadd.xlane.f32.xlu1 %v2623_v20 }
 0xee1   :  { %v2576_v23 = vmul.f32 0.03125, %v2555_v18  ;;  %2646 = vadd.xlane.f32.xlu0 %v2622_v6 }
 0xee2   :  { %v2593_v24 = vsub.f32 %v5585_v62, %v2577_v42 }
 0xee3   :  { %v2592_v48 = vsub.f32 %v5588_v32, %v2576_v23 }
 0xee4   :  { %v5671_v51 = vmul.f32 %v4860_v39, %v2593_v24 }
 0xee5   :  { %v5674_v4 = vmul.f32 %v4860_v39, %v2592_v48 }
 0xee6   :  { %v2625_v7 = vmul.f32 %v5671_v51, %v5671_v51 }
 0xee7   :  { %v2561_v12 = vpop.xlane.xlu1 %2560  ;;  %v2624_v54 = vmul.f32 %v5674_v4, %v5674_v4 }
 0xee8   :  { %v2579_v40 = vmul.f32 0.03125, %v2561_v12  ;;  %v2559_v59 = vpop.xlane.xlu0 %2558  ;;  %2652 = vadd.xlane.f32.xlu1 %v2625_v7 }
 0xee9   :  { %v2578_v46 = vmul.f32 0.03125, %v2559_v59  ;;  %2650 = vadd.xlane.f32.xlu0 %v2624_v54 }
 0xeea   :  { %v2595_v1 = vsub.f32 %v5593_v0, %v2579_v40 }
 0xeeb   :  { %v2594_v57 = vsub.f32 %v5596_v31, %v2578_v46 }
 0xeec   :  { %v5683_v50 = vmul.f32 %v4860_v39, %v2595_v1 }
 0xeed   :  { %v5686_v11 = vmul.f32 %v4860_v39, %v2594_v57 }
 0xeee   :  { %v2627_v19 = vmul.f32 %v5683_v50, %v5683_v50 }
 0xeef   :  { %v2565_v17 = vpop.xlane.xlu1 %2564  ;;  %v2626_v36 = vmul.f32 %v5686_v11, %v5686_v11 }
 0xef0   :  { %v2581_v30 = vmul.f32 0.03125, %v2565_v17  ;;  %2656 = vadd.xlane.f32.xlu1 %v2627_v19  ;;  %v2563_v13 = vpop.xlane.xlu0 %2562 }
 0xef1   :  { %v2580_v37 = vmul.f32 0.03125, %v2563_v13  ;;  %2654 = vadd.xlane.f32.xlu0 %v2626_v36  ;;  %v5707_v36 = vld [vmem:[%s5844_s9] ss:$0 sm:$0xff] }
 0xef2   :  { %v2597_v43 = vsub.f32 %v5607_v63, %v2581_v30 }
 0xef3   :  { %v2596_v35 = vsub.f32 %v5614_v61, %v2580_v37  ;;  %v2633_v3 = vpop.xlane.xlu1 %2632 }
 0xef4   :  { %v5695_v10 = vmul.f32 %v4860_v39, %v2597_v43  ;;  %v2663_v53 = vmul.f32 0.03125, %v2633_v3  ;;  %v2631_v26 = vpop.xlane.xlu0 %2630 }
 0xef5   :  { %v5698_v16 = vmul.f32 %v4860_v39, %v2596_v35  ;;  %v2662_v44 = vmul.f32 0.03125, %v2631_v26  ;;  %v5714_v35 = vld [vmem:[%s5845_s10] ss:$0 sm:$0xff] }
 0xef6   :  { %v2679_v25 = vadd.f32 1e-05, %v2663_v53  ;;  %v2629_v47 = vmul.f32 %v5695_v10, %v5695_v10 }
 0xef7   :  { %v2678_v9 = vadd.f32 1e-05, %v2662_v44  ;;  %v2637_v20 = vpop.xlane.xlu1 %2636  ;;  %v2628_v41 = vmul.f32 %v5698_v16, %v5698_v16 }
 0xef8   :  { %4417 = vrsqrt.f32 %v2679_v25  ;;  %v2665_v6 = vmul.f32 0.03125, %v2637_v20  ;;  %2660 = vadd.xlane.f32.xlu1 %v2629_v47  ;;  %v2635_v42 = vpop.xlane.xlu0 %2634 }
 0xef9   :  { %4419 = vrsqrt.f32 %v2678_v9  ;;  %v2664_v18 = vmul.f32 0.03125, %v2635_v42  ;;  %2658 = vadd.xlane.f32.xlu0 %v2628_v41 }
 0xefa   :  { %v2681_v23 = vadd.f32 1e-05, %v2665_v6 }
 0xefb   :  { %v2680_v39 = vadd.f32 1e-05, %v2664_v18  ;;  %v2641_v24 = vpop.xlane.xlu1 %2640 }
 0xefc   :  { %4421 = vrsqrt.f32 %v2681_v23  ;;  %v2667_v48 = vmul.f32 0.03125, %v2641_v24  ;;  %v2639_v7 = vpop.xlane.xlu0 %2638 }
 0xefd   :  { %4423 = vrsqrt.f32 %v2680_v39  ;;  %v2666_v12 = vmul.f32 0.03125, %v2639_v7 }
 0xefe   :  { %v2683_v54 = vadd.f32 1e-05, %v2667_v48 }
 0xeff   :  { %v2682_v40 = vadd.f32 1e-05, %v2666_v12  ;;  %v2645_v59 = vpop.xlane.xlu1 %2644 }
 0xf00   :  { %4425 = vrsqrt.f32 %v2683_v54  ;;  %v2669_v46 = vmul.f32 0.03125, %v2645_v59  ;;  %v2643_v1 = vpop.xlane.xlu0 %2642 }
 0xf01   :  { %4427 = vrsqrt.f32 %v2682_v40  ;;  %v2668_v57 = vmul.f32 0.03125, %v2643_v1  ;;  %v3018_v1 = vld [vmem:[#allocation11] sm:$0xff] }
 0xf02   :  { %v4418_v19 = vpop.eup %4417  ;;  %v2685_v17 = vadd.f32 1e-05, %v2669_v46 }
 0xf03   :  { %v4420_v30 = vpop.eup %4419  ;;  %v2711_v13 = vmul.f32 %v4418_v19, %v5604_v56  ;;  %v2684_v37 = vadd.f32 1e-05, %v2668_v57  ;;  %v3020_v57 = vld [vmem:[#allocation11 + $0x10] sm:$0xff] }
 0xf04   :  { %4429 = vrsqrt.f32 %v2685_v17  ;;  %v2710_v43 = vmul.f32 %v4420_v30, %v5610_v8  ;;  %v3021_v17 = vld [vmem:[#allocation11 + $0x18] sm:$0xff]  ;;  %v3022_v30 = vld [vmem:[#allocation11 + $0x20] sm:$0xff] }
 0xf05   :  { %4431 = vrsqrt.f32 %v2684_v37  ;;  %v2733_v3 = vmul.f32 %v5707_v36, %v2711_v13  ;;  %v3023_v13 = vld [vmem:[#allocation11 + $0x28] sm:$0xff] }
 0xf06   :  { %v4422_v53 = vpop.eup %4421  ;;  %v2732_v26 = vmul.f32 %v5707_v36, %v2710_v43  ;;  %v4244_v37 = vpack.c.bf16 %v3023_v13, %v3022_v30  ;;  %v3024_v43 = vld [vmem:[#allocation11 + $0x30] sm:$0xff] }
 0xf07   :  { %v4424_v44 = vpop.eup %4423  ;;  %v2713_v25 = vmul.f32 %v4422_v53, %v5619_v14  ;;  %v2755_v8 = vadd.f32 %v5714_v35, %v2733_v3  ;;  %v3025_v3 = vld [vmem:[#allocation11 + $0x38] sm:$0xff] }
 0xf08   :  { %v2754_v56 = vadd.f32 %v5714_v35, %v2732_v26  ;;  %v2712_v47 = vmul.f32 %v4424_v44, %v5625_v5  ;;  %v4248_v53 = vpack.c.bf16 %v3025_v3, %v3024_v43  ;;  %v3026_v26 = vld [vmem:[#allocation11 + $0x40] sm:$0xff]  ;;  %v3027_v44 = vld [vmem:[#allocation11 + $0x48] sm:$0xff] }
 0xf09   :  { %v2735_v9 = vmul.f32 %v5707_v36, %v2713_v25  ;;  %v4252_v25 = vpack.c.bf16 %v3027_v44, %v3026_v26 }
 0xf0a   :  { %v4426_v20 = vpop.eup %4425  ;;  %3908 = vmatprep.mubr.f32.mxu0 %v2754_v56  ;;  %v2734_v41 = vmul.f32 %v5707_v36, %v2712_v47  ;;  %v3028_v56 = vld [vmem:[#allocation11 + $0x50] sm:$0xff]  ;;  %v3029_v47 = vld [vmem:[#allocation11 + $0x58] sm:$0xff] }
 0xf0b   :  { %v4428_v6 = vpop.eup %4427  ;;  %3909 = vmatmul.mubr.f32.vlgmr.msra.gmra.mrb[66].mxu0 %v2755_v8  ;;  %v2715_v42 = vmul.f32 %v4426_v20, %v5631_v28  ;;  %v2757_v23 = vadd.f32 %v5714_v35, %v2735_v9  ;;  %v4256_v8 = vpack.c.bf16 %v3029_v47, %v3028_v56  ;;  %v3030_v9 = vld [vmem:[#allocation11 + $0x60] sm:$0xff]  ;;  %v3031_v20 = vld [vmem:[#allocation11 + $0x68] sm:$0xff] }
 0xf0c   :  { %v2756_v18 = vadd.f32 %v5714_v35, %v2734_v41  ;;  %v2714_v14 = vmul.f32 %v4428_v6, %v5637_v33  ;;  %v4260_v41 = vpack.c.bf16 %v3031_v20, %v3030_v9 }
 0xf0d   :  { %v2737_v5 = vmul.f32 %v5707_v36, %v2715_v42 }
 0xf0e   :  { %v4430_v39 = vpop.eup %4429  ;;  %3911 = vmatprep.mubr.f32.mxu0 %v2756_v18  ;;  %v2736_v24 = vmul.f32 %v5707_v36, %v2714_v14  ;;  %v3032_v14 = vld [vmem:[#allocation11 + $0x70] sm:$0xff] }
 0xf0f   :  { %v4432_v48 = vpop.eup %4431  ;;  %3912 = vmatmul.mubr.f32.gmra.mrb[68].mxu0 %v2757_v23  ;;  %v2717_v7 = vmul.f32 %v4430_v39, %v5643_v22  ;;  %v2759_v54 = vadd.f32 %v5714_v35, %v2737_v5  ;;  %v3019_v22 = vld [vmem:[#allocation11 + $0x8] sm:$0xff]  ;;  %v3033_v23 = vld [vmem:[#allocation11 + $0x78] sm:$0xff] }
 0xf10   :  { %v2758_v12 = vadd.f32 %v5714_v35, %v2736_v24  ;;  %v2716_v28 = vmul.f32 %v4432_v48, %v5648_v55  ;;  %v4236_v19 = vpack.c.bf16 %v3019_v22, %v3018_v1  ;;  %v4240_v55 = vpack.c.bf16 %v3021_v17, %v3020_v57 }
 0xf11   :  { %v2739_v33 = vmul.f32 %v5707_v36, %v2717_v7  ;;  %v4264_v39 = vpack.c.bf16 %v3033_v23, %v3032_v14 }
 0xf12   :  { %3914 = vmatprep.mubr.f32.mxu0 %v2758_v12  ;;  %v2738_v40 = vmul.f32 %v5707_v36, %v2716_v28  ;;  %4237 = vmatprep.subr.bf16.mxu1 %v4236_v19 }
 0xf13   :  { %3915 = vmatmul.mubr.f32.gmra.mrb[70].mxu0 %v2759_v54  ;;  %v2761_v46 = vadd.f32 %v5714_v35, %v2739_v33  ;;  %4239 = vmatpush3.bf16.msra.mxu1 %v4236_v19 }
 0xf14   :  { %v2760_v59 = vadd.f32 %v5714_v35, %v2738_v40  ;;  %4241 = vmatprep.subr.bf16.mxu1 %v4240_v55 }
 0xf16   :  { %3917 = vmatprep.mubr.f32.mxu0 %v2760_v59 }
 0xf17   :  { %3918 = vmatmul.mubr.f32.gmra.mrb[72].mxu0 %v2761_v46  ;;  %4243 = vmatpush3.bf16.msra.mxu1 %v4240_v55 }
 0xf18   :  { %4245 = vmatprep.subr.bf16.mxu1 %v4244_v37 }
 0xf1b   :  { %4247 = vmatpush3.bf16.msra.mxu1 %v4244_v37 }
 0xf1c   :  { %4249 = vmatprep.subr.bf16.mxu1 %v4248_v53 }
 0xf1f   :  { %4251 = vmatpush3.bf16.msra.mxu1 %v4248_v53 }
 0xf20   :  { %4253 = vmatprep.subr.bf16.mxu1 %v4252_v25 }
 0xf23   :  { %4255 = vmatpush3.bf16.msra.mxu1 %v4252_v25 }
 0xf24   :  { %4257 = vmatprep.subr.bf16.mxu1 %v4256_v8 }
 0xf27   :  { %4259 = vmatpush3.bf16.msra.mxu1 %v4256_v8 }
 0xf28   :  { %4261 = vmatprep.subr.bf16.mxu1 %v4260_v41 }
 0xf2b   :  { %4263 = vmatpush3.bf16.msra.mxu1 %v4260_v41 }
 0xf2c   :  { %4265 = vmatprep.subr.bf16.mxu1 %v4264_v39 }
 0xf2f   :  { %4267 = vmatpush3.bf16.msra.mxu1 %v4264_v39 }
 0xf6d   :  { %v2649_v6 = vpop.xlane.xlu1 %2648 }
 0xf6e   :  { %v2671_v42 = vmul.f32 0.03125, %v2649_v6  ;;  %v2647_v18 = vpop.xlane.xlu0 %2646 }
 0xf6f   :  { %v2670_v5 = vmul.f32 0.03125, %v2647_v18 }
 0xf70   :  { %v2687_v24 = vadd.f32 1e-05, %v2671_v42 }
 0xf71   :  { %v2686_v48 = vadd.f32 1e-05, %v2670_v5 }
 0xf72   :  { %4433 = vrsqrt.f32 %v2687_v24 }
 0xf73   :  { %4435 = vrsqrt.f32 %v2686_v48 }
 0xf75   :  { %v2653_v7 = vpop.xlane.xlu1 %2652 }
 0xf76   :  { %v2673_v12 = vmul.f32 0.03125, %v2653_v7  ;;  %v2651_v28 = vpop.xlane.xlu0 %2650 }
 0xf77   :  { %v2672_v54 = vmul.f32 0.03125, %v2651_v28 }
 0xf78   :  { %v2689_v33 = vadd.f32 1e-05, %v2673_v12 }
 0xf79   :  { %v2688_v40 = vadd.f32 1e-05, %v2672_v54 }
 0xf7a   :  { %4437 = vrsqrt.f32 %v2689_v33 }
 0xf7b   :  { %4439 = vrsqrt.f32 %v2688_v40 }
 0xf7c   :  { %v4434_v59 = vpop.eup %4433 }
 0xf7d   :  { %v4436_v46 = vpop.eup %4435  ;;  %v2657_v1 = vpop.xlane.xlu1 %2656  ;;  %v2719_v22 = vmul.f32 %v4434_v59, %v5659_v27  ;;  %v5765_v59 = vld [vmem:[%s5847_s12] ss:$0 sm:$0xff] }
 0xf7e   :  { %v2675_v57 = vmul.f32 0.03125, %v2657_v1  ;;  %v2655_v19 = vpop.xlane.xlu0 %2654  ;;  %v2718_v17 = vmul.f32 %v4436_v46, %v5662_v52 }
 0xf7f   :  { %v2674_v55 = vmul.f32 0.03125, %v2655_v19  ;;  %v2741_v30 = vmul.f32 %v5707_v36, %v2719_v22 }
 0xf80   :  { %v2691_v13 = vadd.f32 1e-05, %v2675_v57  ;;  %v2740_v37 = vmul.f32 %v5707_v36, %v2718_v17 }
 0xf81   :  { %v2690_v43 = vadd.f32 1e-05, %v2674_v55  ;;  %v2763_v53 = vadd.f32 %v5714_v35, %v2741_v30 }
 0xf82   :  { %4441 = vrsqrt.f32 %v2691_v13  ;;  %v2762_v3 = vadd.f32 %v5714_v35, %v2740_v37 }
 0xf83   :  { %4443 = vrsqrt.f32 %v2690_v43 }
 0xf84   :  { %v4438_v26 = vpop.eup %4437  ;;  %3920 = vmatprep.mubr.f32.mxu0 %v2762_v3 }
 0xf85   :  { %v4440_v27 = vpop.eup %4439  ;;  %v2661_v44 = vpop.xlane.xlu1 %2660  ;;  %3921 = vmatmul.mubr.f32.gmra.mrb[74].mxu0 %v2763_v53  ;;  %v2721_v52 = vmul.f32 %v4438_v26, %v5671_v51 }
 0xf86   :  { %v2677_v25 = vmul.f32 0.03125, %v2661_v44  ;;  %v2659_v56 = vpop.xlane.xlu0 %2658  ;;  %v2720_v47 = vmul.f32 %v4440_v27, %v5674_v4 }
 0xf87   :  { %v2676_v8 = vmul.f32 0.03125, %v2659_v56  ;;  %v2743_v9 = vmul.f32 %v5707_v36, %v2721_v52 }
 0xf88   :  { %v2693_v20 = vadd.f32 1e-05, %v2677_v25  ;;  %v2742_v41 = vmul.f32 %v5707_v36, %v2720_v47 }
 0xf89   :  { %v2692_v6 = vadd.f32 1e-05, %v2676_v8  ;;  %v2765_v18 = vadd.f32 %v5714_v35, %v2743_v9 }
 0xf8a   :  { %4445 = vrsqrt.f32 %v2693_v20  ;;  %v2764_v42 = vadd.f32 %v5714_v35, %v2742_v41 }
 0xf8b   :  { %4447 = vrsqrt.f32 %v2692_v6 }
 0xf8c   :  { %v4442_v14 = vpop.eup %4441  ;;  %3923 = vmatprep.mubr.f32.mxu0 %v2764_v42 }
 0xf8d   :  { %v4444_v51 = vpop.eup %4443  ;;  %3924 = vmatmul.mubr.f32.gmra.mrb[76].mxu0 %v2765_v18  ;;  %v2723_v23 = vmul.f32 %v4442_v14, %v5683_v50 }
 0xf8e   :  { %v2722_v4 = vmul.f32 %v4444_v51, %v5686_v11 }
 0xf8f   :  { %v2745_v5 = vmul.f32 %v5707_v36, %v2723_v23 }
 0xf90   :  { %v2744_v39 = vmul.f32 %v5707_v36, %v2722_v4 }
 0xf91   :  { %v2767_v48 = vadd.f32 %v5714_v35, %v2745_v5 }
 0xf92   :  { %v2766_v24 = vadd.f32 %v5714_v35, %v2744_v39 }
 0xf94   :  { %v4446_v7 = vpop.eup %4445  ;;  %3926 = vmatprep.mubr.f32.mxu0 %v2766_v24 }
 0xf95   :  { %v4448_v12 = vpop.eup %4447  ;;  %3927 = vmatmul.mubr.f32.gmra.mrb[78].mxu0 %v2767_v48  ;;  %v2725_v28 = vmul.f32 %v4446_v7, %v5695_v10 }
 0xf96   :  { %v2724_v54 = vmul.f32 %v4448_v12, %v5698_v16 }
 0xf97   :  { %v2747_v50 = vmul.f32 %v5707_v36, %v2725_v28 }
 0xf98   :  { %v2746_v11 = vmul.f32 %v5707_v36, %v2724_v54 }
 0xf99   :  { %v2769_v40 = vadd.f32 %v5714_v35, %v2747_v50 }
 0xf9a   :  { %v2768_v33 = vadd.f32 %v5714_v35, %v2746_v11 }
 0xf9c   :  { %3929 = vmatprep.mubr.f32.mxu0 %v2768_v33 }
 0xf9d   :  { %3930 = vmatmul.mubr.f32.gmra.mrb[80].mxu0 %v2769_v40 }
 0xfde   :  { %v3910_v46 = vpop.f32.mrb[66].mxu0 }
 0xfdf   :  { %v2865_v10 = vadd.f32 %v3910_v46, %v5765_v59  ;;  %v2859_v1 = vpop.f32.mrb[67].mxu0 }
 0xfe0   :  { %v2860_v16 = vadd.f32 %v5765_v59, %v2859_v1 }
 0xfe1   :  { %v2955_v22 = vmul.f32 0.70710677, %v2865_v10  ;;  %v2939_v42 = vmul.f32 0.5, %v2865_v10 }
 0xfe2   :  { %v2954_v57 = vmul.f32 0.70710677, %v2860_v16  ;;  %v3913_v36 = vpop.f32.mrb[68].mxu0  ;;  %v2938_v41 = vmul.f32 0.5, %v2860_v16 }
 0xfe3   :  { %4449 = verf.f32 %v2955_v22  ;;  %v2875_v19 = vadd.f32 %v3913_v36, %v5765_v59  ;;  %v2869_v35 = vpop.f32.mrb[69].mxu0 }
 0xfe4   :  { %4451 = verf.f32 %v2954_v57  ;;  %v2870_v17 = vadd.f32 %v5765_v59, %v2869_v35 }
 0xfe5   :  { %v2957_v55 = vmul.f32 0.70710677, %v2875_v19  ;;  %v2941_v24 = vmul.f32 0.5, %v2875_v19 }
 0xfe6   :  { %v2956_v30 = vmul.f32 0.70710677, %v2870_v17  ;;  %v3916_v13 = vpop.f32.mrb[70].mxu0  ;;  %v2940_v5 = vmul.f32 0.5, %v2870_v17 }
 0xfe7   :  { %4453 = verf.f32 %v2957_v55  ;;  %v2885_v37 = vadd.f32 %v3916_v13, %v5765_v59  ;;  %v2879_v43 = vpop.f32.mrb[71].mxu0 }
 0xfe8   :  { %4455 = verf.f32 %v2956_v30  ;;  %v2880_v3 = vadd.f32 %v5765_v59, %v2879_v43 }
 0xfe9   :  { %v2959_v53 = vmul.f32 0.70710677, %v2885_v37  ;;  %v2943_v33 = vmul.f32 0.5, %v2885_v37 }
 0xfea   :  { %v2958_v26 = vmul.f32 0.70710677, %v2880_v3  ;;  %v3919_v27 = vpop.f32.mrb[72].mxu0  ;;  %v2942_v50 = vmul.f32 0.5, %v2880_v3 }
 0xfeb   :  { %4457 = verf.f32 %v2959_v53  ;;  %v2895_v44 = vadd.f32 %v3919_v27, %v5765_v59  ;;  %v2889_v52 = vpop.f32.mrb[73].mxu0 }
 0xfec   :  { %4459 = verf.f32 %v2958_v26  ;;  %v2890_v25 = vadd.f32 %v5765_v59, %v2889_v52 }
 0xfed   :  { %v4450_v56 = vpop.eup %4449  ;;  %v2961_v47 = vmul.f32 0.70710677, %v2895_v44  ;;  %v2945_v36 = vmul.f32 0.5, %v2895_v44 }
 0xfee   :  { %v4452_v8 = vpop.eup %4451  ;;  %v2987_v9 = vadd.f32 1.0, %v4450_v56  ;;  %v2960_v20 = vmul.f32 0.70710677, %v2890_v25  ;;  %v2944_v22 = vmul.f32 0.5, %v2890_v25 }
 0xfef   :  { %v2986_v6 = vadd.f32 1.0, %v4452_v8  ;;  %4461 = verf.f32 %v2961_v47 }
 0xff0   :  { %4463 = verf.f32 %v2960_v20  ;;  %v3003_v23 = vmul.f32 %v2987_v9, %v2939_v42 }
 0xff1   :  { %v4454_v18 = vpop.eup %4453  ;;  %v3002_v14 = vmul.f32 %v2986_v6, %v2938_v41 }
 0xff2   :  { %v4456_v51 = vpop.eup %4455  ;;  %v2989_v4 = vadd.f32 1.0, %v4454_v18 }
 0xff3   :  { %v2988_v39 = vadd.f32 1.0, %v4456_v51  ;;  %3964 = vmatprep.mubr.f32.mxu1 %v3002_v14 }
 0xff4   :  { %3965 = vmatmul.mubr.f32.vlgmr.msra.gmra.mrb[54].mxu1 %v3003_v23  ;;  %v3005_v54 = vmul.f32 %v2989_v4, %v2941_v24 }
 0xff5   :  { %v4458_v48 = vpop.eup %4457  ;;  %v3004_v7 = vmul.f32 %v2988_v39, %v2940_v5 }
 0xff6   :  { %v4460_v12 = vpop.eup %4459  ;;  %v2991_v28 = vadd.f32 1.0, %v4458_v48 }
 0xff7   :  { %v2990_v11 = vadd.f32 1.0, %v4460_v12  ;;  %3967 = vmatprep.mubr.f32.mxu1 %v3004_v7 }
 0xff8   :  { %3968 = vmatmul.mubr.f32.gmra.mrb[56].mxu1 %v3005_v54  ;;  %v3007_v16 = vmul.f32 %v2991_v28, %v2943_v33 }
 0xff9   :  { %v4462_v40 = vpop.eup %4461  ;;  %v3006_v46 = vmul.f32 %v2990_v11, %v2942_v50 }
 0xffa   :  { %v4464_v10 = vpop.eup %4463  ;;  %v2993_v1 = vadd.f32 1.0, %v4462_v40 }
 0xffb   :  { %v2992_v57 = vadd.f32 1.0, %v4464_v10  ;;  %3970 = vmatprep.mubr.f32.mxu1 %v3006_v46 }
 0xffc   :  { %3971 = vmatmul.mubr.f32.gmra.mrb[58].mxu1 %v3007_v16  ;;  %v3009_v35 = vmul.f32 %v2993_v1, %v2945_v36 }
 0xffd   :  { %v3008_v19 = vmul.f32 %v2992_v57, %v2944_v22 }
 0xfff   :  { %3973 = vmatprep.mubr.f32.mxu1 %v3008_v19 }
0x1000   :  { %3974 = vmatmul.mubr.f32.gmra.mrb[60].mxu1 %v3009_v35 }
0x1058   :  { %v3922_v17 = vpop.f32.mrb[74].mxu0 }
0x1059   :  { %v2905_v55 = vadd.f32 %v3922_v17, %v5765_v59  ;;  %v2899_v30 = vpop.f32.mrb[75].mxu0 }
0x105a   :  { %v2900_v13 = vadd.f32 %v5765_v59, %v2899_v30 }
0x105b   :  { %v2963_v37 = vmul.f32 0.70710677, %v2905_v55  ;;  %v2947_v42 = vmul.f32 0.5, %v2905_v55 }
0x105c   :  { %v2962_v43 = vmul.f32 0.70710677, %v2900_v13  ;;  %v2946_v9 = vmul.f32 0.5, %v2900_v13 }
0x105d   :  { %4465 = verf.f32 %v2963_v37 }
0x105e   :  { %4467 = verf.f32 %v2962_v43 }
0x1060   :  { %v3925_v3 = vpop.f32.mrb[76].mxu0 }
0x1061   :  { %v2915_v53 = vadd.f32 %v3925_v3, %v5765_v59  ;;  %v2909_v26 = vpop.f32.mrb[77].mxu0 }
0x1062   :  { %v2910_v27 = vadd.f32 %v5765_v59, %v2909_v26  ;;  %v5786_v26 = vld [vmem:[%s5849_s14] ss:$0 sm:$0xff]  ;;  %s4681_s14 = smov [#allocation12]  }
0x1063   :  { %v2965_v44 = vmul.f32 0.70710677, %v2915_v53  ;;  %v2949_v50 = vmul.f32 0.5, %v2915_v53  ;;  %s3303_s26 = sshll.u32 %s4681_s14, 4  ;;  %s3304_s26 = int_to_ptr.vmem [resolvable:$true] %s3303_s26 }
0x1064   :  { %v2964_v52 = vmul.f32 0.70710677, %v2910_v27  ;;  %v2948_v7 = vmul.f32 0.5, %v2910_v27  ;;  %s4639_s4 = scalar_lea.vmem %s3304_s26, 2048  ;;  %p4644_p13 = scmp.lt.s32.totalorder %s3304_s26, %s3304_s26 }
0x1065   :  { %4469 = verf.f32 %v2965_v44  ;;  %p4640_p12 = scmp.ne.s32.totalorder %s3304_s26, %s4639_s4  ;;  %p4645_p0 = scmp.lt.s32.totalorder %s4639_s4, %s4639_s4 }
0x1066   :  { %4471 = verf.f32 %v2964_v52 }
0x1067   :  { %v4466_v25 = vpop.eup %4465  ;;  %p4646_p1 = por %p4645_p0, %p4644_p13 }
0x1068   :  { %v4468_v56 = vpop.eup %4467  ;;  %v2995_v47 = vadd.f32 1.0, %v4466_v25  ;;  %v3928_v8 = vpop.f32.mrb[78].mxu0 }
0x1069   :  { %v2994_v20 = vadd.f32 1.0, %v4468_v56  ;;  %v2925_v41 = vadd.f32 %v3928_v8, %v5765_v59  ;;  %v2919_v6 = vpop.f32.mrb[79].mxu0  ;;  %p4647_p2 = pnand %p4646_p1, %p4640_p12 }
0x106a   :  { %v2920_v18 = vadd.f32 %v5765_v59, %v2919_v6  ;;  %v3011_v4 = vmul.f32 %v2995_v47, %v2947_v42 }
0x106b   :  { %v2967_v14 = vmul.f32 0.70710677, %v2925_v41  ;;  %v3010_v51 = vmul.f32 %v2994_v20, %v2946_v9  ;;  %v2951_v19 = vmul.f32 0.5, %v2925_v41 }
0x106c   :  { %v2966_v23 = vmul.f32 0.70710677, %v2920_v18  ;;  %v2950_v57 = vmul.f32 0.5, %v2920_v18 }
0x106d   :  { %4473 = verf.f32 %v2967_v14  ;;  %3976 = vmatprep.mubr.f32.mxu1 %v3010_v51 }
0x106e   :  { %4475 = verf.f32 %v2966_v23  ;;  %3977 = vmatmul.mubr.f32.gmra.mrb[62].mxu1 %v3011_v4 }
0x106f   :  { %v4470_v5 = vpop.eup %4469 }
0x1070   :  { %v4472_v39 = vpop.eup %4471  ;;  %v2997_v24 = vadd.f32 1.0, %v4470_v5  ;;  %v3931_v48 = vpop.f32.mrb[80].mxu0 }
0x1071   :  { %v2996_v12 = vadd.f32 1.0, %v4472_v39  ;;  %v2935_v28 = vadd.f32 %v3931_v48, %v5765_v59  ;;  %v2929_v54 = vpop.f32.mrb[81].mxu0 }
0x1072   :  { %v2930_v11 = vadd.f32 %v5765_v59, %v2929_v54  ;;  %v3013_v10 = vmul.f32 %v2997_v24, %v2949_v50 }
0x1073   :  { %v2969_v33 = vmul.f32 0.70710677, %v2935_v28  ;;  %v3012_v40 = vmul.f32 %v2996_v12, %v2948_v7  ;;  %v2953_v43 = vmul.f32 0.5, %v2935_v28 }
0x1074   :  { %v2968_v46 = vmul.f32 0.70710677, %v2930_v11  ;;  %v2952_v13 = vmul.f32 0.5, %v2930_v11 }
0x1075   :  { %4477 = verf.f32 %v2969_v33  ;;  %3979 = vmatprep.mubr.f32.mxu1 %v3012_v40 }
0x1076   :  { %4479 = verf.f32 %v2968_v46  ;;  %3980 = vmatmul.mubr.f32.gmra.mrb[64].mxu1 %v3013_v10 }
0x1077   :  { %v4474_v1 = vpop.eup %4473 }
0x1078   :  { %v4476_v16 = vpop.eup %4475  ;;  %v2999_v22 = vadd.f32 1.0, %v4474_v1 }
0x1079   :  { %v2998_v36 = vadd.f32 1.0, %v4476_v16 }
0x107a   :  { %v3015_v17 = vmul.f32 %v2999_v22, %v2951_v19 }
0x107b   :  { %v3014_v35 = vmul.f32 %v2998_v36, %v2950_v57 }
0x107d   :  { %3982 = vmatprep.mubr.f32.mxu1 %v3014_v35 }
0x107e   :  { %3983 = vmatmul.mubr.f32.gmra.mrb[66].mxu1 %v3015_v17 }
0x107f   :  { %v4478_v55 = vpop.eup %4477 }
0x1080   :  { %v4480_v59 = vpop.eup %4479  ;;  %v3001_v30 = vadd.f32 1.0, %v4478_v55 }
0x1081   :  { %v3000_v37 = vadd.f32 1.0, %v4480_v59 }
0x1082   :  { %v3017_v53 = vmul.f32 %v3001_v30, %v2953_v43 }
0x1083   :  { %v3016_v3 = vmul.f32 %v3000_v37, %v2952_v13 }
0x1085   :  { %3985 = vmatprep.mubr.f32.mxu1 %v3016_v3 }
0x1086   :  { %3986 = vmatmul.mubr.f32.gmra.mrb[68].mxu1 %v3017_v53 }
0x10c7   :  { %v3966_v27 = vpop.f32.mrb[54].mxu1 }
0x10c8   :  { %v3113_v44 = vadd.f32 %v3966_v27, %v5786_v26  ;;  %v3107_v52 = vpop.f32.mrb[55].mxu1 }
0x10c9   :  { %v3108_v25 = vadd.f32 %v5786_v26, %v3107_v52 }
0x10ca   :  { %v3203_v56 = vmul.f32 0.70710677, %v3113_v44  ;;  %v3187_v50 = vmul.f32 0.5, %v3113_v44 }
0x10cb   :  { %v3202_v47 = vmul.f32 0.70710677, %v3108_v25  ;;  %v3969_v8 = vpop.f32.mrb[56].mxu1  ;;  %v3186_v40 = vmul.f32 0.5, %v3108_v25 }
0x10cc   :  { %4481 = verf.f32 %v3203_v56  ;;  %v3123_v9 = vadd.f32 %v3969_v8, %v5786_v26  ;;  %v3117_v20 = vpop.f32.mrb[57].mxu1 }
0x10cd   :  { %4483 = verf.f32 %v3202_v47  ;;  %v3118_v41 = vadd.f32 %v5786_v26, %v3117_v20 }
0x10ce   :  { %v3205_v6 = vmul.f32 0.70710677, %v3123_v9  ;;  %v3189_v36 = vmul.f32 0.5, %v3123_v9 }
0x10cf   :  { %v3204_v42 = vmul.f32 0.70710677, %v3118_v41  ;;  %v3972_v18 = vpop.f32.mrb[58].mxu1  ;;  %v3188_v17 = vmul.f32 0.5, %v3118_v41 }
0x10d0   :  { %4485 = verf.f32 %v3205_v6  ;;  %v3133_v14 = vadd.f32 %v3972_v18, %v5786_v26  ;;  %v3127_v51 = vpop.f32.mrb[59].mxu1 }
0x10d1   :  { %4487 = verf.f32 %v3204_v42  ;;  %v3128_v23 = vadd.f32 %v5786_v26, %v3127_v51 }
0x10d2   :  { %v3207_v4 = vmul.f32 0.70710677, %v3133_v14  ;;  %v3191_v3 = vmul.f32 0.5, %v3133_v14 }
0x10d3   :  { %v3206_v5 = vmul.f32 0.70710677, %v3128_v23  ;;  %v3975_v39 = vpop.f32.mrb[60].mxu1  ;;  %v3190_v44 = vmul.f32 0.5, %v3128_v23 }
0x10d4   :  { %4489 = verf.f32 %v3207_v4  ;;  %v3143_v24 = vadd.f32 %v3975_v39, %v5786_v26  ;;  %v3137_v48 = vpop.f32.mrb[61].mxu1 }
0x10d5   :  { %4491 = verf.f32 %v3206_v5  ;;  %v3138_v7 = vadd.f32 %v5786_v26, %v3137_v48 }
0x10d6   :  { %v4482_v12 = vpop.eup %4481  ;;  %v3209_v28 = vmul.f32 0.70710677, %v3143_v24  ;;  %v3193_v8 = vmul.f32 0.5, %v3143_v24 }
0x10d7   :  { %v4484_v54 = vpop.eup %4483  ;;  %v3235_v11 = vadd.f32 1.0, %v4482_v12  ;;  %v3208_v33 = vmul.f32 0.70710677, %v3138_v7  ;;  %v3192_v41 = vmul.f32 0.5, %v3138_v7 }
0x10d8   :  { %v3234_v46 = vadd.f32 1.0, %v4484_v54  ;;  %4493 = verf.f32 %v3209_v28 }
0x10d9   :  { %v3251_v10 = vmul.f32 %v3235_v11, %v3187_v50  ;;  %4495 = verf.f32 %v3208_v33 }
0x10da   :  { %v4486_v1 = vpop.eup %4485  ;;  %v3250_v16 = vmul.f32 %v3234_v46, %v3186_v40 }
0x10db   :  { %v4488_v22 = vpop.eup %4487  ;;  %v3267_v57 = vadd.f32 %v3251_v10, %v5557_v29  ;;  %v3237_v19 = vadd.f32 1.0, %v4486_v1 }
0x10dc   :  { %v3266_v35 = vadd.f32 %v3250_v16, %v5535_v45  ;;  %v3236_v55 = vadd.f32 1.0, %v4488_v22 }
0x10dd   :  { %3283 = vst [vmem:[#allocation12 + $0x8] sm:$0xff] %v3267_v57  ;;  %v3253_v59 = vmul.f32 %v3237_v19, %v3189_v36 }
0x10de   :  { %v4490_v30 = vpop.eup %4489  ;;  %3282 = vst [vmem:[#allocation12] sm:$0xff] %v3266_v35  ;;  %v3252_v13 = vmul.f32 %v3236_v55, %v3188_v17 }
0x10df   :  { %v4492_v37 = vpop.eup %4491  ;;  %v3269_v43 = vadd.f32 %v3253_v59, %v5543_v34  ;;  %v3239_v53 = vadd.f32 1.0, %v4490_v30 }
0x10e0   :  { %v3268_v27 = vadd.f32 %v3252_v13, %v5539_v15  ;;  %v3238_v29 = vadd.f32 1.0, %v4492_v37 }
0x10e1   :  { %3285 = vst [vmem:[#allocation12 + $0x18] sm:$0xff] %v3269_v43  ;;  %v3255_v52 = vmul.f32 %v3239_v53, %v3191_v3 }
0x10e2   :  { %v4494_v25 = vpop.eup %4493  ;;  %3284 = vst [vmem:[#allocation12 + $0x10] sm:$0xff] %v3268_v27  ;;  %v3254_v45 = vmul.f32 %v3238_v29, %v3190_v44 }
0x10e3   :  { %v4496_v56 = vpop.eup %4495  ;;  %v3271_v47 = vadd.f32 %v3255_v52, %v5561_v58  ;;  %v3241_v9 = vadd.f32 1.0, %v4494_v25 }
0x10e4   :  { %v3270_v20 = vadd.f32 %v3254_v45, %v5547_v49  ;;  %v3240_v34 = vadd.f32 1.0, %v4496_v56 }
0x10e5   :  { %3287 = vst [vmem:[#allocation12 + $0x28] sm:$0xff] %v3271_v47  ;;  %v3257_v6 = vmul.f32 %v3241_v9, %v3193_v8 }
0x10e6   :  { %3286 = vst [vmem:[#allocation12 + $0x20] sm:$0xff] %v3270_v20  ;;  %v3256_v15 = vmul.f32 %v3240_v34, %v3192_v41 }
0x10e7   :  { %v3273_v42 = vadd.f32 %v3257_v6, %v5565_v2 }
0x10e8   :  { %v3272_v18 = vadd.f32 %v3256_v15, %v5551_v21 }
0x10e9   :  { %3289 = vst [vmem:[#allocation12 + $0x38] sm:$0xff] %v3273_v42 }
0x10ea   :  { %3288 = vst [vmem:[#allocation12 + $0x30] sm:$0xff] %v3272_v18 }
0x1141   :  { %v3978_v14 = vpop.f32.mrb[62].mxu1 }
0x1142   :  { %v3153_v51 = vadd.f32 %v3978_v14, %v5786_v26  ;;  %v3147_v58 = vpop.f32.mrb[63].mxu1 }
0x1143   :  { %v3148_v23 = vadd.f32 %v5786_v26, %v3147_v58 }
0x1144   :  { %v3211_v4 = vmul.f32 0.70710677, %v3153_v51  ;;  %v3195_v28 = vmul.f32 0.5, %v3153_v51 }
0x1145   :  { %v3210_v49 = vmul.f32 0.70710677, %v3148_v23  ;;  %v3194_v11 = vmul.f32 0.5, %v3148_v23 }
0x1146   :  { %4497 = verf.f32 %v3211_v4 }
0x1147   :  { %4499 = verf.f32 %v3210_v49 }
0x1149   :  { %v3981_v5 = vpop.f32.mrb[64].mxu1 }
0x114a   :  { %v3163_v39 = vadd.f32 %v3981_v5, %v5786_v26  ;;  %v3157_v24 = vpop.f32.mrb[65].mxu1 }
0x114b   :  { %v3158_v2 = vadd.f32 %v5786_v26, %v3157_v24 }
0x114c   :  { %v3213_v48 = vmul.f32 0.70710677, %v3163_v39  ;;  %v3197_v55 = vmul.f32 0.5, %v3163_v39 }
0x114d   :  { %v3212_v21 = vmul.f32 0.70710677, %v3158_v2  ;;  %v3196_v13 = vmul.f32 0.5, %v3158_v2 }
0x114e   :  { %4501 = verf.f32 %v3213_v48 }
0x114f   :  { %4503 = verf.f32 %v3212_v21 }
0x1150   :  { %v4498_v7 = vpop.eup %4497 }
0x1151   :  { %v4500_v12 = vpop.eup %4499  ;;  %v3243_v54 = vadd.f32 1.0, %v4498_v7  ;;  %v3984_v50 = vpop.f32.mrb[66].mxu1 }
0x1152   :  { %v3242_v33 = vadd.f32 1.0, %v4500_v12  ;;  %v3173_v40 = vadd.f32 %v3984_v50, %v5786_v26  ;;  %v3167_v46 = vpop.f32.mrb[67].mxu1 }
0x1153   :  { %v3259_v10 = vmul.f32 %v3243_v54, %v3195_v28  ;;  %v3168_v1 = vadd.f32 %v5786_v26, %v3167_v46 }
0x1154   :  { %v3258_v16 = vmul.f32 %v3242_v33, %v3194_v11  ;;  %v3215_v22 = vmul.f32 0.70710677, %v3173_v40  ;;  %v3199_v56 = vmul.f32 0.5, %v3173_v40 }
0x1155   :  { %v3275_v57 = vadd.f32 %v3259_v10, %v5577_v60  ;;  %v3214_v36 = vmul.f32 0.70710677, %v3168_v1  ;;  %v3198_v8 = vmul.f32 0.5, %v3168_v1 }
0x1156   :  { %v3274_v19 = vadd.f32 %v3258_v16, %v5580_v38  ;;  %4505 = verf.f32 %v3215_v22 }
0x1157   :  { %3291 = vst [vmem:[#allocation12 + $0x48] sm:$0xff] %v3275_v57  ;;  %4507 = verf.f32 %v3214_v36 }
0x1158   :  { %v4502_v35 = vpop.eup %4501  ;;  %3290 = vst [vmem:[#allocation12 + $0x40] sm:$0xff] %v3274_v19 }
0x1159   :  { %v4504_v17 = vpop.eup %4503  ;;  %v3245_v59 = vadd.f32 1.0, %v4502_v35  ;;  %v3987_v30 = vpop.f32.mrb[68].mxu1 }
0x115a   :  { %v3244_v37 = vadd.f32 1.0, %v4504_v17  ;;  %v3183_v43 = vadd.f32 %v3987_v30, %v5786_v26  ;;  %v3177_v3 = vpop.f32.mrb[69].mxu1 }
0x115b   :  { %v3261_v53 = vmul.f32 %v3245_v59, %v3197_v55  ;;  %v3178_v60 = vadd.f32 %v5786_v26, %v3177_v3 }
0x115c   :  { %v3260_v27 = vmul.f32 %v3244_v37, %v3196_v13  ;;  %v3217_v44 = vmul.f32 0.70710677, %v3183_v43  ;;  %v3201_v6 = vmul.f32 0.5, %v3183_v43 }
0x115d   :  { %v3277_v38 = vadd.f32 %v3261_v53, %v5585_v62  ;;  %v3216_v29 = vmul.f32 0.70710677, %v3178_v60  ;;  %v3200_v42 = vmul.f32 0.5, %v3178_v60 }
0x115e   :  { %v3276_v52 = vadd.f32 %v3260_v27, %v5588_v32  ;;  %4509 = verf.f32 %v3217_v44 }
0x115f   :  { %3293 = vst [vmem:[#allocation12 + $0x58] sm:$0xff] %v3277_v38  ;;  %4511 = verf.f32 %v3216_v29 }
0x1160   :  { %v4506_v25 = vpop.eup %4505  ;;  %3292 = vst [vmem:[#allocation12 + $0x50] sm:$0xff] %v3276_v52 }
0x1161   :  { %v4508_v45 = vpop.eup %4507  ;;  %v3247_v47 = vadd.f32 1.0, %v4506_v25 }
0x1162   :  { %v3246_v9 = vadd.f32 1.0, %v4508_v45 }
0x1163   :  { %v3263_v20 = vmul.f32 %v3247_v47, %v3199_v56 }
0x1164   :  { %v3262_v41 = vmul.f32 %v3246_v9, %v3198_v8 }
0x1165   :  { %v3279_v26 = vadd.f32 %v3263_v20, %v5593_v0 }
0x1166   :  { %v3278_v34 = vadd.f32 %v3262_v41, %v5596_v31 }
0x1167   :  { %3295 = vst [vmem:[#allocation12 + $0x68] sm:$0xff] %v3279_v26 }
0x1168   :  { %v4510_v62 = vpop.eup %4509  ;;  %3294 = vst [vmem:[#allocation12 + $0x60] sm:$0xff] %v3278_v34 }
0x1169   :  { %v4512_v32 = vpop.eup %4511  ;;  %v3249_v15 = vadd.f32 1.0, %v4510_v62 }
0x116a   :  { %v3248_v18 = vadd.f32 1.0, %v4512_v32 }
0x116b   :  { %v3265_v14 = vmul.f32 %v3249_v15, %v3201_v6 }
0x116c   :  { %v3264_v51 = vmul.f32 %v3248_v18, %v3200_v42 }
0x116d   :  { %v3281_v58 = vadd.f32 %v3265_v14, %v5607_v63 }
0x116e   :  { %v3280_v23 = vadd.f32 %v3264_v51, %v5614_v61 }
0x116f   :  { %3297 = vst [vmem:[#allocation12 + $0x78] sm:$0xff] %v3281_v58 }
0x1170   :  { %3296 = vst [vmem:[#allocation12 + $0x70] sm:$0xff] %v3280_v23 }
0x1171   :  { %4650 = shalt.err (!%p4647_p2)
}
0x1172   :  { %s5853_s16 = sld [smem:[#allocation17_spill]] }
0x1178   :  { %s4651_s7 = scalar_lea.hbm %s5853_s16, 2048 }
0x1179   :  { %p4652_p3 = scmp.ne.s32.totalorder %s5853_s16, %s4651_s7  ;;  %p4655_p4 = scmp.lt.u32.totalorder %s4651_s7, %s5853_s16 }
0x117b   :  { %p4657_p5 = pnand %p4655_p4, %p4652_p3 }
0x117d   :  { %4660 = shalt.err (!%p4657_p5)
}
0x117e   :  { %3309 = dma.vmem_to_hbm [thread:$0]  %s3304_s26, 2048, %s5853_s16, [#allocation5], %s4674_s19, %s4674_s19, %s4675_s28  }
0x117f   :  { %4667 = dma.done.wait [#allocation5], 2048  }
0x1180   :  { %4668 = vsyncadd [#allocation5], 4294965248 }
0x1181   :  { %3313 = vsyncpa [#allocation4], 1 }
0x1182   :  { %3314 = vsyncpa [#allocation7], 1 }
0x1183   :  { %3315 = vsyncpa [#allocation10], 1 }
0x1184   :  { %3316 = vsyncpa [#allocation5], 1 }

</bundles_post_ra>
